<compile_context>
chip_gen: v7x
topology: tpu7x:2x2x1
jax: 0.10.0
libtpu: 0.0.40
codegen_flags: <defaults>
</compile_context>

<pallas_src>
import functools

import jax
import jax.numpy as jnp
from jax.experimental import pallas as pl
from jax.experimental.pallas import tpu as pltpu

BN_EPS = 1e-5
_INV_SQRT2 = 0.7071067811865476
_SQRT_2_OVER_PI = 0.7978845608028654

# tanh/exp GELU rides the EUP (the kernels are otherwise VALU-bound).  Set to
# False to restore the exact-erf formulation of torch.nn.GELU() (bit parity).
GELU_APPROXIMATE = True


def _gelu_exact(x):
    return 0.5 * x * (1.0 + jax.lax.erf(x * _INV_SQRT2))


def _gelu(x):
    if GELU_APPROXIMATE:
        return 0.5 * x * (1.0 + jnp.tanh(_SQRT_2_OVER_PI * (x + 0.044715 * (x * x * x))))
    return _gelu_exact(x)


# ------------------------------ in-kernel helpers ------------------------------

def _depthwise_gelu(x, dww, dwb, *, H, W, k):
    """GELU(depthwise_conv(x, padding='same') + bias), accumulated in jnp values.

    x:   (H, W, Cp) f32 value (one image block, channels lane-dense)
    dww: (k*k, Cp)  f32 value (depthwise taps, tap i = (dy, dx), i = dy*k + dx)
    dwb: (1, Cp)    f32 value
    """
    p = (k - 1) // 2
    Cp = x.shape[-1]

    # 'same' zero padding along H, fused in VMEM (no wrapper-side jnp.pad round trip).
    if p > 0:
        zrow = jnp.zeros((p, W, Cp), jnp.float32)
        full = jnp.concatenate([zrow, x, zrow], axis=0)          # (H + 2p, W, Cp)
    else:
        full = x

    # Small (1, W, 1) column index -- not a full-image int32 buffer.
    wi = jax.lax.broadcasted_iota(jnp.int32, (1, W, 1), 1)

    acc = jnp.zeros((H, W, Cp), jnp.float32)
    # dx outer: one XLU roll + one small-mask select per column offset (k total),
    # then k taps per offset accumulate into vreg-resident partial sums.
    for dx in range(k):
        sw = dx - p
        if sw == 0:
            cols = full
        else:
            shifted = pltpu.roll(full, shift=(-sw) % W, axis=1)  # cols[w] = full[w + sw]
            valid = jnp.logical_and(wi + sw >= 0, wi + sw < W)   # (1, W, 1)
            cols = jnp.where(valid, shifted, 0.0)
        for dy in range(k):
            i = dy * k + dx
            acc = acc + cols[dy:dy + H, :, :] * dww[i:i + 1, :].reshape(1, 1, Cp)

    acc = acc + dwb.reshape(1, 1, Cp)
    return _gelu(acc)


def _write_stats(stats_ref, flat):
    """stats_ref[0] <- per-image (sum, sum_sq) over the flattened spatial axis."""
    Cp = flat.shape[-1]
    stats_ref[0:1, 0:1, :] = jnp.sum(flat, axis=0, keepdims=True).reshape(1, 1, Cp)
    stats_ref[0:1, 1:2, :] = jnp.sum(flat * flat, axis=0, keepdims=True).reshape(1, 1, Cp)


def _bn1_residual_pointwise(xv, h, a1, pww, pwb, y_ref, stats_ref, *, H, W):
    """Folded-BN1 affine + residual + 1x1 conv (bf16 MXU, f32 acc) + GELU + BN2 stats."""
    Cp = xv.shape[-1]
    scale1 = a1[0:1, :].reshape(1, 1, Cp)
    shift1 = a1[1:2, :].reshape(1, 1, Cp)
    r = xv + (h * scale1 + shift1)

    # 1x1 conv == lane-dense MXU matmul: bf16 inputs, f32 accumulation.
    flat = r.reshape(H * W, Cp).astype(jnp.bfloat16)
    z = jnp.dot(flat, pww, preferred_element_type=jnp.float32) + pwb
    y = _gelu(z)                                                 # (H*W, Cp) f32

    y_ref[0] = y.reshape(H, W, Cp).astype(y_ref.dtype)           # bf16 writeback
    _write_stats(stats_ref, y)                                   # BN2 stats from f32 y


# ---------------------------------- kernels ------------------------------------

def _dw_stats_kernel(x_ref, dww_ref, dwb_ref, stats_ref, *, H, W, k):
    """Pass 1 (recompute mode, k<=3): BN1 stats of GELU(depthwise(x))."""
    h = _depthwise_gelu(x_ref[0], dww_ref[...], dwb_ref[...], H=H, W=W, k=k)
    _write_stats(stats_ref, h.reshape(H * W, h.shape[-1]))


def _dw_store_stats_kernel(x_ref, dww_ref, dwb_ref, h_ref, stats_ref, *, H, W, k):
    """Pass 1 (store mode, k>3): also write h = GELU(depthwise(x)) to HBM as bf16."""
    h = _depthwise_gelu(x_ref[0], dww_ref[...], dwb_ref[...], H=H, W=W, k=k)
    h_ref[0] = h.astype(h_ref.dtype)
    _write_stats(stats_ref, h.reshape(H * W, h.shape[-1]))


def _main_recompute_kernel(x_ref, dww_ref, dwb_ref, a1_ref, pww_ref, pwb_ref,
                           y_ref, stats_ref, *, H, W, k):
    """Pass 2 (recompute mode, k<=3): cheap depthwise+GELU recompute in VMEM."""
    xv = x_ref[0]
    h = _depthwise_gelu(xv, dww_ref[...], dwb_ref[...], H=H, W=W, k=k)
    _bn1_residual_pointwise(xv, h, a1_ref[...], pww_ref[...], pwb_ref[...],
                            y_ref, stats_ref, H=H, W=W)


def _main_stored_kernel(x_ref, h_ref, a1_ref, pww_ref, pwb_ref,
                        y_ref, stats_ref, *, H, W):
    """Pass 2 (store mode, k>3): reuse the bf16 depthwise+GELU intermediate."""
    xv = x_ref[0]
    h = h_ref[0].astype(jnp.float32)
    _bn1_residual_pointwise(xv, h, a1_ref[...], pww_ref[...], pwb_ref[...],
                            y_ref, stats_ref, H=H, W=W)


# -------------------------------- host wrapper ----------------------------------

def _fold_bn(stats, gamma, beta, count):
    """Fold per-image (sum, sum_sq) partials into a training-mode BN affine."""
    s = jnp.sum(stats[:, 0, :], axis=0)
    ss = jnp.sum(stats[:, 1, :], axis=0)
    mean = s / count
    var = jnp.maximum(ss / count - mean * mean, 0.0)             # biased variance
    scale = gamma * jax.lax.rsqrt(var + BN_EPS)
    shift = beta - mean * scale
    return jnp.stack([scale, shift], axis=0)                     # (2, Cp)


def _vmem_limit_bytes():
    # 96 MiB on 128 MiB parts (v5e/v6e); 32 MiB on 64 MiB parts (v7x).
    try:
        cap = int(pltpu.get_tpu_info().vmem_capacity_bytes)
    except Exception:
        return 32 * 1024 * 1024
    return 96 * 1024 * 1024 if cap >= 100 * 1024 * 1024 else 32 * 1024 * 1024


def convmixer_layer_nhwc(x, params, kernel_size):
    """x: (B, H, W, C) float32 -> (B, H, W, C) float32.

    Use this entry point for stacked ConvMixer layers so activations stay NHWC
    (one transpose per network instead of two per layer)."""
    dw_w, dw_b, g1, b1, pw_w, pw_b, g2, b2 = params              # PyTorch layouts
    k = int(kernel_size)
    assert k % 2 == 1, "padding='same' depthwise conv expects an odd kernel size"
    B, H, W, C = x.shape
    # TODO(synk): round Cp up to 256 when C is not already a multiple of 256
    # (v6e/v7x MXUs are 2x256x256); real ConvMixer widths (768/1536) comply.
    Cp = ((C + 127) // 128) * 128                                # lane-dense channels
    pad_c = Cp - C
    n = B * H * W
    kk = k * k
    store_h = k > 3   # store the bf16 intermediate for big kernels; recompute for k<=3

    # Channel-last, channel-padded parameters.  Zero padding keeps the padded lanes
    # exactly zero through every stage; they are sliced off in the BN2 epilogue.
    dww = jnp.transpose(dw_w.reshape(C, k, k).astype(jnp.float32), (1, 2, 0)).reshape(kk, C)
    dww = jnp.pad(dww, ((0, 0), (0, pad_c)))
    dwb = jnp.pad(dw_b.astype(jnp.float32), (0, pad_c)).reshape(1, Cp)
    pww = jnp.pad(jnp.transpose(pw_w.reshape(C, C).astype(jnp.float32), (1, 0)),
                  ((0, pad_c), (0, pad_c))).astype(jnp.bfloat16)    # (Cin, Cout) bf16
    pwb = jnp.pad(pw_b.astype(jnp.float32), (0, pad_c)).reshape(1, Cp)
    g1p, b1p, g2p, b2p = (jnp.pad(v.astype(jnp.float32), (0, pad_c))
                          for v in (g1, b1, g2, b2))

    xp = jnp.pad(x.astype(jnp.float32), ((0, 0), (0, 0), (0, 0), (0, pad_c)))

    img_spec = pl.BlockSpec((1, H, W, Cp), lambda b: (b, 0, 0, 0))
    stats_spec = pl.BlockSpec((1, 2, Cp), lambda b: (b, 0, 0))

    def full_spec(shape):
        # Grid-invariant operand (weights / folded affines): one block == whole array.
        # TODO(synk): single-buffer these (pipeline_mode=pl.Buffered(1)) to save VMEM
        # for very wide models against v7x's 64 MiB VMEM.
        return pl.BlockSpec(shape, lambda b: (0,) * len(shape))

    cparams = pltpu.CompilerParams(
        dimension_semantics=("parallel",),       # shard batch across megacore TCs
        vmem_limit_bytes=_vmem_limit_bytes(),
    )

    # ---- pass 1: GELU(depthwise(x)) -> BN1 statistics (+ bf16 h when store_h) ----
    if store_h:
        h_bf16, stats1 = pl.pallas_call(
            functools.partial(_dw_store_stats_kernel, H=H, W=W, k=k),
            grid=(B,),
            in_specs=[img_spec, full_spec((kk, Cp)), full_spec((1, Cp))],
            out_specs=(img_spec, stats_spec),
            out_shape=(jax.ShapeDtypeStruct((B, H, W, Cp), jnp.bfloat16),
                       jax.ShapeDtypeStruct((B, 2, Cp), jnp.float32)),
            compiler_params=cparams,
            cost_estimate=pl.CostEstimate(
                flops=2 * n * Cp * kk, transcendentals=n * Cp,
                bytes_accessed=6 * n * Cp),
        )(xp, dww, dwb)
    else:
        h_bf16 = None
        stats1 = pl.pallas_call(
            functools.partial(_dw_stats_kernel, H=H, W=W, k=k),
            grid=(B,),
            in_specs=[img_spec, full_spec((kk, Cp)), full_spec((1, Cp))],
            out_specs=stats_spec,
            out_shape=jax.ShapeDtypeStruct((B, 2, Cp), jnp.float32),
            compiler_params=cparams,
            cost_estimate=pl.CostEstimate(
                flops=2 * n * Cp * kk, transcendentals=n * Cp,
                bytes_accessed=4 * n * Cp),
        )(xp, dww, dwb)
    a1 = _fold_bn(stats1, g1p, b1p, n)

    # ---- pass 2: BN1 affine + residual + bf16 MXU 1x1 conv + GELU (+ BN2 stats) ----
    out_shape2 = (jax.ShapeDtypeStruct((B, H, W, Cp), jnp.bfloat16),
                  jax.ShapeDtypeStruct((B, 2, Cp), jnp.float32))
    if store_h:
        y_bf16, stats2 = pl.pallas_call(
            functools.partial(_main_stored_kernel, H=H, W=W),
            grid=(B,),
            in_specs=[img_spec, img_spec, full_spec((2, Cp)),
                      full_spec((Cp, Cp)), full_spec((1, Cp))],
            out_specs=(img_spec, stats_spec),
            out_shape=out_shape2,
            compiler_params=cparams,
            cost_estimate=pl.CostEstimate(
                flops=2 * n * Cp * Cp, transcendentals=n * Cp,
                bytes_accessed=8 * n * Cp + 2 * Cp * Cp),
        )(xp, h_bf16, a1, pww, pwb)
    else:
        y_bf16, stats2 = pl.pallas_call(
            functools.partial(_main_recompute_kernel, H=H, W=W, k=k),
            grid=(B,),
            in_specs=[img_spec, full_spec((kk, Cp)), full_spec((1, Cp)),
                      full_spec((2, Cp)), full_spec((Cp, Cp)), full_spec((1, Cp))],
            out_specs=(img_spec, stats_spec),
            out_shape=out_shape2,
            compiler_params=cparams,
            cost_estimate=pl.CostEstimate(
                flops=2 * n * Cp * (kk + Cp), transcendentals=2 * n * Cp,
                bytes_accessed=6 * n * Cp + 2 * Cp * Cp),
        )(xp, dww, dwb, a1, pww, pwb)
    a2 = _fold_bn(stats2, g2p, b2p, n)

    # ---- BN2: folded affine applied as plain XLA, fused with the channel unpad
    # (and the consumer's transpose) -- no third pallas_call / HBM round trip.
    # TODO(synk): for stacked layers, fuse this affine into the next layer's pass-1
    # kernel (pass a2 in and apply it to x before the depthwise conv).
    scale2 = a2[0, :C].reshape(1, 1, 1, C)
    shift2 = a2[1, :C].reshape(1, 1, 1, C)
    out = y_bf16[..., :C].astype(jnp.float32) * scale2 + shift2

    # TODO(synk): for feature maps too large for one (H, W, Cp) block per grid step
    # (v7x 64 MiB VMEM), add an H-tiled variant with a (k-1)//2 halo in the x spec.
    return out


@functools.partial(jax.jit, static_argnames=("kernel_size",))
def convmixer_layer(x_nchw, params, kernel_size):
    """PyTorch-faithful entry point: NCHW in, NCHW out."""
    x = jnp.transpose(x_nchw, (0, 2, 3, 1))
    out = convmixer_layer_nhwc(x, params, kernel_size)
    return jnp.transpose(out, (0, 3, 1, 2))


# ------------------------------ pure-JAX reference ------------------------------

def _bn_train_ref(x_stats, gamma, beta, x_apply=None):
    if x_apply is None:
        x_apply = x_stats
    mean = jnp.mean(x_stats, axis=(0, 1, 2), keepdims=True)
    var = jnp.mean(jnp.square(x_stats - mean), axis=(0, 1, 2), keepdims=True)
    return ((x_apply - mean) * jax.lax.rsqrt(var + BN_EPS)
            * gamma.reshape(1, 1, 1, -1) + beta.reshape(1, 1, 1, -1))


def reference_forward(x_nchw, params, kernel_size, *, mirror_kernel=False):
    """Pure-JAX reference.

    mirror_kernel=False: PyTorch-equivalent (exact erf GELU, f32 matmul/intermediates).
    mirror_kernel=True : mirrors the Pallas kernels' deliberate numerics (kernel GELU,
                         bf16 MXU inputs, bf16 y intermediate) for a tight check.
    """
    dw_w, dw_b, g1, b1, pw_w, pw_b, g2, b2 = params
    k = kernel_size
    gelu = _gelu if mirror_kernel else _gelu_exact
    mm_dtype = jnp.bfloat16 if mirror_kernel else jnp.float32

    x = jnp.transpose(x_nchw, (0, 2, 3, 1)).astype(jnp.float32)
    B, H, W, C = x.shape
    p = (k - 1) // 2
    xpad = jnp.pad(x, ((0, 0), (p, p), (p, p), (0, 0)))
    dww = jnp.transpose(dw_w.reshape(C, k, k), (1, 2, 0))
    acc = jnp.zeros_like(x) + dw_b.reshape(1, 1, 1, C)
    for dy in range(k):
        for dx in range(k):
            acc = acc + xpad[:, dy:dy + H, dx:dx + W, :] * dww[dy, dx].reshape(1, 1, 1, C)
    h = _bn_train_ref(gelu(acc), g1, b1)
    r = x + h
    pww = jnp.transpose(pw_w.reshape(C, C), (1, 0))
    z = jnp.einsum("bhwc,cd->bhwd", r.astype(mm_dtype), pww.astype(mm_dtype),
                   preferred_element_type=jnp.float32) + pw_b.reshape(1, 1, 1, C)
    y = gelu(z)
    if mirror_kernel:
        y_store = y.astype(jnp.bfloat16).astype(jnp.float32)     # bf16 y intermediate
        out = _bn_train_ref(y, g2, b2, x_apply=y_store)          # stats from f32 y
    else:
        out = _bn_train_ref(y, g2, b2)
    return jnp.transpose(out, (0, 3, 1, 2))


# ------------------------------------ test --------------------------------------

def _run_case(key, B, C, H, W, ksize):
    k0, k1, k2, k3, k4 = jax.random.split(key, 5)
    x = jax.random.normal(k0, (B, C, H, W), dtype=jnp.float32)

    # Deterministic synthetic parameters in PyTorch layouts.
    dw_w = jax.random.normal(k1, (C, 1, ksize, ksize), jnp.float32) * 0.2
    dw_b = jax.random.normal(k2, (C,), jnp.float32) * 0.1
    pw_w = jax.random.normal(k3, (C, C, 1, 1), jnp.float32) * 0.1
    pw_b = jax.random.normal(k4, (C,), jnp.float32) * 0.1
    g1 = jnp.ones((C,), jnp.float32)
    b1 = jnp.zeros((C,), jnp.float32)
    g2 = jnp.ones((C,), jnp.float32)
    b2 = jnp.zeros((C,), jnp.float32)
    params = (dw_w, dw_b, g1, b1, pw_w, pw_b, g2, b2)

    out = jax.block_until_ready(convmixer_layer(x, params, ksize))
    assert out.shape == (B, C, H, W)

    # Tight check vs a reference that mirrors the kernel's deliberate numerics
    # (tanh GELU, bf16 MXU inputs, bf16 y intermediate).
    ref_mirror = jax.block_until_ready(
        reference_forward(x, params, ksize, mirror_kernel=True))
    assert jnp.allclose(out, ref_mirror, atol=1.5e-2, rtol=1.5e-2), (
        "k=%d mismatch vs kernel-mirroring reference, max|diff|=%e"
        % (ksize, float(jnp.max(jnp.abs(out - ref_mirror)))))

    # Looser check vs the exact-f32 PyTorch-equivalent reference (bounded by the
    # documented bf16 / approximate-GELU deviations).
    ref_torch = jax.block_until_ready(
        reference_forward(x, params, ksize, mirror_kernel=False))
    assert jnp.allclose(out, ref_torch, atol=7.5e-2, rtol=7.5e-2), (
        "k=%d mismatch vs f32 reference, max|diff|=%e"
        % (ksize, float(jnp.max(jnp.abs(out - ref_torch)))))


if __name__ == "__main__":
    # Small config consistent with the module: hidden_size = 32, input (2, 32, 16, 16).
    B, C, H, W = 2, 32, 16, 16
    key = jax.random.PRNGKey(0)
    ka, kb = jax.random.split(key)
    _run_case(ka, B, C, H, W, ksize=3)   # recompute path (k <= 3)
    _run_case(kb, B, C, H, W, ksize=9)   # store-h path (k > 3, realistic ConvMixer)
    print("KERNEL_OK")
</pallas_src>

<mosaic_0001>
module attributes {stable_mosaic.version = 11 : i64} {
  func.func @_dw_stats_kernel(%arg0: i32, %arg1: memref<1x16x16x128xf32, #tpu.memory_space<vmem>>, %arg2: memref<9x128xf32, #tpu.memory_space<vmem>>, %arg3: memref<1x128xf32, #tpu.memory_space<vmem>>, %arg4: memref<1x2x128xf32, #tpu.memory_space<vmem>>) attributes {dimension_semantics = [#tpu.dimension_semantics<parallel>], iteration_bounds = array<i64: 2>, scalar_prefetch = 0 : i64, scratch_operands = 0 : i64, tpu.core_type = #tpu.core_type<tc>, window_params = [{transform_indices = @transform_0, window_bounds = array<i64: 1, 16, 16, 128>}, {pipeline_mode = #tpu.pipeline_mode<synchronous>, transform_indices = @transform_1, window_bounds = array<i64: 9, 128>}, {pipeline_mode = #tpu.pipeline_mode<synchronous>, transform_indices = @transform_2, window_bounds = array<i64: 1, 128>}, {transform_indices = @transform_3, window_bounds = array<i64: 1, 2, 128>}]} {
    %c0 = arith.constant 0 : index
    %c0_0 = arith.constant 0 : index
    %c0_1 = arith.constant 0 : index
    %c0_2 = arith.constant 0 : index
    %0 = vector.load %arg1[%c0, %c0_0, %c0_1, %c0_2] : memref<1x16x16x128xf32, #tpu.memory_space<vmem>>, vector<1x16x16x128xf32>
    %1 = vector.shape_cast %0 : vector<1x16x16x128xf32> to vector<16x16x128xf32>
    %c0_3 = arith.constant 0 : index
    %c0_4 = arith.constant 0 : index
    %2 = vector.load %arg2[%c0_3, %c0_4] : memref<9x128xf32, #tpu.memory_space<vmem>>, vector<9x128xf32>
    %c0_5 = arith.constant 0 : index
    %c0_6 = arith.constant 0 : index
    %3 = vector.load %arg3[%c0_5, %c0_6] : memref<1x128xf32, #tpu.memory_space<vmem>>, vector<1x128xf32>
    %cst = arith.constant 0.000000e+00 : f32
    %4 = vector.broadcast %cst : f32 to vector<1x16x128xf32>
    %5 = tpu.concatenate %4, %1, %4 in 0 : vector<1x16x128xf32>, vector<16x16x128xf32>, vector<1x16x128xf32> -> vector<18x16x128xf32>
    %6 = tpu.iota {dimensions = array<i32: 1>} : vector<1x16x1xi32>
    %cst_7 = arith.constant 0.000000e+00 : f32
    %7 = vector.broadcast %cst_7 : f32 to vector<16x16x128xf32>
    %c1_i32 = arith.constant 1 : i32
    %8 = tpu.dynamic_rotate %5 by %c1_i32 dim 1 : vector<18x16x128xf32>, i32 -> vector<18x16x128xf32>
    %c-1_i32 = arith.constant -1 : i32
    %9 = vector.broadcast %c-1_i32 : i32 to vector<1x16x1xi32>
    %10 = arith.addi %6, %9 : vector<1x16x1xi32>
    %c0_i32 = arith.constant 0 : i32
    %11 = vector.broadcast %c0_i32 : i32 to vector<1x16x1xi32>
    %12 = arith.cmpi sge, %10, %11 : vector<1x16x1xi32>
    %c-1_i32_8 = arith.constant -1 : i32
    %13 = vector.broadcast %c-1_i32_8 : i32 to vector<1x16x1xi32>
    %14 = arith.addi %6, %13 : vector<1x16x1xi32>
    %c16_i32 = arith.constant 16 : i32
    %15 = vector.broadcast %c16_i32 : i32 to vector<1x16x1xi32>
    %16 = arith.cmpi slt, %14, %15 : vector<1x16x1xi32>
    %17 = arith.andi %12, %16 : vector<1x16x1xi1>
    %cst_9 = arith.constant 0.000000e+00 : f32
    %18 = vector.shape_cast %17 : vector<1x16x1xi1> to vector<1x16x1xi1>
    %19 = vector.broadcast %18 : vector<1x16x1xi1> to vector<18x16x128xi1>
    %20 = vector.broadcast %cst_9 : f32 to vector<18x16x128xf32>
    %21 = arith.select %19, %8, %20 : vector<18x16x128xi1>, vector<18x16x128xf32>
    %22 = vector.extract_strided_slice %21 {offsets = [0, 0, 0], sizes = [16, 16, 128], strides = [1, 1, 1]} : vector<18x16x128xf32> to vector<16x16x128xf32>
    %23 = vector.extract_strided_slice %2 {offsets = [0, 0], sizes = [1, 128], strides = [1, 1]} : vector<9x128xf32> to vector<1x128xf32>
    %24 = vector.shape_cast %23 : vector<1x128xf32> to vector<1x1x128xf32>
    %25 = vector.broadcast %24 : vector<1x1x128xf32> to vector<16x16x128xf32>
    %26 = arith.mulf %22, %25 : vector<16x16x128xf32>
    %27 = arith.addf %7, %26 : vector<16x16x128xf32>
    %28 = vector.extract_strided_slice %21 {offsets = [1, 0, 0], sizes = [16, 16, 128], strides = [1, 1, 1]} : vector<18x16x128xf32> to vector<16x16x128xf32>
    %29 = vector.extract_strided_slice %2 {offsets = [3, 0], sizes = [1, 128], strides = [1, 1]} : vector<9x128xf32> to vector<1x128xf32>
    %30 = vector.shape_cast %29 : vector<1x128xf32> to vector<1x1x128xf32>
    %31 = vector.broadcast %30 : vector<1x1x128xf32> to vector<16x16x128xf32>
    %32 = arith.mulf %28, %31 : vector<16x16x128xf32>
    %33 = arith.addf %27, %32 : vector<16x16x128xf32>
    %34 = vector.extract_strided_slice %21 {offsets = [2, 0, 0], sizes = [16, 16, 128], strides = [1, 1, 1]} : vector<18x16x128xf32> to vector<16x16x128xf32>
    %35 = vector.extract_strided_slice %2 {offsets = [6, 0], sizes = [1, 128], strides = [1, 1]} : vector<9x128xf32> to vector<1x128xf32>
    %36 = vector.shape_cast %35 : vector<1x128xf32> to vector<1x1x128xf32>
    %37 = vector.broadcast %36 : vector<1x1x128xf32> to vector<16x16x128xf32>
    %38 = arith.mulf %34, %37 : vector<16x16x128xf32>
    %39 = arith.addf %33, %38 : vector<16x16x128xf32>
    %40 = vector.extract_strided_slice %5 {offsets = [0, 0, 0], sizes = [16, 16, 128], strides = [1, 1, 1]} : vector<18x16x128xf32> to vector<16x16x128xf32>
    %41 = vector.extract_strided_slice %2 {offsets = [1, 0], sizes = [1, 128], strides = [1, 1]} : vector<9x128xf32> to vector<1x128xf32>
    %42 = vector.shape_cast %41 : vector<1x128xf32> to vector<1x1x128xf32>
    %43 = vector.broadcast %42 : vector<1x1x128xf32> to vector<16x16x128xf32>
    %44 = arith.mulf %40, %43 : vector<16x16x128xf32>
    %45 = arith.addf %39, %44 : vector<16x16x128xf32>
    %46 = vector.extract_strided_slice %5 {offsets = [1, 0, 0], sizes = [16, 16, 128], strides = [1, 1, 1]} : vector<18x16x128xf32> to vector<16x16x128xf32>
    %47 = vector.extract_strided_slice %2 {offsets = [4, 0], sizes = [1, 128], strides = [1, 1]} : vector<9x128xf32> to vector<1x128xf32>
    %48 = vector.shape_cast %47 : vector<1x128xf32> to vector<1x1x128xf32>
    %49 = vector.broadcast %48 : vector<1x1x128xf32> to vector<16x16x128xf32>
    %50 = arith.mulf %46, %49 : vector<16x16x128xf32>
    %51 = arith.addf %45, %50 : vector<16x16x128xf32>
    %52 = vector.extract_strided_slice %5 {offsets = [2, 0, 0], sizes = [16, 16, 128], strides = [1, 1, 1]} : vector<18x16x128xf32> to vector<16x16x128xf32>
    %53 = vector.extract_strided_slice %2 {offsets = [7, 0], sizes = [1, 128], strides = [1, 1]} : vector<9x128xf32> to vector<1x128xf32>
    %54 = vector.shape_cast %53 : vector<1x128xf32> to vector<1x1x128xf32>
    %55 = vector.broadcast %54 : vector<1x1x128xf32> to vector<16x16x128xf32>
    %56 = arith.mulf %52, %55 : vector<16x16x128xf32>
    %57 = arith.addf %51, %56 : vector<16x16x128xf32>
    %c15_i32 = arith.constant 15 : i32
    %58 = tpu.dynamic_rotate %5 by %c15_i32 dim 1 : vector<18x16x128xf32>, i32 -> vector<18x16x128xf32>
    %c1_i32_10 = arith.constant 1 : i32
    %59 = vector.broadcast %c1_i32_10 : i32 to vector<1x16x1xi32>
    %60 = arith.addi %6, %59 : vector<1x16x1xi32>
    %c0_i32_11 = arith.constant 0 : i32
    %61 = vector.broadcast %c0_i32_11 : i32 to vector<1x16x1xi32>
    %62 = arith.cmpi sge, %60, %61 : vector<1x16x1xi32>
    %c1_i32_12 = arith.constant 1 : i32
    %63 = vector.broadcast %c1_i32_12 : i32 to vector<1x16x1xi32>
    %64 = arith.addi %6, %63 : vector<1x16x1xi32>
    %c16_i32_13 = arith.constant 16 : i32
    %65 = vector.broadcast %c16_i32_13 : i32 to vector<1x16x1xi32>
    %66 = arith.cmpi slt, %64, %65 : vector<1x16x1xi32>
    %67 = arith.andi %62, %66 : vector<1x16x1xi1>
    %cst_14 = arith.constant 0.000000e+00 : f32
    %68 = vector.shape_cast %67 : vector<1x16x1xi1> to vector<1x16x1xi1>
    %69 = vector.broadcast %68 : vector<1x16x1xi1> to vector<18x16x128xi1>
    %70 = vector.broadcast %cst_14 : f32 to vector<18x16x128xf32>
    %71 = arith.select %69, %58, %70 : vector<18x16x128xi1>, vector<18x16x128xf32>
    %72 = vector.extract_strided_slice %71 {offsets = [0, 0, 0], sizes = [16, 16, 128], strides = [1, 1, 1]} : vector<18x16x128xf32> to vector<16x16x128xf32>
    %73 = vector.extract_strided_slice %2 {offsets = [2, 0], sizes = [1, 128], strides = [1, 1]} : vector<9x128xf32> to vector<1x128xf32>
    %74 = vector.shape_cast %73 : vector<1x128xf32> to vector<1x1x128xf32>
    %75 = vector.broadcast %74 : vector<1x1x128xf32> to vector<16x16x128xf32>
    %76 = arith.mulf %72, %75 : vector<16x16x128xf32>
    %77 = arith.addf %57, %76 : vector<16x16x128xf32>
    %78 = vector.extract_strided_slice %71 {offsets = [1, 0, 0], sizes = [16, 16, 128], strides = [1, 1, 1]} : vector<18x16x128xf32> to vector<16x16x128xf32>
    %79 = vector.extract_strided_slice %2 {offsets = [5, 0], sizes = [1, 128], strides = [1, 1]} : vector<9x128xf32> to vector<1x128xf32>
    %80 = vector.shape_cast %79 : vector<1x128xf32> to vector<1x1x128xf32>
    %81 = vector.broadcast %80 : vector<1x1x128xf32> to vector<16x16x128xf32>
    %82 = arith.mulf %78, %81 : vector<16x16x128xf32>
    %83 = arith.addf %77, %82 : vector<16x16x128xf32>
    %84 = vector.extract_strided_slice %71 {offsets = [2, 0, 0], sizes = [16, 16, 128], strides = [1, 1, 1]} : vector<18x16x128xf32> to vector<16x16x128xf32>
    %85 = vector.extract_strided_slice %2 {offsets = [8, 0], sizes = [1, 128], strides = [1, 1]} : vector<9x128xf32> to vector<1x128xf32>
    %86 = vector.shape_cast %85 : vector<1x128xf32> to vector<1x1x128xf32>
    %87 = vector.broadcast %86 : vector<1x1x128xf32> to vector<16x16x128xf32>
    %88 = arith.mulf %84, %87 : vector<16x16x128xf32>
    %89 = arith.addf %83, %88 : vector<16x16x128xf32>
    %90 = vector.shape_cast %3 : vector<1x128xf32> to vector<1x1x128xf32>
    %91 = vector.broadcast %90 : vector<1x1x128xf32> to vector<16x16x128xf32>
    %92 = arith.addf %89, %91 : vector<16x16x128xf32>
    %cst_15 = arith.constant 5.000000e-01 : f32
    %93 = vector.broadcast %cst_15 : f32 to vector<16x16x128xf32>
    %94 = arith.mulf %93, %92 : vector<16x16x128xf32>
    %95 = arith.mulf %92, %92 : vector<16x16x128xf32>
    %96 = arith.mulf %95, %92 : vector<16x16x128xf32>
    %cst_16 = arith.constant 4.471500e-02 : f32
    %97 = vector.broadcast %cst_16 : f32 to vector<16x16x128xf32>
    %98 = arith.mulf %97, %96 : vector<16x16x128xf32>
    %99 = arith.addf %92, %98 : vector<16x16x128xf32>
    %cst_17 = arith.constant 0.797884583 : f32
    %100 = vector.broadcast %cst_17 : f32 to vector<16x16x128xf32>
    %101 = arith.mulf %100, %99 : vector<16x16x128xf32>
    %102 = math.tanh %101 : vector<16x16x128xf32>
    %cst_18 = arith.constant 1.000000e+00 : f32
    %103 = vector.broadcast %cst_18 : f32 to vector<16x16x128xf32>
    %104 = arith.addf %103, %102 : vector<16x16x128xf32>
    %105 = arith.mulf %94, %104 : vector<16x16x128xf32>
    %106 = vector.shape_cast %105 : vector<16x16x128xf32> to vector<256x128xf32>
    %cst_19 = arith.constant dense<0.000000e+00> : vector<128xf32>
    %107 = vector.multi_reduction <add>, %106, %cst_19 [0] : vector<256x128xf32> to vector<128xf32>
    %108 = vector.shape_cast %107 : vector<128xf32> to vector<1x128xf32>
    %109 = vector.shape_cast %108 : vector<1x128xf32> to vector<1x1x128xf32>
    %c0_20 = arith.constant 0 : index
    %c0_21 = arith.constant 0 : index
    %c0_22 = arith.constant 0 : index
    %110 = vector.load %arg4[%c0_20, %c0_21, %c0_22] : memref<1x2x128xf32, #tpu.memory_space<vmem>>, vector<1x1x128xf32>
    tpu.vector_store %arg4[%c0_20, %c0_21, %c0_22], %109 {strides = array<i32>} : memref<1x2x128xf32, #tpu.memory_space<vmem>>, vector<1x1x128xf32>,
    %111 = arith.mulf %106, %106 : vector<256x128xf32>
    %cst_23 = arith.constant dense<0.000000e+00> : vector<128xf32>
    %112 = vector.multi_reduction <add>, %111, %cst_23 [0] : vector<256x128xf32> to vector<128xf32>
    %113 = vector.shape_cast %112 : vector<128xf32> to vector<1x128xf32>
    %114 = vector.shape_cast %113 : vector<1x128xf32> to vector<1x1x128xf32>
    %c0_24 = arith.constant 0 : index
    %c1 = arith.constant 1 : index
    %c0_25 = arith.constant 0 : index
    %115 = vector.load %arg4[%c0_24, %c1, %c0_25] : memref<1x2x128xf32, #tpu.memory_space<vmem>>, vector<1x1x128xf32>
    tpu.vector_store %arg4[%c0_24, %c1, %c0_25], %114 {strides = array<i32>} : memref<1x2x128xf32, #tpu.memory_space<vmem>>, vector<1x1x128xf32>,
    return
  }
  func.func @transform_0(%arg0: i32) -> (i32, i32, i32, i32) {
    %c0_i32 = arith.constant 0 : i32
    %c0_i32_0 = arith.constant 0 : i32
    %c0_i32_1 = arith.constant 0 : i32
    %c0_i32_2 = arith.constant 0 : i32
    return %arg0, %c0_i32, %c0_i32_0, %c0_i32_1 : i32, i32, i32, i32
  }
  func.func @transform_1(%arg0: i32) -> (i32, i32) {
    %c0_i32 = arith.constant 0 : i32
    %c0_i32_0 = arith.constant 0 : i32
    %c0_i32_1 = arith.constant 0 : i32
    return %c0_i32, %c0_i32_0 : i32, i32
  }
  func.func @transform_2(%arg0: i32) -> (i32, i32) {
    %c0_i32 = arith.constant 0 : i32
    %c0_i32_0 = arith.constant 0 : i32
    %c0_i32_1 = arith.constant 0 : i32
    return %c0_i32, %c0_i32_0 : i32, i32
  }
  func.func @transform_3(%arg0: i32) -> (i32, i32, i32) {
    %c0_i32 = arith.constant 0 : i32
    %c0_i32_0 = arith.constant 0 : i32
    %c0_i32_1 = arith.constant 0 : i32
    return %arg0, %c0_i32, %c0_i32_0 : i32, i32, i32
  }
}

module attributes {stable_mosaic.version = 11 : i64} {
  func.func @_main_recompute_kernel(%arg0: i32, %arg1: memref<1x16x16x128xf32, #tpu.memory_space<vmem>>, %arg2: memref<9x128xf32, #tpu.memory_space<vmem>>, %arg3: memref<1x128xf32, #tpu.memory_space<vmem>>, %arg4: memref<2x128xf32, #tpu.memory_space<vmem>>, %arg5: memref<128x128xbf16, #tpu.memory_space<vmem>>, %arg6: memref<1x128xf32, #tpu.memory_space<vmem>>, %arg7: memref<1x16x16x128xbf16, #tpu.memory_space<vmem>>, %arg8: memref<1x2x128xf32, #tpu.memory_space<vmem>>) attributes {dimension_semantics = [#tpu.dimension_semantics<parallel>], iteration_bounds = array<i64: 2>, scalar_prefetch = 0 : i64, scratch_operands = 0 : i64, tpu.core_type = #tpu.core_type<tc>, window_params = [{transform_indices = @transform_0, window_bounds = array<i64: 1, 16, 16, 128>}, {pipeline_mode = #tpu.pipeline_mode<synchronous>, transform_indices = @transform_1, window_bounds = array<i64: 9, 128>}, {pipeline_mode = #tpu.pipeline_mode<synchronous>, transform_indices = @transform_2, window_bounds = array<i64: 1, 128>}, {pipeline_mode = #tpu.pipeline_mode<synchronous>, transform_indices = @transform_3, window_bounds = array<i64: 2, 128>}, {pipeline_mode = #tpu.pipeline_mode<synchronous>, transform_indices = @transform_4, window_bounds = array<i64: 128, 128>}, {pipeline_mode = #tpu.pipeline_mode<synchronous>, transform_indices = @transform_5, window_bounds = array<i64: 1, 128>}, {transform_indices = @transform_6, window_bounds = array<i64: 1, 16, 16, 128>}, {transform_indices = @transform_7, window_bounds = array<i64: 1, 2, 128>}]} {
    %c0 = arith.constant 0 : index
    %c0_0 = arith.constant 0 : index
    %c0_1 = arith.constant 0 : index
    %c0_2 = arith.constant 0 : index
    %0 = vector.load %arg1[%c0, %c0_0, %c0_1, %c0_2] : memref<1x16x16x128xf32, #tpu.memory_space<vmem>>, vector<1x16x16x128xf32>
    %1 = vector.shape_cast %0 : vector<1x16x16x128xf32> to vector<16x16x128xf32>
    %c0_3 = arith.constant 0 : index
    %c0_4 = arith.constant 0 : index
    %2 = vector.load %arg2[%c0_3, %c0_4] : memref<9x128xf32, #tpu.memory_space<vmem>>, vector<9x128xf32>
    %c0_5 = arith.constant 0 : index
    %c0_6 = arith.constant 0 : index
    %3 = vector.load %arg3[%c0_5, %c0_6] : memref<1x128xf32, #tpu.memory_space<vmem>>, vector<1x128xf32>
    %cst = arith.constant 0.000000e+00 : f32
    %4 = vector.broadcast %cst : f32 to vector<1x16x128xf32>
    %5 = tpu.concatenate %4, %1, %4 in 0 : vector<1x16x128xf32>, vector<16x16x128xf32>, vector<1x16x128xf32> -> vector<18x16x128xf32>
    %6 = tpu.iota {dimensions = array<i32: 1>} : vector<1x16x1xi32>
    %cst_7 = arith.constant 0.000000e+00 : f32
    %7 = vector.broadcast %cst_7 : f32 to vector<16x16x128xf32>
    %c1_i32 = arith.constant 1 : i32
    %8 = tpu.dynamic_rotate %5 by %c1_i32 dim 1 : vector<18x16x128xf32>, i32 -> vector<18x16x128xf32>
    %c-1_i32 = arith.constant -1 : i32
    %9 = vector.broadcast %c-1_i32 : i32 to vector<1x16x1xi32>
    %10 = arith.addi %6, %9 : vector<1x16x1xi32>
    %c0_i32 = arith.constant 0 : i32
    %11 = vector.broadcast %c0_i32 : i32 to vector<1x16x1xi32>
    %12 = arith.cmpi sge, %10, %11 : vector<1x16x1xi32>
    %c-1_i32_8 = arith.constant -1 : i32
    %13 = vector.broadcast %c-1_i32_8 : i32 to vector<1x16x1xi32>
    %14 = arith.addi %6, %13 : vector<1x16x1xi32>
    %c16_i32 = arith.constant 16 : i32
    %15 = vector.broadcast %c16_i32 : i32 to vector<1x16x1xi32>
    %16 = arith.cmpi slt, %14, %15 : vector<1x16x1xi32>
    %17 = arith.andi %12, %16 : vector<1x16x1xi1>
    %cst_9 = arith.constant 0.000000e+00 : f32
    %18 = vector.shape_cast %17 : vector<1x16x1xi1> to vector<1x16x1xi1>
    %19 = vector.broadcast %18 : vector<1x16x1xi1> to vector<18x16x128xi1>
    %20 = vector.broadcast %cst_9 : f32 to vector<18x16x128xf32>
    %21 = arith.select %19, %8, %20 : vector<18x16x128xi1>, vector<18x16x128xf32>
    %22 = vector.extract_strided_slice %21 {offsets = [0, 0, 0], sizes = [16, 16, 128], strides = [1, 1, 1]} : vector<18x16x128xf32> to vector<16x16x128xf32>
    %23 = vector.extract_strided_slice %2 {offsets = [0, 0], sizes = [1, 128], strides = [1, 1]} : vector<9x128xf32> to vector<1x128xf32>
    %24 = vector.shape_cast %23 : vector<1x128xf32> to vector<1x1x128xf32>
    %25 = vector.broadcast %24 : vector<1x1x128xf32> to vector<16x16x128xf32>
    %26 = arith.mulf %22, %25 : vector<16x16x128xf32>
    %27 = arith.addf %7, %26 : vector<16x16x128xf32>
    %28 = vector.extract_strided_slice %21 {offsets = [1, 0, 0], sizes = [16, 16, 128], strides = [1, 1, 1]} : vector<18x16x128xf32> to vector<16x16x128xf32>
    %29 = vector.extract_strided_slice %2 {offsets = [3, 0], sizes = [1, 128], strides = [1, 1]} : vector<9x128xf32> to vector<1x128xf32>
    %30 = vector.shape_cast %29 : vector<1x128xf32> to vector<1x1x128xf32>
    %31 = vector.broadcast %30 : vector<1x1x128xf32> to vector<16x16x128xf32>
    %32 = arith.mulf %28, %31 : vector<16x16x128xf32>
    %33 = arith.addf %27, %32 : vector<16x16x128xf32>
    %34 = vector.extract_strided_slice %21 {offsets = [2, 0, 0], sizes = [16, 16, 128], strides = [1, 1, 1]} : vector<18x16x128xf32> to vector<16x16x128xf32>
    %35 = vector.extract_strided_slice %2 {offsets = [6, 0], sizes = [1, 128], strides = [1, 1]} : vector<9x128xf32> to vector<1x128xf32>
    %36 = vector.shape_cast %35 : vector<1x128xf32> to vector<1x1x128xf32>
    %37 = vector.broadcast %36 : vector<1x1x128xf32> to vector<16x16x128xf32>
    %38 = arith.mulf %34, %37 : vector<16x16x128xf32>
    %39 = arith.addf %33, %38 : vector<16x16x128xf32>
    %40 = vector.extract_strided_slice %5 {offsets = [0, 0, 0], sizes = [16, 16, 128], strides = [1, 1, 1]} : vector<18x16x128xf32> to vector<16x16x128xf32>
    %41 = vector.extract_strided_slice %2 {offsets = [1, 0], sizes = [1, 128], strides = [1, 1]} : vector<9x128xf32> to vector<1x128xf32>
    %42 = vector.shape_cast %41 : vector<1x128xf32> to vector<1x1x128xf32>
    %43 = vector.broadcast %42 : vector<1x1x128xf32> to vector<16x16x128xf32>
    %44 = arith.mulf %40, %43 : vector<16x16x128xf32>
    %45 = arith.addf %39, %44 : vector<16x16x128xf32>
    %46 = vector.extract_strided_slice %5 {offsets = [1, 0, 0], sizes = [16, 16, 128], strides = [1, 1, 1]} : vector<18x16x128xf32> to vector<16x16x128xf32>
    %47 = vector.extract_strided_slice %2 {offsets = [4, 0], sizes = [1, 128], strides = [1, 1]} : vector<9x128xf32> to vector<1x128xf32>
    %48 = vector.shape_cast %47 : vector<1x128xf32> to vector<1x1x128xf32>
    %49 = vector.broadcast %48 : vector<1x1x128xf32> to vector<16x16x128xf32>
    %50 = arith.mulf %46, %49 : vector<16x16x128xf32>
    %51 = arith.addf %45, %50 : vector<16x16x128xf32>
    %52 = vector.extract_strided_slice %5 {offsets = [2, 0, 0], sizes = [16, 16, 128], strides = [1, 1, 1]} : vector<18x16x128xf32> to vector<16x16x128xf32>
    %53 = vector.extract_strided_slice %2 {offsets = [7, 0], sizes = [1, 128], strides = [1, 1]} : vector<9x128xf32> to vector<1x128xf32>
    %54 = vector.shape_cast %53 : vector<1x128xf32> to vector<1x1x128xf32>
    %55 = vector.broadcast %54 : vector<1x1x128xf32> to vector<16x16x128xf32>
    %56 = arith.mulf %52, %55 : vector<16x16x128xf32>
    %57 = arith.addf %51, %56 : vector<16x16x128xf32>
    %c15_i32 = arith.constant 15 : i32
    %58 = tpu.dynamic_rotate %5 by %c15_i32 dim 1 : vector<18x16x128xf32>, i32 -> vector<18x16x128xf32>
    %c1_i32_10 = arith.constant 1 : i32
    %59 = vector.broadcast %c1_i32_10 : i32 to vector<1x16x1xi32>
    %60 = arith.addi %6, %59 : vector<1x16x1xi32>
    %c0_i32_11 = arith.constant 0 : i32
    %61 = vector.broadcast %c0_i32_11 : i32 to vector<1x16x1xi32>
    %62 = arith.cmpi sge, %60, %61 : vector<1x16x1xi32>
    %c1_i32_12 = arith.constant 1 : i32
    %63 = vector.broadcast %c1_i32_12 : i32 to vector<1x16x1xi32>
    %64 = arith.addi %6, %63 : vector<1x16x1xi32>
    %c16_i32_13 = arith.constant 16 : i32
    %65 = vector.broadcast %c16_i32_13 : i32 to vector<1x16x1xi32>
    %66 = arith.cmpi slt, %64, %65 : vector<1x16x1xi32>
    %67 = arith.andi %62, %66 : vector<1x16x1xi1>
    %cst_14 = arith.constant 0.000000e+00 : f32
    %68 = vector.shape_cast %67 : vector<1x16x1xi1> to vector<1x16x1xi1>
    %69 = vector.broadcast %68 : vector<1x16x1xi1> to vector<18x16x128xi1>
    %70 = vector.broadcast %cst_14 : f32 to vector<18x16x128xf32>
    %71 = arith.select %69, %58, %70 : vector<18x16x128xi1>, vector<18x16x128xf32>
    %72 = vector.extract_strided_slice %71 {offsets = [0, 0, 0], sizes = [16, 16, 128], strides = [1, 1, 1]} : vector<18x16x128xf32> to vector<16x16x128xf32>
    %73 = vector.extract_strided_slice %2 {offsets = [2, 0], sizes = [1, 128], strides = [1, 1]} : vector<9x128xf32> to vector<1x128xf32>
    %74 = vector.shape_cast %73 : vector<1x128xf32> to vector<1x1x128xf32>
    %75 = vector.broadcast %74 : vector<1x1x128xf32> to vector<16x16x128xf32>
    %76 = arith.mulf %72, %75 : vector<16x16x128xf32>
    %77 = arith.addf %57, %76 : vector<16x16x128xf32>
    %78 = vector.extract_strided_slice %71 {offsets = [1, 0, 0], sizes = [16, 16, 128], strides = [1, 1, 1]} : vector<18x16x128xf32> to vector<16x16x128xf32>
    %79 = vector.extract_strided_slice %2 {offsets = [5, 0], sizes = [1, 128], strides = [1, 1]} : vector<9x128xf32> to vector<1x128xf32>
    %80 = vector.shape_cast %79 : vector<1x128xf32> to vector<1x1x128xf32>
    %81 = vector.broadcast %80 : vector<1x1x128xf32> to vector<16x16x128xf32>
    %82 = arith.mulf %78, %81 : vector<16x16x128xf32>
    %83 = arith.addf %77, %82 : vector<16x16x128xf32>
    %84 = vector.extract_strided_slice %71 {offsets = [2, 0, 0], sizes = [16, 16, 128], strides = [1, 1, 1]} : vector<18x16x128xf32> to vector<16x16x128xf32>
    %85 = vector.extract_strided_slice %2 {offsets = [8, 0], sizes = [1, 128], strides = [1, 1]} : vector<9x128xf32> to vector<1x128xf32>
    %86 = vector.shape_cast %85 : vector<1x128xf32> to vector<1x1x128xf32>
    %87 = vector.broadcast %86 : vector<1x1x128xf32> to vector<16x16x128xf32>
    %88 = arith.mulf %84, %87 : vector<16x16x128xf32>
    %89 = arith.addf %83, %88 : vector<16x16x128xf32>
    %90 = vector.shape_cast %3 : vector<1x128xf32> to vector<1x1x128xf32>
    %91 = vector.broadcast %90 : vector<1x1x128xf32> to vector<16x16x128xf32>
    %92 = arith.addf %89, %91 : vector<16x16x128xf32>
    %cst_15 = arith.constant 5.000000e-01 : f32
    %93 = vector.broadcast %cst_15 : f32 to vector<16x16x128xf32>
    %94 = arith.mulf %93, %92 : vector<16x16x128xf32>
    %95 = arith.mulf %92, %92 : vector<16x16x128xf32>
    %96 = arith.mulf %95, %92 : vector<16x16x128xf32>
    %cst_16 = arith.constant 4.471500e-02 : f32
    %97 = vector.broadcast %cst_16 : f32 to vector<16x16x128xf32>
    %98 = arith.mulf %97, %96 : vector<16x16x128xf32>
    %99 = arith.addf %92, %98 : vector<16x16x128xf32>
    %cst_17 = arith.constant 0.797884583 : f32
    %100 = vector.broadcast %cst_17 : f32 to vector<16x16x128xf32>
    %101 = arith.mulf %100, %99 : vector<16x16x128xf32>
    %102 = math.tanh %101 : vector<16x16x128xf32>
    %cst_18 = arith.constant 1.000000e+00 : f32
    %103 = vector.broadcast %cst_18 : f32 to vector<16x16x128xf32>
    %104 = arith.addf %103, %102 : vector<16x16x128xf32>
    %105 = arith.mulf %94, %104 : vector<16x16x128xf32>
    %c0_19 = arith.constant 0 : index
    %c0_20 = arith.constant 0 : index
    %106 = vector.load %arg4[%c0_19, %c0_20] : memref<2x128xf32, #tpu.memory_space<vmem>>, vector<2x128xf32>
    %c0_21 = arith.constant 0 : index
    %c0_22 = arith.constant 0 : index
    %107 = vector.load %arg5[%c0_21, %c0_22] : memref<128x128xbf16, #tpu.memory_space<vmem>>, vector<128x128xbf16>
    %c0_23 = arith.constant 0 : index
    %c0_24 = arith.constant 0 : index
    %108 = vector.load %arg6[%c0_23, %c0_24] : memref<1x128xf32, #tpu.memory_space<vmem>>, vector<1x128xf32>
    %109 = vector.extract_strided_slice %106 {offsets = [0, 0], sizes = [1, 128], strides = [1, 1]} : vector<2x128xf32> to vector<1x128xf32>
    %110 = vector.shape_cast %109 : vector<1x128xf32> to vector<1x1x128xf32>
    %111 = vector.extract_strided_slice %106 {offsets = [1, 0], sizes = [1, 128], strides = [1, 1]} : vector<2x128xf32> to vector<1x128xf32>
    %112 = vector.shape_cast %111 : vector<1x128xf32> to vector<1x1x128xf32>
    %113 = vector.broadcast %110 : vector<1x1x128xf32> to vector<16x16x128xf32>
    %114 = arith.mulf %105, %113 : vector<16x16x128xf32>
    %115 = vector.broadcast %112 : vector<1x1x128xf32> to vector<16x16x128xf32>
    %116 = arith.addf %114, %115 : vector<16x16x128xf32>
    %117 = arith.addf %1, %116 : vector<16x16x128xf32>
    %118 = vector.shape_cast %117 : vector<16x16x128xf32> to vector<256x128xf32>
    %119 = arith.truncf %118 : vector<256x128xf32> to vector<256x128xbf16>
    %cst_25 = arith.constant dense<0.000000e+00> : vector<256x128xf32>
    %120 = tpu.matmul %119, %107, %cst_25 {dimension_numbers = #tpu.dot_dimension_numbers<[1], [0], [0], [1], [0, 0, 1, 1], [], []>} : vector<256x128xbf16>, vector<128x128xbf16>, vector<256x128xf32> -> vector<256x128xf32>
    %121 = vector.broadcast %108 : vector<1x128xf32> to vector<256x128xf32>
    %122 = arith.addf %120, %121 : vector<256x128xf32>
    %cst_26 = arith.constant 5.000000e-01 : f32
    %123 = vector.broadcast %cst_26 : f32 to vector<256x128xf32>
    %124 = arith.mulf %123, %122 : vector<256x128xf32>
    %125 = arith.mulf %122, %122 : vector<256x128xf32>
    %126 = arith.mulf %125, %122 : vector<256x128xf32>
    %cst_27 = arith.constant 4.471500e-02 : f32
    %127 = vector.broadcast %cst_27 : f32 to vector<256x128xf32>
    %128 = arith.mulf %127, %126 : vector<256x128xf32>
    %129 = arith.addf %122, %128 : vector<256x128xf32>
    %cst_28 = arith.constant 0.797884583 : f32
    %130 = vector.broadcast %cst_28 : f32 to vector<256x128xf32>
    %131 = arith.mulf %130, %129 : vector<256x128xf32>
    %132 = math.tanh %131 : vector<256x128xf32>
    %cst_29 = arith.constant 1.000000e+00 : f32
    %133 = vector.broadcast %cst_29 : f32 to vector<256x128xf32>
    %134 = arith.addf %133, %132 : vector<256x128xf32>
    %135 = arith.mulf %124, %134 : vector<256x128xf32>
    %136 = vector.shape_cast %135 : vector<256x128xf32> to vector<16x16x128xf32>
    %137 = arith.truncf %136 : vector<16x16x128xf32> to vector<16x16x128xbf16>
    %c0_30 = arith.constant 0 : index
    %c0_31 = arith.constant 0 : index
    %c0_32 = arith.constant 0 : index
    %c0_33 = arith.constant 0 : index
    %138 = vector.load %arg7[%c0_30, %c0_31, %c0_32, %c0_33] : memref<1x16x16x128xbf16, #tpu.memory_space<vmem>>, vector<1x16x16x128xbf16>
    %139 = vector.shape_cast %138 : vector<1x16x16x128xbf16> to vector<16x16x128xbf16>
    %140 = vector.shape_cast %137 : vector<16x16x128xbf16> to vector<1x16x16x128xbf16>
    tpu.vector_store %arg7[%c0_30, %c0_31, %c0_32, %c0_33], %140 {strides = array<i32>} : memref<1x16x16x128xbf16, #tpu.memory_space<vmem>>, vector<1x16x16x128xbf16>,
    %cst_34 = arith.constant dense<0.000000e+00> : vector<128xf32>
    %141 = vector.multi_reduction <add>, %135, %cst_34 [0] : vector<256x128xf32> to vector<128xf32>
    %142 = vector.shape_cast %141 : vector<128xf32> to vector<1x128xf32>
    %143 = vector.shape_cast %142 : vector<1x128xf32> to vector<1x1x128xf32>
    %c0_35 = arith.constant 0 : index
    %c0_36 = arith.constant 0 : index
    %c0_37 = arith.constant 0 : index
    %144 = vector.load %arg8[%c0_35, %c0_36, %c0_37] : memref<1x2x128xf32, #tpu.memory_space<vmem>>, vector<1x1x128xf32>
    tpu.vector_store %arg8[%c0_35, %c0_36, %c0_37], %143 {strides = array<i32>} : memref<1x2x128xf32, #tpu.memory_space<vmem>>, vector<1x1x128xf32>,
    %145 = arith.mulf %135, %135 : vector<256x128xf32>
    %cst_38 = arith.constant dense<0.000000e+00> : vector<128xf32>
    %146 = vector.multi_reduction <add>, %145, %cst_38 [0] : vector<256x128xf32> to vector<128xf32>
    %147 = vector.shape_cast %146 : vector<128xf32> to vector<1x128xf32>
    %148 = vector.shape_cast %147 : vector<1x128xf32> to vector<1x1x128xf32>
    %c0_39 = arith.constant 0 : index
    %c1 = arith.constant 1 : index
    %c0_40 = arith.constant 0 : index
    %149 = vector.load %arg8[%c0_39, %c1, %c0_40] : memref<1x2x128xf32, #tpu.memory_space<vmem>>, vector<1x1x128xf32>
    tpu.vector_store %arg8[%c0_39, %c1, %c0_40], %148 {strides = array<i32>} : memref<1x2x128xf32, #tpu.memory_space<vmem>>, vector<1x1x128xf32>,
    return
  }
  func.func @transform_0(%arg0: i32) -> (i32, i32, i32, i32) {
    %c0_i32 = arith.constant 0 : i32
    %c0_i32_0 = arith.constant 0 : i32
    %c0_i32_1 = arith.constant 0 : i32
    %c0_i32_2 = arith.constant 0 : i32
    return %arg0, %c0_i32, %c0_i32_0, %c0_i32_1 : i32, i32, i32, i32
  }
  func.func @transform_1(%arg0: i32) -> (i32, i32) {
    %c0_i32 = arith.constant 0 : i32
    %c0_i32_0 = arith.constant 0 : i32
    %c0_i32_1 = arith.constant 0 : i32
    return %c0_i32, %c0_i32_0 : i32, i32
  }
  func.func @transform_2(%arg0: i32) -> (i32, i32) {
    %c0_i32 = arith.constant 0 : i32
    %c0_i32_0 = arith.constant 0 : i32
    %c0_i32_1 = arith.constant 0 : i32
    return %c0_i32, %c0_i32_0 : i32, i32
  }
  func.func @transform_3(%arg0: i32) -> (i32, i32) {
    %c0_i32 = arith.constant 0 : i32
    %c0_i32_0 = arith.constant 0 : i32
    %c0_i32_1 = arith.constant 0 : i32
    return %c0_i32, %c0_i32_0 : i32, i32
  }
  func.func @transform_4(%arg0: i32) -> (i32, i32) {
    %c0_i32 = arith.constant 0 : i32
    %c0_i32_0 = arith.constant 0 : i32
    %c0_i32_1 = arith.constant 0 : i32
    return %c0_i32, %c0_i32_0 : i32, i32
  }
  func.func @transform_5(%arg0: i32) -> (i32, i32) {
    %c0_i32 = arith.constant 0 : i32
    %c0_i32_0 = arith.constant 0 : i32
    %c0_i32_1 = arith.constant 0 : i32
    return %c0_i32, %c0_i32_0 : i32, i32
  }
  func.func @transform_6(%arg0: i32) -> (i32, i32, i32, i32) {
    %c0_i32 = arith.constant 0 : i32
    %c0_i32_0 = arith.constant 0 : i32
    %c0_i32_1 = arith.constant 0 : i32
    %c0_i32_2 = arith.constant 0 : i32
    return %arg0, %c0_i32, %c0_i32_0, %c0_i32_1 : i32, i32, i32, i32
  }
  func.func @transform_7(%arg0: i32) -> (i32, i32, i32) {
    %c0_i32 = arith.constant 0 : i32
    %c0_i32_0 = arith.constant 0 : i32
    %c0_i32_1 = arith.constant 0 : i32
    return %arg0, %c0_i32, %c0_i32_0 : i32, i32, i32
  }
}

</mosaic_0001>

<bundles_post_ra>
// kernel: convmixer_layer.2
= control target key start
LH: loop header
LB: loop body
LE: loop exit
PB: predicated region body
PF: predicated region fallthrough
CT: control target
= control target key end

     0   :  { %s1640_s12 = smov 0   ;;  %s3854_s0 = inlined_call_operand.vmem [shape: f32[2,16,16,128], index: 0, kind: input, shape index: {}]   ;;  %s3855_s1 = inlined_call_operand.vmem [shape: f32[9,128], index: 1, kind: input, shape index: {}]   ;;  %s3856_s2 = inlined_call_operand.vmem [shape: f32[1,128], index: 2, kind: input, shape index: {}]   ;;  %s3857_s3 = inlined_call_operand.vmem [shape: f32[2,2,128], index: 3, kind: output, shape index: {}]  }
   0x1 LB: > { %s1526_s13 = sadd.s32 4294967295, %s1618_s12   ;;  %p1530_p0 = scmp.ge.s32.totalorder %s1618_s12, 1  ;;  %s1618_s12 = sphi %s1640_s12, %s13_s12  }
   0x2   : > { %p137_p1 = scmp.lt.s32.totalorder %s1618_s12, 3 }
   0x4   : > { %p138_p2 = pnand %p1530_p0, %p137_p1 }
   0x6   : > { %141 = sbr.rel (%p138_p2) target bundleno = 365 (0x16d), region = 32 }
   0xd   : > { %p160_p3 = scmp.lt.s32.totalorder %s1526_s13, 1  ;;  %v204_v0 = vlaneseq  ;;  %v1678_v9 = vld [vmem:[%s3855_s1] sm:$0xff] }
   0xe   : > { %4020 = vst [vmem:[#allocation8_spill] sm:$0xff] %v1678_v9 }
   0xf   : > { %s4520_s13 = smov (!%p160_p3, %s1526_s13), 1  ;;  %v1656_v1 = vshrl.u32 %v204_v0, 7 }
  0x10   : > { %s1538_s14 = sshll.u32 %s4520_s13, 8  ;;  %s1533_s26 = sshll.u32 %s4520_s13, 1 }
  0x11   : > { %s1654_s17 = scalar_lea.vmem %s3854_s0, %s1538_s14  ;;  %4014 = vst [vmem:[#allocation2_spill] sm:$0xff] %v1656_v1  ;;  %v320_v6 = vsub.s32 0, %v1656_v1  ;;  %v388_v7 = vsub.s32 3, %v1656_v1  ;;  %v1681_v10 = vadd.s32 8, %v1656_v1  ;;  %vm239_vm0 = vcmp.lt.s32.totalorder %v1656_v1, 1  ;;  %s168_s29 = scalar_lea.vmem %s3857_s3, %s1533_s26 }
  0x12   : > { %v1659_v2 = vld [vmem:[%s1654_s17] sm:$0xff]  ;;  %v1662_v3 = vld [vmem:[%s1654_s17 + $0x8] sm:$0xff]  ;;  %v1665_v4 = vld [vmem:[%s1654_s17 + $0x10] sm:$0xff]  ;;  %v1685_v11 = vadd.s32 4294967295, %v1656_v1  ;;  %v456_v12 = vsub.s32 6, %v1656_v1 }
  0x13   : > { %4015 = vst [vmem:[#allocation3_spill] sm:$0xff] %v1659_v2  ;;  %4016 = vst [vmem:[#allocation4_spill] sm:$0xff] %v1662_v3  ;;  %v1668_v5 = vld [vmem:[%s1654_s17 + $0x18] sm:$0xff]  ;;  %v1673_v8 = vld [vmem:[%s1654_s17 + $0x20] sm:$0xff]  ;;  %v3863_v16 = vrot.slane %v1659_v2, 7  ;;  %v3862_v17 = vrot.slane %v1662_v3, 7  ;;  %v1723_v29 = vrot.slane %v1678_v9, %v320_v6  ;;  %v1726_v30 = vrot.slane %v1678_v9, %v388_v7 }
  0x14   : > { %4017 = vst [vmem:[#allocation5_spill] sm:$0xff] %v1665_v4  ;;  %4018 = vst [vmem:[#allocation6_spill] sm:$0xff] %v1668_v5  ;;  %v1689_v13 = vld [vmem:[%s1654_s17 + $0x28] sm:$0xff]  ;;  %v1692_v14 = vld [vmem:[%s1654_s17 + $0x30] sm:$0xff]  ;;  %v3861_v22 = vrot.slane %v1665_v4, 7  ;;  %v3859_v23 = vrot.slane %v1668_v5, 7  ;;  %v1742_v38 = vrot.slane %v1678_v9, %v456_v12 }
  0x15   : > { %4019 = vst [vmem:[#allocation7_spill] sm:$0xff] %v1673_v8  ;;  %4021 = vst [vmem:[#allocation9_spill] sm:$0xff] %v1681_v10  ;;  %v1695_v15 = vld [vmem:[%s1654_s17 + $0x40] sm:$0xff]  ;;  %v1701_v19 = vld [vmem:[%s1654_s17 + $0x38] sm:$0xff]  ;;  %v3858_v28 = vrot.slane %v1673_v8, 7  ;;  %v3860_v35 = vrot.slane %v1692_v14, 7  ;;  %v1762_v45 = vsel %vm239_vm0, %v3863_v16, %v3862_v17 }
  0x16   : > { %4022 = vst [vmem:[#allocation10_spill] sm:$0xff] %v1689_v13  ;;  %4023 = vst [vmem:[#allocation11_spill] sm:$0xff] %v1692_v14  ;;  %v1704_v20 = vld [vmem:[%s1654_s17 + $0x48] sm:$0xff]  ;;  %v1707_v21 = vld [vmem:[%s1654_s17 + $0x50] sm:$0xff]  ;;  %v3870_v36 = vrot.slane %v1695_v15, 7  ;;  %v225_v37 = vrot.slane %v1689_v13, 7  ;;  %v1782_v52 = vsel %vm239_vm0, %v3861_v22, %v3859_v23 }
  0x17   : > { %4024 = vst [vmem:[#allocation12_spill] sm:$0xff] %v1695_v15  ;;  %4025 = vst [vmem:[#allocation13_spill] sm:$0xff] %v1701_v19  ;;  %v1713_v25 = vld [vmem:[%s1654_s17 + $0x58] sm:$0xff]  ;;  %v1716_v26 = vld [vmem:[%s1654_s17 + $0x60] sm:$0xff]  ;;  %v212_v42 = vrot.slane %v1707_v21, 7  ;;  %v226_v43 = vrot.slane %v1701_v19, 7 }
  0x18   : > { %4026 = vst [vmem:[#allocation14_spill] sm:$0xff] %v1704_v20  ;;  %4027 = vst [vmem:[#allocation15_spill] sm:$0xff] %v1707_v21  ;;  %v1719_v27 = vld [vmem:[%s1654_s17 + $0x70] sm:$0xff]  ;;  %v1730_v32 = vld [vmem:[%s1654_s17 + $0x68] sm:$0xff]  ;;  %v227_v44 = vrot.slane %v1704_v20, 7  ;;  %v213_v49 = vrot.slane %v1716_v26, 7  ;;  %v1800_v59 = vsel %vm239_vm0, %v3858_v28, %v225_v37 }
  0x19   : > { %4028 = vst [vmem:[#allocation16_spill] sm:$0xff] %v1713_v25  ;;  %4029 = vst [vmem:[#allocation17_spill] sm:$0xff] %v1716_v26  ;;  %v1733_v33 = vld [vmem:[%s1654_s17 + $0x78] sm:$0xff]  ;;  %v1736_v34 = vld [vmem:[%s1654_s17 + $0x80] sm:$0xff]  ;;  %v214_v50 = vrot.slane %v1719_v27, 7  ;;  %v228_v51 = vrot.slane %v1713_v25, 7  ;;  %v1818_v7 = vsel %vm239_vm0, %v3860_v35, %v226_v43 }
  0x1a   : > { %4030 = vst [vmem:[#allocation18_spill] sm:$0xff] %v1719_v27  ;;  %4031 = vst [vmem:[#allocation19_spill] sm:$0xff] %v1730_v32  ;;  %v1745_v39 = vld [vmem:[%s1654_s17 + $0x88] sm:$0xff]  ;;  %v1748_v40 = vld [vmem:[%s1654_s17 + $0x90] sm:$0xff]  ;;  %v215_v56 = vrot.slane %v1736_v34, 7  ;;  %v229_v57 = vrot.slane %v1730_v32, 7  ;;  %v1837_v35 = vsel %vm239_vm0, %v3870_v36, %v227_v44 }
  0x1b   : > { %4032 = vst [vmem:[#allocation20_spill] sm:$0xff] %v1733_v33  ;;  %4033 = vst [vmem:[#allocation21_spill] sm:$0xff] %v1736_v34  ;;  %v1751_v41 = vld [vmem:[%s1654_s17 + $0xa0] sm:$0xff]  ;;  %v1765_v46 = vld [vmem:[%s1654_s17 + $0x98] sm:$0xff]  ;;  %v230_v58 = vrot.slane %v1733_v33, 7  ;;  %v216_v63 = vrot.slane %v1748_v40, 7  ;;  %v1844_v10 = vsel %vm239_vm0, %v212_v42, %v228_v51 }
  0x1c   : > { %4034 = vst [vmem:[#allocation22_spill] sm:$0xff] %v1742_v38  ;;  %4035 = vst [vmem:[#allocation23_spill] sm:$0xff] %v1745_v39  ;;  %v1768_v47 = vld [vmem:[%s1654_s17 + $0xa8] sm:$0xff]  ;;  %v1771_v48 = vld [vmem:[%s1654_s17 + $0xb0] sm:$0xff]  ;;  %v217_v0 = vrot.slane %v1751_v41, 7  ;;  %v231_v6 = vrot.slane %v1745_v39, 7  ;;  %v1851_v36 = vsel %vm239_vm0, %v213_v49, %v229_v57 }
  0x1d   : > { %4036 = vst [vmem:[#allocation24_spill] sm:$0xff] %v1748_v40  ;;  %4037 = vst [vmem:[#allocation25_spill] sm:$0xff] %v1751_v41  ;;  %v1785_v53 = vld [vmem:[%s1654_s17 + $0xb8] sm:$0xff]  ;;  %v1788_v54 = vld [vmem:[%s1654_s17 + $0xc0] sm:$0xff]  ;;  %vm274_vm1 = vcmp.ge.s32.totalorder %v1685_v11, 0  ;;  %v218_v18 = vrot.slane %v1771_v48, 7 }
  0x1e   : > { %4038 = vst [vmem:[#allocation26_spill] sm:$0xff] %v1765_v46  ;;  %4039 = vst [vmem:[#allocation27_spill] sm:$0xff] %v1768_v47  ;;  %v1791_v55 = vld [vmem:[%s1654_s17 + $0xd0] sm:$0xff]  ;;  %v1803_v60 = vld [vmem:[%s1654_s17 + $0xc8] sm:$0xff]  ;;  %v232_v28 = vrot.slane %v1765_v46, 7  ;;  %v233_v23 = vrot.slane %v1768_v47, 7  ;;  %v1858_v46 = vsel %vm239_vm0, %v214_v50, %v230_v58 }
  0x1f   : > { %4040 = vst [vmem:[#allocation28_spill] sm:$0xff] %v1771_v48  ;;  %4041 = vst [vmem:[#allocation29_spill] sm:$0xff] %v1782_v52  ;;  %v1806_v61 = vld [vmem:[%s1654_s17 + $0xd8] sm:$0xff]  ;;  %v1809_v62 = vld [vmem:[%s1654_s17 + $0xe0] sm:$0xff]  ;;  %v219_v22 = vrot.slane %v1788_v54, 7  ;;  %v220_v17 = vrot.slane %v1791_v55, 7 }
  0x20   : > { %4042 = vst [vmem:[#allocation30_spill] sm:$0xff] %v1785_v53  ;;  %4043 = vst [vmem:[#allocation31_spill] sm:$0xff] %v1788_v54  ;;  %v1822_v12 = vld [vmem:[%s1654_s17 + $0xe8] sm:$0xff]  ;;  %v1825_v31 = vld [vmem:[%s1654_s17 + $0xf0] sm:$0xff]  ;;  %v234_v16 = vrot.slane %v1785_v53, 7  ;;  %v221_v48 = vrot.slane %v1809_v62, 7 }
  0x21   : > { %4044 = vst [vmem:[#allocation32_spill] sm:$0xff] %v1791_v55  ;;  %4045 = vst [vmem:[#allocation33_spill] sm:$0xff] %v1800_v59  ;;  %v1828_v24 = vld [vmem:[%s1654_s17 + $0xf8] sm:$0xff]  ;;  %v235_v47 = vrot.slane %v1803_v60, 7  ;;  %v236_v41 = vrot.slane %v1806_v61, 7  ;;  %v222_v54 = vrot.slane %v1825_v31, 7 }
  0x22   : > { %4046 = vst [vmem:[#allocation34_spill] sm:$0xff] %v1803_v60  ;;  %4047 = vst [vmem:[#allocation35_spill] sm:$0xff] %v1806_v61  ;;  %v237_v55 = vrot.slane %v1822_v12, 7  ;;  %v238_v53 = vrot.slane %v1828_v24, 7  ;;  %v1866_v61 = vsel %vm239_vm0, %v216_v63, %v232_v28  ;;  %v1870_v60 = vsel %vm239_vm0, %v217_v0, %v233_v23 }
  0x23   : > { %4048 = vst [vmem:[#allocation36_spill] sm:$0xff] %v1809_v62  ;;  %4049 = vst [vmem:[#allocation37_spill] sm:$0xff] %v1818_v7  ;;  %v1862_v62 = vsel %vm239_vm0, %v215_v56, %v231_v6  ;;  %v4064_v34 = vrot.slane %v1659_v2, 7  ;;  %v4065_v33 = vrot.slane %v1662_v3, 7  ;;  %v4066_v32 = vrot.slane %v1665_v4, 7 }
  0x24   : > { %4050 = vst [vmem:[#allocation38_spill] sm:$0xff] %v1822_v12  ;;  %4051 = vst [vmem:[#allocation39_spill] sm:$0xff] %v1825_v31  ;;  %v1874_v31 = vsel %vm239_vm0, %v218_v18, %v234_v16  ;;  %v1882_v12 = vsel %vm239_vm0, %v220_v17, %v236_v41  ;;  %v1886_v40 = vsel %vm239_vm0, %v221_v48, %v237_v55  ;;  %v4067_v26 = vrot.slane %v1668_v5, 7 }
  0x25   : > { %4052 = vst [vmem:[#allocation40_spill] sm:$0xff] %v1828_v24  ;;  %4053 = vst [vmem:[#allocation41_spill] sm:$0xff] %v1837_v35  ;;  %v1878_v24 = vsel %vm239_vm0, %v219_v22, %v235_v47  ;;  %v1890_v39 = vsel %vm239_vm0, %v222_v54, %v238_v53  ;;  %v256_v27 = vsel %vm239_vm0, %v4065_v33, %v4064_v34  ;;  %v4068_v21 = vrot.slane %v1673_v8, 7 }
  0x26   : > { %4054 = vst [vmem:[#allocation42_spill] sm:$0xff] %v1844_v10  ;;  %4055 = vst [vmem:[#allocation43_spill] sm:$0xff] %v1851_v36  ;;  %v257_v25 = vsel %vm239_vm0, %v4067_v26, %v4066_v32  ;;  %v4069_v19 = vrot.slane %v1692_v14, 7  ;;  %v4070_v3 = vrot.slane %v1695_v15, 7  ;;  %v261_v34 = vsel %vm239_vm0, %v228_v51, %v212_v42 }
  0x27   : > { %4056 = vst [vmem:[#allocation44_spill] sm:$0xff] %v1858_v46  ;;  %4057 = vst [vmem:[#allocation45_spill] sm:$0xff] %v1862_v62  ;;  %v258_v20 = vsel %vm239_vm0, %v225_v37, %v4068_v21  ;;  %v262_v26 = vsel %vm239_vm0, %v229_v57, %v213_v49  ;;  %v263_v32 = vsel %vm239_vm0, %v230_v58, %v214_v50 }
  0x28   : > { %4058 = vst [vmem:[#allocation46_spill] sm:$0xff] %v1866_v61  ;;  %4059 = vst [vmem:[#allocation47_spill] sm:$0xff] %v1870_v60  ;;  %v259_v13 = vsel %vm239_vm0, %v226_v43, %v4069_v19  ;;  %v260_v33 = vsel %vm239_vm0, %v227_v44, %v4070_v3  ;;  %v264_v21 = vsel %vm239_vm0, %v231_v6, %v215_v56 }
  0x29   : > { %4060 = vst [vmem:[#allocation48_spill] sm:$0xff] %v1874_v31  ;;  %4061 = vst [vmem:[#allocation49_spill] sm:$0xff] %v1878_v24  ;;  %v265_v19 = vsel %vm239_vm0, %v232_v28, %v216_v63  ;;  %v266_v37 = vsel %vm239_vm0, %v233_v23, %v217_v0  ;;  %v267_v3 = vsel %vm239_vm0, %v234_v16, %v218_v18  ;;  %v286_v28 = vsel %vm274_vm1, %v256_v27, 0.0 }
  0x2a   : > { %4062 = vst [vmem:[#allocation50_spill] sm:$0xff] %v1882_v12  ;;  %4063 = vst [vmem:[#allocation51_spill] sm:$0xff] %v1886_v40  ;;  %v268_v42 = vsel %vm239_vm0, %v235_v47, %v219_v22  ;;  %v269_v43 = vsel %vm239_vm0, %v236_v41, %v220_v17  ;;  %v270_v44 = vsel %vm239_vm0, %v237_v55, %v221_v48  ;;  %v1942_v23 = vsel %vm274_vm1, %v257_v25, 0.0 }
  0x2b   : > { %v271_v49 = vsel %vm239_vm0, %v238_v53, %v222_v54  ;;  %4071 = vst [vmem:[#allocation52_spill] sm:$0xff] %v1942_v23  ;;  %v1946_v16 = vsel %vm274_vm1, %v258_v20, 0.0  ;;  %v1950_v17 = vsel %vm274_vm1, %v259_v13, 0.0  ;;  %v1954_v18 = vsel %vm274_vm1, %v260_v33, 0.0 }
  0x2c   : > { %4072 = vst [vmem:[#allocation53_spill] sm:$0xff] %v1946_v16  ;;  %4073 = vst [vmem:[#allocation54_spill] sm:$0xff] %v1950_v17  ;;  %v1958_v22 = vsel %vm274_vm1, %v261_v34, 0.0  ;;  %v1962_v25 = vsel %vm274_vm1, %v262_v26, 0.0  ;;  %v1966_v20 = vsel %vm274_vm1, %v263_v32, 0.0  ;;  %v1970_v13 = vsel %vm274_vm1, %v264_v21, 0.0 }
  0x2d   : > { %4074 = vst [vmem:[#allocation55_spill] sm:$0xff] %v1954_v18  ;;  %4075 = vst [vmem:[#allocation56_spill] sm:$0xff] %v1958_v22  ;;  %v1974_v27 = vsel %vm274_vm1, %v265_v19, 0.0  ;;  %v1978_v41 = vsel %vm274_vm1, %v266_v37, 0.0  ;;  %v1982_v47 = vsel %vm274_vm1, %v267_v3, 0.0  ;;  %v1986_v48 = vsel %vm274_vm1, %v268_v42, 0.0 }
  0x2e   : > { %4076 = vst [vmem:[#allocation57_spill] sm:$0xff] %v1962_v25  ;;  %4077 = vst [vmem:[#allocation58_spill] sm:$0xff] %v1966_v20  ;;  %v1990_v50 = vsel %vm274_vm1, %v269_v43, 0.0  ;;  %v1994_v51 = vsel %vm274_vm1, %v270_v44, 0.0  ;;  %v1998_v53 = vsel %vm274_vm1, %v271_v49, 0.0  ;;  %v2001_v54 = vmul.f32 0.0, %v1723_v29 }
  0x2f   : > { %4078 = vst [vmem:[#allocation59_spill] sm:$0xff] %v1970_v13  ;;  %4079 = vst [vmem:[#allocation60_spill] sm:$0xff] %v1974_v27  ;;  %v2004_v55 = vmul.f32 %v1723_v29, %v286_v28  ;;  %v2008_v56 = vmul.f32 %v1723_v29, %v1762_v45  ;;  %v2012_v57 = vmul.f32 %v1723_v29, %v1942_v23 }
  0x30   : > { %4080 = vst [vmem:[#allocation61_spill] sm:$0xff] %v1978_v41  ;;  %4081 = vst [vmem:[#allocation62_spill] sm:$0xff] %v1982_v47  ;;  %v2016_v58 = vmul.f32 %v1723_v29, %v1782_v52  ;;  %v2020_v11 = vmul.f32 %v1723_v29, %v1946_v16  ;;  %v2024_v63 = vmul.f32 %v1723_v29, %v1800_v59 }
  0x31   : > { %4082 = vst [vmem:[#allocation63_spill] sm:$0xff] %v1986_v48  ;;  %4083 = vst [vmem:[#allocation64_spill] sm:$0xff] %v1990_v50  ;;  %v2028_v0 = vmul.f32 %v1723_v29, %v1950_v17  ;;  %v2032_v6 = vmul.f32 %v1723_v29, %v1818_v7  ;;  %v2036_v33 = vmul.f32 %v1723_v29, %v1954_v18 }
  0x32   : > { %4084 = vst [vmem:[#allocation65_spill] sm:$0xff] %v1994_v51  ;;  %4085 = vst [vmem:[#allocation66_spill] sm:$0xff] %v1998_v53  ;;  %v2040_v34 = vmul.f32 %v1723_v29, %v1837_v35  ;;  %v2044_v26 = vmul.f32 %v1723_v29, %v1958_v22  ;;  %v2048_v32 = vmul.f32 %v1723_v29, %v1844_v10 }
  0x33   : > { %v2052_v21 = vmul.f32 %v1723_v29, %v1962_v25  ;;  %v2056_v19 = vmul.f32 %v1723_v29, %v1851_v36  ;;  %v2060_v37 = vmul.f32 %v1723_v29, %v1966_v20  ;;  %v2064_v3 = vmul.f32 %v1723_v29, %v1858_v46 }
  0x34   : > { %v2068_v42 = vmul.f32 %v1723_v29, %v1970_v13  ;;  %v2072_v43 = vmul.f32 %v1723_v29, %v1862_v62  ;;  %v2076_v44 = vmul.f32 %v1723_v29, %v1974_v27  ;;  %v2080_v49 = vmul.f32 %v1723_v29, %v1866_v61 }
  0x35   : > { %v2084_v5 = vmul.f32 %v1723_v29, %v1978_v41  ;;  %v2088_v15 = vmul.f32 %v1723_v29, %v1870_v60  ;;  %v2092_v14 = vmul.f32 %v1723_v29, %v1982_v47  ;;  %v2096_v8 = vmul.f32 %v1723_v29, %v1874_v31 }
  0x36   : > { %v2100_v4 = vmul.f32 %v1723_v29, %v1986_v48  ;;  %v2104_v2 = vmul.f32 %v1723_v29, %v1878_v24  ;;  %v2108_v9 = vmul.f32 %v1723_v29, %v1990_v50  ;;  %v2112_v1 = vmul.f32 %v1723_v29, %v1882_v12 }
  0x37   : > { %4086 = vst [vmem:[#allocation67_spill] sm:$0xff] %v2092_v14  ;;  %4087 = vst [vmem:[#allocation68_spill] sm:$0xff] %v2096_v8  ;;  %v2116_v38 = vmul.f32 %v1723_v29, %v1994_v51  ;;  %v2120_v8 = vmul.f32 %v1723_v29, %v1886_v40  ;;  %v393_v14 = vmul.f32 %v1726_v30, %v1782_v52 }
  0x38   : > { %4088 = vst [vmem:[#allocation69_spill] sm:$0xff] %v2100_v4  ;;  %4089 = vst [vmem:[#allocation70_spill] sm:$0xff] %v2104_v2  ;;  %v390_v4 = vmul.f32 %v1726_v30, %v286_v28  ;;  %v391_v2 = vmul.f32 %v1726_v30, %v1762_v45  ;;  %v396_v29 = vmul.f32 %v1726_v30, %v1950_v17 }
  0x39   : > { %4090 = vst [vmem:[#allocation71_spill] sm:$0xff] %v2108_v9  ;;  %4091 = vst [vmem:[#allocation72_spill] sm:$0xff] %v2112_v1  ;;  %v392_v9 = vmul.f32 %v1726_v30, %v1942_v23  ;;  %v394_v1 = vmul.f32 %v1726_v30, %v1946_v16  ;;  %v397_v28 = vmul.f32 %v1726_v30, %v1818_v7 }
  0x3a   : > { %4092 = vst [vmem:[#allocation73_spill] sm:$0xff] %v2116_v38  ;;  %v395_v38 = vmul.f32 %v1726_v30, %v1800_v59  ;;  %v398_v45 = vmul.f32 %v1726_v30, %v1954_v18  ;;  %v399_v23 = vmul.f32 %v1726_v30, %v1837_v35  ;;  %v400_v52 = vmul.f32 %v1726_v30, %v1958_v22 }
  0x3b   : > { %v401_v16 = vmul.f32 %v1726_v30, %v1844_v10  ;;  %v402_v59 = vmul.f32 %v1726_v30, %v1962_v25  ;;  %v403_v17 = vmul.f32 %v1726_v30, %v1851_v36  ;;  %v404_v7 = vmul.f32 %v1726_v30, %v1966_v20 }
  0x3c   : > { %v405_v18 = vmul.f32 %v1726_v30, %v1858_v46  ;;  %v406_v35 = vmul.f32 %v1726_v30, %v1970_v13  ;;  %v407_v22 = vmul.f32 %v1726_v30, %v1862_v62  ;;  %v408_v10 = vmul.f32 %v1726_v30, %v1974_v27 }
  0x3d   : > { %v409_v25 = vmul.f32 %v1726_v30, %v1866_v61  ;;  %v410_v36 = vmul.f32 %v1726_v30, %v1978_v41  ;;  %v411_v20 = vmul.f32 %v1726_v30, %v1870_v60  ;;  %v412_v46 = vmul.f32 %v1726_v30, %v1982_v47 }
  0x3e   : > { %v413_v13 = vmul.f32 %v1726_v30, %v1874_v31  ;;  %v414_v62 = vmul.f32 %v1726_v30, %v1986_v48  ;;  %v415_v27 = vmul.f32 %v1726_v30, %v1878_v24  ;;  %v416_v61 = vmul.f32 %v1726_v30, %v1990_v50 }
  0x3f   : > { %v417_v41 = vmul.f32 %v1726_v30, %v1882_v12  ;;  %v418_v60 = vmul.f32 %v1726_v30, %v1994_v51  ;;  %v419_v47 = vmul.f32 %v1726_v30, %v1886_v40  ;;  %v420_v31 = vmul.f32 %v1726_v30, %v1998_v53 }
  0x40   : > { %v421_v48 = vmul.f32 %v1726_v30, %v1890_v39  ;;  %v2186_v24 = vadd.f32 %v390_v4, %v2001_v54  ;;  %v2189_v50 = vadd.f32 %v391_v2, %v2001_v54  ;;  %v2192_v12 = vadd.f32 %v392_v9, %v2004_v55 }
  0x41   : > { %v2195_v51 = vadd.f32 %v393_v14, %v2008_v56  ;;  %v2198_v40 = vadd.f32 %v394_v1, %v2012_v57  ;;  %v2201_v53 = vadd.f32 %v395_v38, %v2016_v58  ;;  %v2204_v30 = vadd.f32 %v396_v29, %v2020_v11  ;;  %v4118_v29 = vld [vmem:[#allocation57_spill] sm:$0xff] }
  0x42   : > { %v2207_v4 = vadd.f32 %v397_v28, %v2024_v63  ;;  %v2210_v2 = vadd.f32 %v398_v45, %v2028_v0  ;;  %v2213_v9 = vadd.f32 %v399_v23, %v2032_v6  ;;  %v2216_v14 = vadd.f32 %v400_v52, %v2036_v33  ;;  %v4108_v6 = vld [vmem:[#allocation22_spill] sm:$0xff]  ;;  %v4119_v45 = vld [vmem:[#allocation43_spill] sm:$0xff] }
  0x43   : > { %v2219_v1 = vadd.f32 %v401_v16, %v2040_v34  ;;  %v2222_v38 = vadd.f32 %v402_v59, %v2044_v26  ;;  %v2225_v54 = vadd.f32 %v403_v17, %v2048_v32  ;;  %v2228_v55 = vadd.f32 %v404_v7, %v2052_v21 }
  0x44   : > { %v2231_v56 = vadd.f32 %v405_v18, %v2056_v19  ;;  %v2234_v23 = vadd.f32 %v406_v35, %v2060_v37  ;;  %v2237_v52 = vadd.f32 %v407_v22, %v2064_v3  ;;  %v2240_v16 = vadd.f32 %v408_v10, %v2068_v42  ;;  %v4093_v22 = vld [vmem:[#allocation67_spill] sm:$0xff]  ;;  %v4094_v10 = vld [vmem:[#allocation68_spill] sm:$0xff]  ;;  %v4115_v37 = vld [vmem:[#allocation41_spill] sm:$0xff] }
  0x45   : > { %v2243_v59 = vadd.f32 %v409_v25, %v2072_v43  ;;  %v2246_v17 = vadd.f32 %v410_v36, %v2076_v44  ;;  %v2249_v7 = vadd.f32 %v411_v20, %v2080_v49  ;;  %v2252_v18 = vadd.f32 %v412_v46, %v2084_v5  ;;  %v4096_v25 = vld [vmem:[#allocation69_spill] sm:$0xff]  ;;  %v4098_v36 = vld [vmem:[#allocation70_spill] sm:$0xff]  ;;  %v4100_v20 = vld [vmem:[#allocation71_spill] sm:$0xff] }
  0x46   : > { %v2255_v35 = vadd.f32 %v413_v13, %v2088_v15  ;;  %v2258_v57 = vadd.f32 %v414_v62, %v4093_v22  ;;  %v2261_v58 = vadd.f32 %v415_v27, %v4094_v10  ;;  %v2264_v11 = vadd.f32 %v416_v61, %v4096_v25  ;;  %v4102_v5 = vld [vmem:[#allocation72_spill] sm:$0xff]  ;;  %v4104_v15 = vld [vmem:[#allocation73_spill] sm:$0xff]  ;;  %v4117_v44 = vld [vmem:[#allocation42_spill] sm:$0xff] }
  0x47   : > { %v2267_v63 = vadd.f32 %v417_v41, %v4098_v36  ;;  %v2270_v0 = vadd.f32 %v418_v60, %v4100_v20  ;;  %v2273_v46 = vadd.f32 %v419_v47, %v4102_v5  ;;  %v2276_v13 = vadd.f32 %v420_v31, %v4104_v15  ;;  %v4107_v27 = vld [vmem:[#allocation52_spill] sm:$0xff]  ;;  %v4109_v61 = vld [vmem:[#allocation29_spill] sm:$0xff]  ;;  %v4112_v47 = vld [vmem:[#allocation54_spill] sm:$0xff] }
  0x48   : > { %4095 = vst [vmem:[#allocation67_spill] sm:$0xff] %v2261_v58  ;;  %4097 = vst [vmem:[#allocation68_spill] sm:$0xff] %v2264_v11  ;;  %v2279_v62 = vadd.f32 %v421_v48, %v2120_v8  ;;  %v458_v33 = vmul.f32 %v4108_v6, %v4107_v27  ;;  %v459_v34 = vmul.f32 %v4108_v6, %v4109_v61  ;;  %v4110_v41 = vld [vmem:[#allocation53_spill] sm:$0xff]  ;;  %v4114_v8 = vld [vmem:[#allocation55_spill] sm:$0xff] }
  0x49   : > { %4099 = vst [vmem:[#allocation69_spill] sm:$0xff] %v2267_v63  ;;  %4101 = vst [vmem:[#allocation70_spill] sm:$0xff] %v2270_v0  ;;  %v460_v26 = vmul.f32 %v4108_v6, %v4110_v41  ;;  %v4111_v60 = vld [vmem:[#allocation33_spill] sm:$0xff]  ;;  %v462_v21 = vmul.f32 %v4108_v6, %v4112_v47  ;;  %v464_v48 = vmul.f32 %v4108_v6, %v4114_v8  ;;  %v4116_v42 = vld [vmem:[#allocation56_spill] sm:$0xff] }
  0x4a   : > { %4103 = vst [vmem:[#allocation71_spill] sm:$0xff] %v2273_v46  ;;  %4105 = vst [vmem:[#allocation72_spill] sm:$0xff] %v2276_v13  ;;  %v461_v32 = vmul.f32 %v4108_v6, %v4111_v60  ;;  %v4113_v31 = vld [vmem:[#allocation37_spill] sm:$0xff]  ;;  %v465_v3 = vmul.f32 %v4108_v6, %v4115_v37  ;;  %v466_v43 = vmul.f32 %v4108_v6, %v4116_v42  ;;  %v4120_v10 = vld [vmem:[#allocation58_spill] sm:$0xff] }
  0x4b   : > { %4106 = vst [vmem:[#allocation73_spill] sm:$0xff] %v2279_v62  ;;  %v463_v19 = vmul.f32 %v4108_v6, %v4113_v31  ;;  %v467_v49 = vmul.f32 %v4108_v6, %v4117_v44  ;;  %v468_v28 = vmul.f32 %v4108_v6, %v4118_v29  ;;  %v469_v22 = vmul.f32 %v4108_v6, %v4119_v45  ;;  %v4121_v36 = vld [vmem:[#allocation44_spill] sm:$0xff]  ;;  %v4122_v5 = vld [vmem:[#allocation59_spill] sm:$0xff]  ;;  %v4123_v27 = vld [vmem:[#allocation45_spill] sm:$0xff] }
  0x4c   : > { %v470_v25 = vmul.f32 %v4108_v6, %v4120_v10  ;;  %v471_v20 = vmul.f32 %v4108_v6, %v4121_v36  ;;  %v472_v15 = vmul.f32 %v4108_v6, %v4122_v5  ;;  %v473_v61 = vmul.f32 %v4108_v6, %v4123_v27  ;;  %v4124_v41 = vld [vmem:[#allocation60_spill] sm:$0xff]  ;;  %v4125_v47 = vld [vmem:[#allocation46_spill] sm:$0xff]  ;;  %v4126_v8 = vld [vmem:[#allocation61_spill] sm:$0xff] }
  0x4d   : > { %v474_v60 = vmul.f32 %v4108_v6, %v4124_v41  ;;  %v475_v31 = vmul.f32 %v4108_v6, %v4125_v47  ;;  %v476_v37 = vmul.f32 %v4108_v6, %v4126_v8  ;;  %v4127_v42 = vld [vmem:[#allocation47_spill] sm:$0xff]  ;;  %v4128_v29 = vld [vmem:[#allocation62_spill] sm:$0xff]  ;;  %v4129_v10 = vld [vmem:[#allocation48_spill] sm:$0xff]  ;;  %v2343_v58 = vadd.f32 %v458_v33, %v2186_v24 }
  0x4e   : > { %v477_v44 = vmul.f32 %v4108_v6, %v4127_v42  ;;  %v478_v45 = vmul.f32 %v4108_v6, %v4128_v29  ;;  %v479_v36 = vmul.f32 %v4108_v6, %v4129_v10  ;;  %v4130_v5 = vld [vmem:[#allocation63_spill] sm:$0xff]  ;;  %v4131_v62 = vld [vmem:[#allocation49_spill] sm:$0xff]  ;;  %v4132_v13 = vld [vmem:[#allocation64_spill] sm:$0xff]  ;;  %v2364_v24 = vadd.f32 %v465_v3, %v2207_v4 }
  0x4f   : > { %v480_v27 = vmul.f32 %v4108_v6, %v4130_v5  ;;  %v481_v41 = vmul.f32 %v4108_v6, %v4131_v62  ;;  %v482_v47 = vmul.f32 %v4108_v6, %v4132_v13  ;;  %v4133_v46 = vld [vmem:[#allocation50_spill] sm:$0xff]  ;;  %v4134_v0 = vld [vmem:[#allocation65_spill] sm:$0xff]  ;;  %v4135_v63 = vld [vmem:[#allocation51_spill] sm:$0xff]  ;;  %v487_v5 = vmul.f32 %v4108_v6, %v1890_v39 }
  0x50   : > { %v483_v8 = vmul.f32 %v4108_v6, %v4133_v46  ;;  %v484_v42 = vmul.f32 %v4108_v6, %v4134_v0  ;;  %v485_v29 = vmul.f32 %v4108_v6, %v4135_v63  ;;  %v4136_v11 = vld [vmem:[#allocation66_spill] sm:$0xff]  ;;  %v488_v62 = vmul.f32 0.0, %v4108_v6  ;;  %v4142_v33 = vld [vmem:[#allocation8_spill] sm:$0xff] }
  0x51   : > { %v486_v10 = vmul.f32 %v4108_v6, %v4136_v11  ;;  %v2346_v13 = vadd.f32 %v459_v34, %v2189_v50  ;;  %v2349_v46 = vadd.f32 %v460_v26, %v2192_v12  ;;  %v2352_v0 = vadd.f32 %v461_v32, %v2195_v51  ;;  %v4143_v34 = vld [vmem:[#allocation67_spill] sm:$0xff] }
  0x52   : > { %v2355_v63 = vadd.f32 %v462_v21, %v2198_v40  ;;  %v2358_v11 = vadd.f32 %v463_v19, %v2201_v53  ;;  %v2361_v39 = vadd.f32 %v464_v48, %v2204_v30  ;;  %v2367_v50 = vadd.f32 %v466_v43, %v2210_v2  ;;  %v4155_v43 = vld [vmem:[#allocation73_spill] sm:$0xff] }
  0x53   : > { %v2370_v12 = vadd.f32 %v467_v49, %v2213_v9  ;;  %v2373_v51 = vadd.f32 %v468_v28, %v2216_v14  ;;  %v2376_v40 = vadd.f32 %v469_v22, %v2219_v1  ;;  %v2379_v53 = vadd.f32 %v470_v25, %v2222_v38 }
  0x54   : > { %v2382_v30 = vadd.f32 %v471_v20, %v2225_v54  ;;  %v2385_v4 = vadd.f32 %v472_v15, %v2228_v55  ;;  %v2388_v2 = vadd.f32 %v473_v61, %v2231_v56  ;;  %v2391_v9 = vadd.f32 %v474_v60, %v2234_v23  ;;  %v4161_v15 = vld [vmem:[#allocation3_spill] sm:$0xff]  ;;  %v4162_v60 = vld [vmem:[#allocation5_spill] sm:$0xff] }
  0x55   : > { %v2394_v14 = vadd.f32 %v475_v31, %v2237_v52  ;;  %v2397_v1 = vadd.f32 %v476_v37, %v2240_v16  ;;  %v2400_v38 = vadd.f32 %v477_v44, %v2243_v59  ;;  %v2403_v54 = vadd.f32 %v478_v45, %v2246_v17  ;;  %v4140_v16 = vld [vmem:[#allocation2_spill] sm:$0xff]  ;;  %v4145_v17 = vld [vmem:[#allocation68_spill] sm:$0xff]  ;;  %v4163_v37 = vld [vmem:[#allocation7_spill] sm:$0xff] }
  0x56   : > { %v2406_v55 = vadd.f32 %v479_v36, %v2249_v7  ;;  %v2409_v56 = vadd.f32 %v480_v27, %v2252_v18  ;;  %v2412_v23 = vadd.f32 %v481_v41, %v2255_v35  ;;  %v2415_v52 = vadd.f32 %v482_v47, %v2258_v57  ;;  %v4147_v7 = vld [vmem:[#allocation69_spill] sm:$0xff]  ;;  %v4149_v18 = vld [vmem:[#allocation70_spill] sm:$0xff]  ;;  %v4151_v35 = vld [vmem:[#allocation71_spill] sm:$0xff] }
  0x57   : > { %v4141_v6 = vsub.s32 1, %v4140_v16  ;;  %v2421_v26 = vadd.f32 %v483_v8, %v4143_v34  ;;  %v2424_v32 = vadd.f32 %v484_v42, %v4145_v17  ;;  %v2427_v21 = vadd.f32 %v485_v29, %v4147_v7  ;;  %v4153_v57 = vld [vmem:[#allocation72_spill] sm:$0xff]  ;;  %v4164_v27 = vld [vmem:[#allocation11_spill] sm:$0xff]  ;;  %v4169_v7 = vld [vmem:[#allocation13_spill] sm:$0xff] }
  0x58   : > { %4137 = vst [vmem:[#allocation52_spill] sm:$0xff] %v2409_v56  ;;  %4138 = vst [vmem:[#allocation22_spill] sm:$0xff] %v2412_v23  ;;  %v2430_v19 = vadd.f32 %v486_v10, %v4149_v18  ;;  %v2433_v48 = vadd.f32 %v487_v5, %v4151_v35  ;;  %v2436_v3 = vadd.f32 %v488_v62, %v4153_v57  ;;  %v4157_v28 = vsub.s32 4, %v4140_v16  ;;  %v4165_v47 = vld [vmem:[#allocation12_spill] sm:$0xff]  ;;  %v4167_v5 = vld [vmem:[#allocation6_spill] sm:$0xff] }
  0x59   : > { %4139 = vst [vmem:[#allocation29_spill] sm:$0xff] %v2415_v52  ;;  %v525_v59 = vrot.slane %v4142_v33, %v4141_v6  ;;  %4144 = vst [vmem:[#allocation53_spill] sm:$0xff] %v2421_v26  ;;  %v2439_v49 = vadd.f32 %v488_v62, %v4155_v43  ;;  %v4159_v25 = vsub.s32 7, %v4140_v16  ;;  %v4166_v42 = vld [vmem:[#allocation4_spill] sm:$0xff]  ;;  %v4170_v57 = vld [vmem:[#allocation14_spill] sm:$0xff] }
  0x5a   : > { %4146 = vst [vmem:[#allocation33_spill] sm:$0xff] %v2424_v32  ;;  %4148 = vst [vmem:[#allocation54_spill] sm:$0xff] %v2427_v21  ;;  %v2444_v22 = vrot.slane %v4142_v33, %v4157_v28  ;;  %v4171_v28 = vld [vmem:[#allocation15_spill] sm:$0xff]  ;;  %v4172_v8 = vld [vmem:[#allocation16_spill] sm:$0xff] }
  0x5b   : > { %4150 = vst [vmem:[#allocation37_spill] sm:$0xff] %v2430_v19  ;;  %4152 = vst [vmem:[#allocation55_spill] sm:$0xff] %v2433_v48  ;;  %v2449_v20 = vrot.slane %v4142_v33, %v4159_v25  ;;  %v526_v45 = vmul.f32 0.0, %v525_v59  ;;  %v527_v36 = vmul.f32 %v525_v59, %v4161_v15  ;;  %v528_v29 = vmul.f32 %v525_v59, %v4166_v42  ;;  %v4168_v33 = vld [vmem:[#allocation10_spill] sm:$0xff]  ;;  %v4173_v44 = vld [vmem:[#allocation17_spill] sm:$0xff] }
  0x5c   : > { %4154 = vst [vmem:[#allocation41_spill] sm:$0xff] %v2436_v3  ;;  %4156 = vst [vmem:[#allocation56_spill] sm:$0xff] %v2439_v49  ;;  %v529_v10 = vmul.f32 %v525_v59, %v4162_v60  ;;  %v530_v62 = vmul.f32 %v525_v59, %v4167_v5  ;;  %v531_v6 = vmul.f32 %v525_v59, %v4163_v37  ;;  %v4174_v61 = vld [vmem:[#allocation19_spill] sm:$0xff]  ;;  %v4176_v5 = vld [vmem:[#allocation20_spill] sm:$0xff] }
  0x5d   : > { %4158 = vst [vmem:[#allocation42_spill] sm:$0xff] %v2444_v22  ;;  %4160 = vst [vmem:[#allocation57_spill] sm:$0xff] %v2449_v20  ;;  %v532_v34 = vmul.f32 %v525_v59, %v4168_v33  ;;  %v533_v17 = vmul.f32 %v525_v59, %v4164_v27  ;;  %v534_v18 = vmul.f32 %v525_v59, %v4169_v7  ;;  %v4175_v20 = vld [vmem:[#allocation18_spill] sm:$0xff]  ;;  %v4177_v60 = vld [vmem:[#allocation21_spill] sm:$0xff] }
  0x5e   : > { %v535_v35 = vmul.f32 %v525_v59, %v4165_v47  ;;  %v536_v43 = vmul.f32 %v525_v59, %v4170_v57  ;;  %v537_v25 = vmul.f32 %v525_v59, %v4171_v28  ;;  %v538_v41 = vmul.f32 %v525_v59, %v4172_v8  ;;  %v4178_v42 = vld [vmem:[#allocation23_spill] sm:$0xff]  ;;  %v4179_v22 = vld [vmem:[#allocation24_spill] sm:$0xff]  ;;  %v4180_v15 = vld [vmem:[#allocation26_spill] sm:$0xff] }
  0x5f   : > { %v539_v31 = vmul.f32 %v525_v59, %v4173_v44  ;;  %v540_v16 = vmul.f32 %v525_v59, %v4174_v61  ;;  %v541_v37 = vmul.f32 %v525_v59, %v4175_v20  ;;  %v542_v33 = vmul.f32 %v525_v59, %v4176_v5  ;;  %v4181_v49 = vld [vmem:[#allocation25_spill] sm:$0xff]  ;;  %v4182_v3 = vld [vmem:[#allocation27_spill] sm:$0xff]  ;;  %v4183_v48 = vld [vmem:[#allocation28_spill] sm:$0xff] }
  0x60   : > { %v543_v27 = vmul.f32 %v525_v59, %v4177_v60  ;;  %v544_v7 = vmul.f32 %v525_v59, %v4178_v42  ;;  %v545_v47 = vmul.f32 %v525_v59, %v4179_v22  ;;  %v546_v57 = vmul.f32 %v525_v59, %v4180_v15  ;;  %v4184_v19 = vld [vmem:[#allocation30_spill] sm:$0xff]  ;;  %v4185_v21 = vld [vmem:[#allocation31_spill] sm:$0xff]  ;;  %v4187_v26 = vld [vmem:[#allocation32_spill] sm:$0xff] }
  0x61   : > { %v547_v28 = vmul.f32 %v525_v59, %v4181_v49  ;;  %v548_v8 = vmul.f32 %v525_v59, %v4182_v3  ;;  %v549_v44 = vmul.f32 %v525_v59, %v4183_v48  ;;  %v550_v61 = vmul.f32 %v525_v59, %v4184_v19  ;;  %v4186_v32 = vld [vmem:[#allocation34_spill] sm:$0xff]  ;;  %v4188_v52 = vld [vmem:[#allocation35_spill] sm:$0xff]  ;;  %v4189_v23 = vld [vmem:[#allocation36_spill] sm:$0xff] }
  0x62   : > { %v551_v20 = vmul.f32 %v525_v59, %v4185_v21  ;;  %v552_v5 = vmul.f32 %v525_v59, %v4186_v32  ;;  %v553_v60 = vmul.f32 %v525_v59, %v4187_v26  ;;  %v554_v42 = vmul.f32 %v525_v59, %v4188_v52  ;;  %v4190_v56 = vld [vmem:[#allocation38_spill] sm:$0xff] }
  0x63   : > { %v555_v22 = vmul.f32 %v525_v59, %v4189_v23  ;;  %v556_v15 = vmul.f32 %v525_v59, %v4190_v56  ;;  %v2487_v49 = vadd.f32 %v526_v45, %v2343_v58  ;;  %v2490_v3 = vadd.f32 %v526_v45, %v2346_v13 }
  0x64   : > { %v2493_v19 = vadd.f32 %v527_v36, %v2349_v46  ;;  %v2496_v21 = vadd.f32 %v528_v29, %v2352_v0  ;;  %v2499_v26 = vadd.f32 %v529_v10, %v2355_v63  ;;  %v2502_v52 = vadd.f32 %v530_v62, %v2358_v11 }
  0x65   : > { %v2505_v59 = vadd.f32 %v531_v6, %v2361_v39  ;;  %v2508_v58 = vadd.f32 %v532_v34, %v2364_v24  ;;  %v2511_v13 = vadd.f32 %v533_v17, %v2367_v50  ;;  %v2514_v46 = vadd.f32 %v534_v18, %v2370_v12  ;;  %v4210_v6 = vld [vmem:[#allocation42_spill] sm:$0xff] }
  0x66   : > { %v2517_v0 = vadd.f32 %v535_v35, %v2373_v51  ;;  %v2520_v63 = vadd.f32 %v536_v43, %v2376_v40  ;;  %v2523_v11 = vadd.f32 %v537_v25, %v2379_v53  ;;  %v2526_v39 = vadd.f32 %v538_v41, %v2382_v30  ;;  %v4217_v43 = vld [vmem:[#allocation13_spill] sm:$0xff]  ;;  %v4218_v25 = vld [vmem:[#allocation12_spill] sm:$0xff] }
  0x67   : > { %v2529_v24 = vadd.f32 %v539_v31, %v2385_v4  ;;  %v2532_v50 = vadd.f32 %v540_v16, %v2388_v2  ;;  %v2535_v12 = vadd.f32 %v541_v37, %v2391_v9  ;;  %v2538_v51 = vadd.f32 %v542_v33, %v2394_v14  ;;  %v4191_v2 = vld [vmem:[#allocation52_spill] sm:$0xff]  ;;  %v4192_v9 = vld [vmem:[#allocation22_spill] sm:$0xff]  ;;  %v4193_v14 = vld [vmem:[#allocation29_spill] sm:$0xff] }
  0x68   : > { %v2541_v40 = vadd.f32 %v543_v27, %v2397_v1  ;;  %v2544_v53 = vadd.f32 %v544_v7, %v2400_v38  ;;  %v2547_v30 = vadd.f32 %v545_v47, %v2403_v54  ;;  %v2550_v4 = vadd.f32 %v546_v57, %v2406_v55  ;;  %v4195_v1 = vld [vmem:[#allocation53_spill] sm:$0xff]  ;;  %v4199_v54 = vld [vmem:[#allocation54_spill] sm:$0xff]  ;;  %v4203_v47 = vld [vmem:[#allocation55_spill] sm:$0xff] }
  0x69   : > { %v2553_v16 = vadd.f32 %v547_v28, %v4191_v2  ;;  %v2556_v31 = vadd.f32 %v548_v8, %v4192_v9  ;;  %v2559_v37 = vadd.f32 %v549_v44, %v4193_v14  ;;  %v2562_v45 = vadd.f32 %v550_v61, %v4195_v1  ;;  %v4197_v38 = vld [vmem:[#allocation33_spill] sm:$0xff]  ;;  %v4207_v44 = vld [vmem:[#allocation56_spill] sm:$0xff]  ;;  %v4209_v61 = vld [vmem:[#allocation3_spill] sm:$0xff] }
  0x6a   : > { %v2565_v36 = vadd.f32 %v551_v20, %v4197_v38  ;;  %v2568_v27 = vadd.f32 %v552_v5, %v4199_v54  ;;  %v4201_v55 = vld [vmem:[#allocation37_spill] sm:$0xff]  ;;  %v2574_v29 = vadd.f32 %v554_v42, %v4203_v47  ;;  %v2580_v62 = vadd.f32 %v556_v15, %v4207_v44  ;;  %v4211_v20 = vld [vmem:[#allocation4_spill] sm:$0xff]  ;;  %v4214_v42 = vld [vmem:[#allocation7_spill] sm:$0xff] }
  0x6b   : > { %4194 = vst [vmem:[#allocation43_spill] sm:$0xff] %v2559_v37  ;;  %4196 = vst [vmem:[#allocation58_spill] sm:$0xff] %v2562_v45  ;;  %v2571_v41 = vadd.f32 %v553_v60, %v4201_v55  ;;  %v4205_v8 = vld [vmem:[#allocation41_spill] sm:$0xff]  ;;  %v593_v33 = vmul.f32 %v4210_v6, %v4209_v61  ;;  %v594_v34 = vmul.f32 %v4210_v6, %v4211_v20  ;;  %v4213_v60 = vld [vmem:[#allocation6_spill] sm:$0xff] }
  0x6c   : > { %4198 = vst [vmem:[#allocation44_spill] sm:$0xff] %v2565_v36  ;;  %4200 = vst [vmem:[#allocation59_spill] sm:$0xff] %v2568_v27  ;;  %v2577_v10 = vadd.f32 %v555_v22, %v4205_v8  ;;  %v4212_v5 = vld [vmem:[#allocation5_spill] sm:$0xff]  ;;  %v596_v7 = vmul.f32 %v4210_v6, %v4213_v60  ;;  %v597_v18 = vmul.f32 %v4210_v6, %v4214_v42  ;;  %v4215_v22 = vld [vmem:[#allocation10_spill] sm:$0xff] }
  0x6d   : > { %4202 = vst [vmem:[#allocation45_spill] sm:$0xff] %v2571_v41  ;;  %4204 = vst [vmem:[#allocation60_spill] sm:$0xff] %v2574_v29  ;;  %v595_v17 = vmul.f32 %v4210_v6, %v4212_v5  ;;  %v598_v35 = vmul.f32 %v4210_v6, %v4215_v22  ;;  %v4216_v15 = vld [vmem:[#allocation11_spill] sm:$0xff]  ;;  %v600_v28 = vmul.f32 %v4210_v6, %v4217_v43  ;;  %v4219_v9 = vld [vmem:[#allocation14_spill] sm:$0xff] }
  0x6e   : > { %4206 = vst [vmem:[#allocation46_spill] sm:$0xff] %v2577_v10  ;;  %4208 = vst [vmem:[#allocation61_spill] sm:$0xff] %v2580_v62  ;;  %v599_v57 = vmul.f32 %v4210_v6, %v4216_v15  ;;  %v601_v2 = vmul.f32 %v4210_v6, %v4218_v25  ;;  %v602_v14 = vmul.f32 %v4210_v6, %v4219_v9  ;;  %v4220_v1 = vld [vmem:[#allocation15_spill] sm:$0xff]  ;;  %v4221_v54 = vld [vmem:[#allocation16_spill] sm:$0xff] }
  0x6f   : > { %v603_v38 = vmul.f32 %v4210_v6, %v4220_v1  ;;  %v604_v55 = vmul.f32 %v4210_v6, %v4221_v54  ;;  %v4222_v47 = vld [vmem:[#allocation17_spill] sm:$0xff]  ;;  %v4223_v44 = vld [vmem:[#allocation19_spill] sm:$0xff]  ;;  %v4224_v20 = vld [vmem:[#allocation18_spill] sm:$0xff] }
  0x70   : > { %v605_v8 = vmul.f32 %v4210_v6, %v4222_v47  ;;  %v606_v61 = vmul.f32 %v4210_v6, %v4223_v44  ;;  %v607_v43 = vmul.f32 %v4210_v6, %v4224_v20  ;;  %v4225_v15 = vld [vmem:[#allocation20_spill] sm:$0xff]  ;;  %v4226_v22 = vld [vmem:[#allocation21_spill] sm:$0xff]  ;;  %v4227_v42 = vld [vmem:[#allocation23_spill] sm:$0xff] }
  0x71   : > { %v608_v25 = vmul.f32 %v4210_v6, %v4225_v15  ;;  %v609_v9 = vmul.f32 %v4210_v6, %v4226_v22  ;;  %v610_v1 = vmul.f32 %v4210_v6, %v4227_v42  ;;  %v4228_v60 = vld [vmem:[#allocation24_spill] sm:$0xff]  ;;  %v4229_v5 = vld [vmem:[#allocation26_spill] sm:$0xff]  ;;  %v4230_v62 = vld [vmem:[#allocation25_spill] sm:$0xff]  ;;  %v615_v15 = vmul.f32 %v4210_v6, %v4183_v48 }
  0x72   : > { %v611_v54 = vmul.f32 %v4210_v6, %v4228_v60  ;;  %v612_v47 = vmul.f32 %v4210_v6, %v4229_v5  ;;  %v613_v44 = vmul.f32 %v4210_v6, %v4230_v62  ;;  %v4231_v10 = vld [vmem:[#allocation27_spill] sm:$0xff]  ;;  %v4232_v29 = vld [vmem:[#allocation30_spill] sm:$0xff]  ;;  %v618_v60 = vmul.f32 %v4210_v6, %v4186_v32  ;;  %v4234_v27 = vld [vmem:[#allocation32_spill] sm:$0xff] }
  0x73   : > { %v614_v20 = vmul.f32 %v4210_v6, %v4231_v10  ;;  %v616_v22 = vmul.f32 %v4210_v6, %v4232_v29  ;;  %v4233_v41 = vld [vmem:[#allocation31_spill] sm:$0xff]  ;;  %v619_v5 = vmul.f32 %v4210_v6, %v4234_v27  ;;  %v621_v10 = vmul.f32 %v4210_v6, %v4189_v23  ;;  %v4237_v37 = vld [vmem:[#allocation40_spill] sm:$0xff] }
  0x74   : > { %v617_v42 = vmul.f32 %v4210_v6, %v4233_v41  ;;  %v4235_v36 = vld [vmem:[#allocation35_spill] sm:$0xff]  ;;  %v622_v48 = vmul.f32 %v4210_v6, %v4190_v56  ;;  %v624_v41 = vmul.f32 %v4210_v6, %v4237_v37  ;;  %v2647_v32 = vadd.f32 %v593_v33, %v2487_v49 }
  0x75   : > { %v620_v62 = vmul.f32 %v4210_v6, %v4235_v36  ;;  %v4236_v45 = vld [vmem:[#allocation39_spill] sm:$0xff]  ;;  %v2650_v27 = vadd.f32 %v594_v34, %v2490_v3  ;;  %v2653_v36 = vadd.f32 %v595_v17, %v2493_v19  ;;  %v2656_v23 = vadd.f32 %v596_v7, %v2496_v21 }
  0x76   : > { %v623_v29 = vmul.f32 %v4210_v6, %v4236_v45  ;;  %v2659_v56 = vadd.f32 %v597_v18, %v2499_v26  ;;  %v2662_v45 = vadd.f32 %v598_v35, %v2502_v52  ;;  %v2665_v6 = vadd.f32 %v599_v57, %v2505_v59  ;;  %v4254_v35 = vld [vmem:[#allocation57_spill] sm:$0xff] }
  0x77   : > { %v2668_v49 = vadd.f32 %v600_v28, %v2508_v58  ;;  %v2671_v3 = vadd.f32 %v601_v2, %v2511_v13  ;;  %v2674_v19 = vadd.f32 %v602_v14, %v2514_v46  ;;  %v2677_v21 = vadd.f32 %v603_v38, %v2517_v0  ;;  %v4261_v14 = vld [vmem:[#allocation14_spill] sm:$0xff]  ;;  %v4262_v38 = vld [vmem:[#allocation15_spill] sm:$0xff] }
  0x78   : > { %v2680_v26 = vadd.f32 %v604_v55, %v2520_v63  ;;  %v2683_v52 = vadd.f32 %v605_v8, %v2523_v11  ;;  %v2686_v59 = vadd.f32 %v606_v61, %v2526_v39  ;;  %v2689_v58 = vadd.f32 %v607_v43, %v2529_v24  ;;  %v4263_v55 = vld [vmem:[#allocation16_spill] sm:$0xff]  ;;  %v4264_v8 = vld [vmem:[#allocation17_spill] sm:$0xff] }
  0x79   : > { %v2692_v13 = vadd.f32 %v608_v25, %v2532_v50  ;;  %v2695_v46 = vadd.f32 %v609_v9, %v2535_v12  ;;  %v2698_v0 = vadd.f32 %v610_v1, %v2538_v51  ;;  %v2701_v63 = vadd.f32 %v611_v54, %v2541_v40  ;;  %v4238_v51 = vld [vmem:[#allocation43_spill] sm:$0xff]  ;;  %v4239_v40 = vld [vmem:[#allocation58_spill] sm:$0xff] }
  0x7a   : > { %v2704_v11 = vadd.f32 %v612_v47, %v2544_v53  ;;  %v2707_v39 = vadd.f32 %v613_v44, %v2547_v30  ;;  %v2710_v24 = vadd.f32 %v614_v20, %v2550_v4  ;;  %v2713_v50 = vadd.f32 %v615_v15, %v2553_v16  ;;  %v4241_v53 = vld [vmem:[#allocation44_spill] sm:$0xff]  ;;  %v4243_v30 = vld [vmem:[#allocation59_spill] sm:$0xff]  ;;  %v4245_v4 = vld [vmem:[#allocation45_spill] sm:$0xff] }
  0x7b   : > { %v2716_v12 = vadd.f32 %v616_v22, %v2556_v31  ;;  %v2719_v61 = vadd.f32 %v617_v42, %v4238_v51  ;;  %v2722_v33 = vadd.f32 %v618_v60, %v4239_v40  ;;  %v2725_v34 = vadd.f32 %v619_v5, %v4241_v53  ;;  %v4247_v16 = vld [vmem:[#allocation60_spill] sm:$0xff]  ;;  %v4249_v31 = vld [vmem:[#allocation46_spill] sm:$0xff]  ;;  %v4251_v42 = vld [vmem:[#allocation61_spill] sm:$0xff] }
  0x7c   : > { %v2728_v17 = vadd.f32 %v620_v62, %v4243_v30  ;;  %v2731_v20 = vadd.f32 %v621_v10, %v4245_v4  ;;  %v2734_v7 = vadd.f32 %v622_v48, %v4247_v16  ;;  %v2737_v18 = vadd.f32 %v623_v29, %v4249_v31  ;;  %v4253_v60 = vld [vmem:[#allocation5_spill] sm:$0xff]  ;;  %v4255_v5 = vld [vmem:[#allocation6_spill] sm:$0xff]  ;;  %v4256_v62 = vld [vmem:[#allocation7_spill] sm:$0xff] }
  0x7d   : > { %4240 = vst [vmem:[#allocation47_spill] sm:$0xff] %v2722_v33  ;;  %4242 = vst [vmem:[#allocation62_spill] sm:$0xff] %v2725_v34  ;;  %v2740_v22 = vadd.f32 %v624_v41, %v4251_v42  ;;  %v661_v15 = vmul.f32 %v4254_v35, %v4253_v60  ;;  %v662_v57 = vmul.f32 %v4254_v35, %v4255_v5  ;;  %v4257_v10 = vld [vmem:[#allocation10_spill] sm:$0xff]  ;;  %v4258_v48 = vld [vmem:[#allocation11_spill] sm:$0xff] }
  0x7e   : > { %4244 = vst [vmem:[#allocation48_spill] sm:$0xff] %v2728_v17  ;;  %4246 = vst [vmem:[#allocation63_spill] sm:$0xff] %v2731_v20  ;;  %v663_v43 = vmul.f32 %v4254_v35, %v4256_v62  ;;  %v664_v28 = vmul.f32 %v4254_v35, %v4257_v10  ;;  %v665_v25 = vmul.f32 %v4254_v35, %v4258_v48  ;;  %v4259_v29 = vld [vmem:[#allocation13_spill] sm:$0xff]  ;;  %v4260_v41 = vld [vmem:[#allocation12_spill] sm:$0xff] }
  0x7f   : > { %4248 = vst [vmem:[#allocation49_spill] sm:$0xff] %v2734_v7  ;;  %4250 = vst [vmem:[#allocation64_spill] sm:$0xff] %v2737_v18  ;;  %v666_v2 = vmul.f32 %v4254_v35, %v4259_v29  ;;  %v667_v9 = vmul.f32 %v4254_v35, %v4260_v41  ;;  %v668_v1 = vmul.f32 %v4254_v35, %v4261_v14  ;;  %v4265_v51 = vld [vmem:[#allocation19_spill] sm:$0xff]  ;;  %v4266_v53 = vld [vmem:[#allocation18_spill] sm:$0xff] }
  0x80   : > { %4252 = vst [vmem:[#allocation50_spill] sm:$0xff] %v2740_v22  ;;  %v669_v54 = vmul.f32 %v4254_v35, %v4262_v38  ;;  %v670_v47 = vmul.f32 %v4254_v35, %v4263_v55  ;;  %v671_v44 = vmul.f32 %v4254_v35, %v4264_v8  ;;  %v672_v40 = vmul.f32 %v4254_v35, %v4265_v51  ;;  %v4267_v4 = vld [vmem:[#allocation20_spill] sm:$0xff]  ;;  %v4268_v31 = vld [vmem:[#allocation21_spill] sm:$0xff]  ;;  %v4269_v41 = vld [vmem:[#allocation23_spill] sm:$0xff] }
  0x81   : > { %v673_v30 = vmul.f32 %v4254_v35, %v4266_v53  ;;  %v674_v16 = vmul.f32 %v4254_v35, %v4267_v4  ;;  %v675_v42 = vmul.f32 %v4254_v35, %v4268_v31  ;;  %v676_v48 = vmul.f32 %v4254_v35, %v4269_v41  ;;  %v4270_v62 = vld [vmem:[#allocation24_spill] sm:$0xff]  ;;  %v4271_v55 = vld [vmem:[#allocation26_spill] sm:$0xff]  ;;  %v4272_v29 = vld [vmem:[#allocation25_spill] sm:$0xff] }
  0x82   : > { %v677_v60 = vmul.f32 %v4254_v35, %v4270_v62  ;;  %v678_v14 = vmul.f32 %v4254_v35, %v4271_v55  ;;  %v679_v51 = vmul.f32 %v4254_v35, %v4272_v29  ;;  %v4273_v10 = vld [vmem:[#allocation27_spill] sm:$0xff]  ;;  %v4274_v53 = vld [vmem:[#allocation28_spill] sm:$0xff]  ;;  %v4275_v8 = vld [vmem:[#allocation30_spill] sm:$0xff]  ;;  %v2804_v33 = vadd.f32 %v661_v15, %v2647_v32 }
  0x83   : > { %v680_v5 = vmul.f32 %v4254_v35, %v4273_v10  ;;  %v681_v4 = vmul.f32 %v4254_v35, %v4274_v53  ;;  %v682_v31 = vmul.f32 %v4254_v35, %v4275_v8  ;;  %v4276_v38 = vld [vmem:[#allocation31_spill] sm:$0xff]  ;;  %v4277_v22 = vld [vmem:[#allocation34_spill] sm:$0xff]  ;;  %v4278_v18 = vld [vmem:[#allocation32_spill] sm:$0xff]  ;;  %v2825_v32 = vadd.f32 %v668_v1, %v2668_v49 }
  0x84   : > { %v683_v41 = vmul.f32 %v4254_v35, %v4276_v38  ;;  %v684_v62 = vmul.f32 %v4254_v35, %v4277_v22  ;;  %v685_v55 = vmul.f32 %v4254_v35, %v4278_v18  ;;  %v4279_v7 = vld [vmem:[#allocation35_spill] sm:$0xff]  ;;  %v4280_v20 = vld [vmem:[#allocation36_spill] sm:$0xff]  ;;  %v4281_v17 = vld [vmem:[#allocation38_spill] sm:$0xff]  ;;  %v690_v38 = vmul.f32 %v4254_v35, %v4237_v37 }
  0x85   : > { %v686_v29 = vmul.f32 %v4254_v35, %v4279_v7  ;;  %v687_v10 = vmul.f32 %v4254_v35, %v4280_v20  ;;  %v688_v53 = vmul.f32 %v4254_v35, %v4281_v17  ;;  %v4282_v34 = vld [vmem:[#allocation39_spill] sm:$0xff]  ;;  %v691_v22 = vmul.f32 0.0, %v4254_v35  ;;  %4284 = vst [vmem:[#allocation51_spill] sm:$0xff] %v2825_v32 }
  0x86   : > { %v689_v8 = vmul.f32 %v4254_v35, %v4282_v34  ;;  %v2807_v18 = vadd.f32 %v662_v57, %v2650_v27  ;;  %v2810_v7 = vadd.f32 %v663_v43, %v2653_v36  ;;  %v2813_v20 = vadd.f32 %v664_v28, %v2656_v23 }
  0x87   : > { %v2816_v17 = vadd.f32 %v665_v25, %v2659_v56  ;;  %v2819_v34 = vadd.f32 %v666_v2, %v2662_v45  ;;  %v2822_v35 = vadd.f32 %v667_v9, %v2665_v6  ;;  %v2828_v27 = vadd.f32 %v669_v54, %v2671_v3  ;;  %v4317_v25 = vld [vmem:[#allocation15_spill] sm:$0xff]  ;;  %v4318_v2 = vld [vmem:[#allocation17_spill] sm:$0xff]  ;;  %v4321_v54 = vld [vmem:[#allocation24_spill] sm:$0xff] }
  0x88   : > { %v2831_v36 = vadd.f32 %v670_v47, %v2674_v19  ;;  %v2834_v23 = vadd.f32 %v671_v44, %v2677_v21  ;;  %v2837_v56 = vadd.f32 %v672_v40, %v2680_v26  ;;  %v2840_v45 = vadd.f32 %v673_v30, %v2683_v52  ;;  %v4293_v19 = vld [vmem:[#allocation2_spill] sm:$0xff]  ;;  %v4322_v47 = vld [vmem:[#allocation25_spill] sm:$0xff] }
  0x89   : > { %4283 = vst [vmem:[#allocation65_spill] sm:$0xff] %v2822_v35  ;;  %4285 = vst [vmem:[#allocation66_spill] sm:$0xff] %v2828_v27  ;;  %v2843_v6 = vadd.f32 %v674_v16, %v2686_v59  ;;  %v2846_v49 = vadd.f32 %v675_v42, %v2689_v58  ;;  %v2849_v3 = vadd.f32 %v676_v48, %v2692_v13  ;;  %vm756_vm2 = vcmp.lt.s32.totalorder %v4293_v19, 7  ;;  %v4327_v16 = vld [vmem:[#allocation39_spill] sm:$0xff]  ;;  %v4328_v42 = vld [vmem:[#allocation4_spill] sm:$0xff] }
  0x8a   : > { %4286 = vst [vmem:[#allocation8_spill] sm:$0xff] %v2831_v36  ;;  %4287 = vst [vmem:[#allocation67_spill] sm:$0xff] %v2834_v23  ;;  %v2853_v21 = vadd.f32 %v677_v60, %v2695_v46  ;;  %v2856_v26 = vadd.f32 %v678_v14, %v2698_v0  ;;  %v2859_v52 = vadd.f32 %v679_v51, %v2701_v63  ;;  %v4303_v63 = vld [vmem:[#allocation47_spill] sm:$0xff]  ;;  %v4320_v14 = vld [vmem:[#allocation21_spill] sm:$0xff] }
  0x8b   : > { %4288 = vst [vmem:[#allocation68_spill] sm:$0xff] %v2837_v56  ;;  %4289 = vst [vmem:[#allocation69_spill] sm:$0xff] %v2840_v45  ;;  %v2862_v59 = vadd.f32 %v680_v5, %v2704_v11  ;;  %v2865_v58 = vadd.f32 %v681_v4, %v2707_v39  ;;  %v2868_v13 = vadd.f32 %v682_v31, %v2710_v24  ;;  %v4305_v11 = vld [vmem:[#allocation62_spill] sm:$0xff]  ;;  %v4307_v39 = vld [vmem:[#allocation48_spill] sm:$0xff]  ;;  %v732_v1 = vrot.slane %v4320_v14, 1 }
  0x8c   : > { %4290 = vst [vmem:[#allocation70_spill] sm:$0xff] %v2843_v6  ;;  %4291 = vst [vmem:[#allocation71_spill] sm:$0xff] %v2846_v49  ;;  %v2871_v15 = vadd.f32 %v683_v41, %v2713_v50  ;;  %v2874_v46 = vadd.f32 %v684_v62, %v2716_v12  ;;  %v2877_v0 = vadd.f32 %v685_v55, %v2719_v61  ;;  %v4309_v24 = vld [vmem:[#allocation63_spill] sm:$0xff]  ;;  %v4311_v50 = vld [vmem:[#allocation49_spill] sm:$0xff]  ;;  %v733_v55 = vrot.slane %v4321_v54, 1 }
  0x8d   : > { %4292 = vst [vmem:[#allocation72_spill] sm:$0xff] %v2849_v3  ;;  %4294 = vst [vmem:[#allocation73_spill] sm:$0xff] %v2853_v21  ;;  %v2880_v60 = vadd.f32 %v686_v29, %v4303_v63  ;;  %v2883_v5 = vadd.f32 %v687_v10, %v4305_v11  ;;  %v2886_v57 = vadd.f32 %v688_v53, %v4307_v39  ;;  %v4313_v12 = vld [vmem:[#allocation64_spill] sm:$0xff]  ;;  %v4315_v61 = vld [vmem:[#allocation50_spill] sm:$0xff]  ;;  %v729_v29 = vrot.slane %v4317_v25, 1 }
  0x8e   : > { %4295 = vst [vmem:[#allocation52_spill] sm:$0xff] %v2856_v26  ;;  %4296 = vst [vmem:[#allocation22_spill] sm:$0xff] %v2859_v52  ;;  %v2889_v43 = vadd.f32 %v689_v8, %v4309_v24  ;;  %v2892_v28 = vadd.f32 %v690_v38, %v4311_v50  ;;  %v2895_v62 = vadd.f32 %v691_v22, %v4313_v12  ;;  %v730_v10 = vrot.slane %v4318_v2, 1  ;;  %v4319_v41 = vld [vmem:[#allocation18_spill] sm:$0xff]  ;;  %v4323_v38 = vld [vmem:[#allocation28_spill] sm:$0xff] }
  0x8f   : > { %4297 = vst [vmem:[#allocation29_spill] sm:$0xff] %v2862_v59  ;;  %4298 = vst [vmem:[#allocation53_spill] sm:$0xff] %v2865_v58  ;;  %v2898_v48 = vadd.f32 %v691_v22, %v4315_v61  ;;  %v731_v9 = vrot.slane %v4319_v41, 1  ;;  %v734_v8 = vrot.slane %v4322_v47, 1  ;;  %v735_v44 = vrot.slane %v4323_v38, 1  ;;  %v4324_v51 = vld [vmem:[#allocation31_spill] sm:$0xff] }
  0x90   : > { %4299 = vst [vmem:[#allocation33_spill] sm:$0xff] %v2868_v13  ;;  %4300 = vst [vmem:[#allocation54_spill] sm:$0xff] %v2871_v15  ;;  %v736_v40 = vrot.slane %v4324_v51, 1  ;;  %v4325_v53 = vld [vmem:[#allocation32_spill] sm:$0xff]  ;;  %v739_v31 = vrot.slane %v4327_v16, 1  ;;  %v740_v63 = vrot.slane %v4328_v42, 1 }
  0x91   : > { %4301 = vst [vmem:[#allocation37_spill] sm:$0xff] %v2874_v46  ;;  %4302 = vst [vmem:[#allocation55_spill] sm:$0xff] %v2877_v0  ;;  %v737_v30 = vrot.slane %v4325_v53, 1  ;;  %v4326_v22 = vld [vmem:[#allocation36_spill] sm:$0xff]  ;;  %v4329_v11 = vld [vmem:[#allocation6_spill] sm:$0xff] }
  0x92   : > { %4304 = vst [vmem:[#allocation41_spill] sm:$0xff] %v2880_v60  ;;  %4306 = vst [vmem:[#allocation56_spill] sm:$0xff] %v2883_v5  ;;  %v738_v4 = vrot.slane %v4326_v22, 1  ;;  %v741_v39 = vrot.slane %v4329_v11, 1  ;;  %v4330_v24 = vld [vmem:[#allocation10_spill] sm:$0xff]  ;;  %v4331_v12 = vld [vmem:[#allocation13_spill] sm:$0xff] }
  0x93   : > { %4308 = vst [vmem:[#allocation42_spill] sm:$0xff] %v2886_v57  ;;  %4310 = vst [vmem:[#allocation40_spill] sm:$0xff] %v2889_v43  ;;  %v742_v50 = vrot.slane %v4330_v24, 1  ;;  %v743_v61 = vrot.slane %v4331_v12, 1  ;;  %v4332_v25 = vld [vmem:[#allocation14_spill] sm:$0xff]  ;;  %v4333_v41 = vld [vmem:[#allocation16_spill] sm:$0xff] }
  0x94   : > { %4312 = vst [vmem:[#allocation43_spill] sm:$0xff] %v2892_v28  ;;  %4314 = vst [vmem:[#allocation58_spill] sm:$0xff] %v2895_v62  ;;  %v744_v2 = vrot.slane %v4332_v25, 1  ;;  %v745_v14 = vrot.slane %v4333_v41, 1  ;;  %v4334_v54 = vld [vmem:[#allocation19_spill] sm:$0xff]  ;;  %v4335_v38 = vld [vmem:[#allocation20_spill] sm:$0xff] }
  0x95   : > { %4316 = vst [vmem:[#allocation44_spill] sm:$0xff] %v2898_v48  ;;  %v746_v47 = vrot.slane %v4334_v54, 1  ;;  %v747_v51 = vrot.slane %v4335_v38, 1  ;;  %v4336_v53 = vld [vmem:[#allocation23_spill] sm:$0xff]  ;;  %v4337_v48 = vld [vmem:[#allocation26_spill] sm:$0xff]  ;;  %v755_v41 = vrot.slane %v4237_v37, 1 }
  0x96   : > { %v748_v22 = vrot.slane %v4336_v53, 1  ;;  %v749_v16 = vrot.slane %v4337_v48, 1  ;;  %v4338_v62 = vld [vmem:[#allocation27_spill] sm:$0xff]  ;;  %v4339_v28 = vld [vmem:[#allocation30_spill] sm:$0xff]  ;;  %v4345_v53 = vld [vmem:[#allocation5_spill] sm:$0xff] }
  0x97   : > { %v750_v42 = vrot.slane %v4338_v62, 1  ;;  %v751_v11 = vrot.slane %v4339_v28, 1  ;;  %v4340_v43 = vld [vmem:[#allocation34_spill] sm:$0xff]  ;;  %v4341_v57 = vld [vmem:[#allocation35_spill] sm:$0xff]  ;;  %v4346_v48 = vrot.slane %v4345_v53, 1  ;;  %v2967_v13 = vsel %vm756_vm2, %v731_v9, %v747_v51  ;;  %v4363_v49 = vld [vmem:[#allocation9_spill] sm:$0xff] }
  0x98   : > { %v752_v24 = vrot.slane %v4340_v43, 1  ;;  %v753_v12 = vrot.slane %v4341_v57, 1  ;;  %v4342_v5 = vld [vmem:[#allocation38_spill] sm:$0xff]  ;;  %v4343_v60 = vld [vmem:[#allocation3_spill] sm:$0xff]  ;;  %4354 = vst [vmem:[#allocation45_spill] sm:$0xff] %v2967_v13  ;;  %v2999_v3 = vsel %vm756_vm2, %v739_v31, %v755_v41  ;;  %v790_v6 = vadd.s32 1, %v4363_v49 }
  0x99   : > { %v754_v25 = vrot.slane %v4342_v5, 1  ;;  %v4344_v54 = vrot.slane %v4343_v60, 1  ;;  %v2937_v62 = vsel %vm756_vm2, %v4346_v48, %v741_v39  ;;  %v4347_v28 = vld [vmem:[#allocation7_spill] sm:$0xff]  ;;  %v2959_v48 = vsel %vm756_vm2, %v729_v29, %v745_v14  ;;  %4362 = vst [vmem:[#allocation48_spill] sm:$0xff] %v2999_v3 }
  0x9a   : > { %v4348_v43 = vrot.slane %v4347_v28, 1  ;;  %v4349_v5 = vld [vmem:[#allocation11_spill] sm:$0xff]  ;;  %v2979_v58 = vsel %vm756_vm2, %v734_v8, %v750_v42  ;;  %v2983_v59 = vsel %vm756_vm2, %v735_v44, %v751_v11  ;;  %v2987_v52 = vsel %vm756_vm2, %v736_v40, %v752_v24 }
  0x9b   : > { %v2931_v38 = vsel %vm756_vm2, %v4344_v54, %v740_v63  ;;  %v4350_v37 = vrot.slane %v4349_v5, 1  ;;  %v4351_v54 = vld [vmem:[#allocation12_spill] sm:$0xff]  ;;  %4357 = vst [vmem:[#allocation61_spill] sm:$0xff] %v2979_v58  ;;  %4358 = vst [vmem:[#allocation57_spill] sm:$0xff] %v2983_v59  ;;  %v2991_v26 = vsel %vm756_vm2, %v737_v30, %v753_v12  ;;  %v2995_v21 = vsel %vm756_vm2, %v738_v4, %v754_v25 }
  0x9c   : > { %v2943_v57 = vsel %vm756_vm2, %v4348_v43, %v742_v50  ;;  %v4352_v46 = vrot.slane %v4351_v54, 1  ;;  %v2963_v43 = vsel %vm756_vm2, %v730_v10, %v746_v47  ;;  %4359 = vst [vmem:[#allocation2_spill] sm:$0xff] %v2987_v52  ;;  %4360 = vst [vmem:[#allocation47_spill] sm:$0xff] %v2991_v26  ;;  %v4364_v45 = vrot.slane %v4343_v60, 1  ;;  %v3021_v60 = vld [vmem:[%s3855_s1 + $0x8] ss:$0 sm:$0xff] }
  0x9d   : > { %v2949_v0 = vsel %vm756_vm2, %v4350_v37, %v743_v61  ;;  %4353 = vst [vmem:[#allocation59_spill] sm:$0xff] %v2963_v43  ;;  %v2971_v37 = vsel %vm756_vm2, %v732_v1, %v748_v22  ;;  %4361 = vst [vmem:[#allocation62_spill] sm:$0xff] %v2995_v21  ;;  %v4365_v23 = vrot.slane %v4345_v53, 1  ;;  %v4366_v27 = vrot.slane %v4347_v28, 1 }
  0x9e   : > { %v2955_v15 = vsel %vm756_vm2, %v4352_v46, %v744_v2  ;;  %4355 = vst [vmem:[#allocation60_spill] sm:$0xff] %v2971_v37  ;;  %v2975_v46 = vsel %vm756_vm2, %v733_v55, %v749_v16  ;;  %v773_v56 = vsel %vm756_vm2, %v740_v63, %v4364_v45  ;;  %v4367_v35 = vrot.slane %v4349_v5, 1  ;;  %4368 = vst [vmem:[#allocation63_spill] sm:$0xff] %v3021_v60 }
  0x9f   : > { %4356 = vst [vmem:[#allocation46_spill] sm:$0xff] %v2975_v46  ;;  %v774_v36 = vsel %vm756_vm2, %v741_v39, %v4365_v23  ;;  %v775_v32 = vsel %vm756_vm2, %v742_v50, %v4366_v27  ;;  %v4369_v45 = vrot.slane %v4351_v54, 1  ;;  %v778_v63 = vsel %vm756_vm2, %v745_v14, %v729_v29 }
  0xa0   : > { %v776_v49 = vsel %vm756_vm2, %v743_v61, %v4367_v35  ;;  %v779_v27 = vsel %vm756_vm2, %v746_v47, %v730_v10  ;;  %v837_v39 = vsub.s32 2, %v4293_v19  ;;  %v780_v35 = vsel %vm756_vm2, %v747_v51, %v731_v9 }
  0xa1   : > { %v777_v23 = vsel %vm756_vm2, %v744_v2, %v4369_v45  ;;  %v781_v50 = vsel %vm756_vm2, %v748_v22, %v732_v1  ;;  %v782_v61 = vsel %vm756_vm2, %v749_v16, %v733_v55  ;;  %v905_v53 = vsub.s32 5, %v4293_v19 }
  0xa2   : > { %v783_v2 = vsel %vm756_vm2, %v750_v42, %v734_v8  ;;  %v784_v29 = vsel %vm756_vm2, %v751_v11, %v735_v44  ;;  %v785_v10 = vsel %vm756_vm2, %v752_v24, %v736_v40  ;;  %vm794_vm3 = vcmp.lt.s32.totalorder %v790_v6, 16  ;;  %v1611_v8 = vld [vmem:[%s3855_s1] sm:$0xff] }
  0xa3   : > { %v786_v9 = vsel %vm756_vm2, %v753_v12, %v737_v30  ;;  %v787_v1 = vsel %vm756_vm2, %v754_v25, %v738_v4  ;;  %v788_v55 = vsel %vm756_vm2, %v755_v41, %v739_v31  ;;  %v3053_v14 = vmul.f32 %v3021_v60, %v2937_v62 }
  0xa4   : > { %v838_v44 = vrot.slane %v1611_v8, %v837_v39  ;;  %v3060_v40 = vmul.f32 %v3021_v60, %v2943_v57  ;;  %v3064_v30 = vmul.f32 %v3021_v60, %v2949_v0  ;;  %v3068_v19 = vmul.f32 %v3021_v60, %v2955_v15 }
  0xa5   : > { %4370 = vst [vmem:[#allocation49_spill] sm:$0xff] %v3053_v14  ;;  %v3071_v4 = vsel %vm794_vm3, %v773_v56, 0.0  ;;  %v3074_v31 = vsel %vm794_vm3, %v774_v36, 0.0  ;;  %v3076_v47 = vrot.slane %v1611_v8, %v905_v53  ;;  %v3080_v51 = vmul.f32 %v3021_v60, %v2959_v48 }
  0xa6   : > { %4371 = vst [vmem:[#allocation64_spill] sm:$0xff] %v3060_v40  ;;  %4372 = vst [vmem:[#allocation50_spill] sm:$0xff] %v3064_v30  ;;  %v3083_v22 = vsel %vm794_vm3, %v775_v32, 0.0  ;;  %v3086_v16 = vsel %vm794_vm3, %v776_v49, 0.0  ;;  %v3089_v42 = vsel %vm794_vm3, %v777_v23, 0.0  ;;  %v3092_v56 = vsel %vm794_vm3, %v778_v63, 0.0 }
  0xa7   : > { %4373 = vst [vmem:[#allocation15_spill] sm:$0xff] %v3068_v19  ;;  %4374 = vst [vmem:[#allocation17_spill] sm:$0xff] %v3074_v31  ;;  %v3095_v36 = vsel %vm794_vm3, %v779_v27, 0.0  ;;  %v3098_v11 = vsel %vm794_vm3, %v780_v35, 0.0  ;;  %v3101_v24 = vsel %vm794_vm3, %v781_v50, 0.0  ;;  %v3104_v32 = vsel %vm794_vm3, %v782_v61, 0.0 }
  0xa8   : > { %4375 = vst [vmem:[#allocation18_spill] sm:$0xff] %v3080_v51  ;;  %4376 = vst [vmem:[#allocation21_spill] sm:$0xff] %v3083_v22  ;;  %v3107_v12 = vsel %vm794_vm3, %v783_v2, 0.0  ;;  %v3110_v25 = vsel %vm794_vm3, %v784_v29, 0.0  ;;  %v3113_v41 = vsel %vm794_vm3, %v785_v10, 0.0  ;;  %v3116_v28 = vsel %vm794_vm3, %v786_v9, 0.0 }
  0xa9   : > { %4377 = vst [vmem:[#allocation24_spill] sm:$0xff] %v3086_v16  ;;  %4378 = vst [vmem:[#allocation25_spill] sm:$0xff] %v3089_v42  ;;  %v3119_v5 = vsel %vm794_vm3, %v787_v1, 0.0  ;;  %v3122_v54 = vsel %vm794_vm3, %v788_v55, 0.0  ;;  %v839_v49 = vmul.f32 0.0, %v838_v44  ;;  %v841_v45 = vmul.f32 %v838_v44, %v2931_v38 }
  0xaa   : > { %4379 = vst [vmem:[#allocation28_spill] sm:$0xff] %v3092_v56  ;;  %4380 = vst [vmem:[#allocation31_spill] sm:$0xff] %v3095_v36  ;;  %v842_v23 = vmul.f32 %v838_v44, %v3071_v4  ;;  %v843_v63 = vmul.f32 %v838_v44, %v2937_v62  ;;  %v844_v27 = vmul.f32 %v838_v44, %v3074_v31 }
  0xab   : > { %4381 = vst [vmem:[#allocation32_spill] sm:$0xff] %v3098_v11  ;;  %4382 = vst [vmem:[#allocation36_spill] sm:$0xff] %v3101_v24  ;;  %v845_v39 = vmul.f32 %v838_v44, %v2943_v57  ;;  %v846_v35 = vmul.f32 %v838_v44, %v3083_v22  ;;  %v847_v50 = vmul.f32 %v838_v44, %v2949_v0 }
  0xac   : > { %4383 = vst [vmem:[#allocation39_spill] sm:$0xff] %v3104_v32  ;;  %4384 = vst [vmem:[#allocation4_spill] sm:$0xff] %v3107_v12  ;;  %v848_v61 = vmul.f32 %v838_v44, %v3086_v16  ;;  %v849_v6 = vmul.f32 %v838_v44, %v2955_v15  ;;  %v850_v53 = vmul.f32 %v838_v44, %v3089_v42 }
  0xad   : > { %4385 = vst [vmem:[#allocation6_spill] sm:$0xff] %v3110_v25  ;;  %4386 = vst [vmem:[#allocation10_spill] sm:$0xff] %v3113_v41  ;;  %v851_v2 = vmul.f32 %v838_v44, %v2959_v48  ;;  %v852_v29 = vmul.f32 %v838_v44, %v3092_v56  ;;  %v853_v10 = vmul.f32 %v838_v44, %v2963_v43 }
  0xae   : > { %4387 = vst [vmem:[#allocation13_spill] sm:$0xff] %v3116_v28  ;;  %4388 = vst [vmem:[#allocation14_spill] sm:$0xff] %v3119_v5  ;;  %v854_v9 = vmul.f32 %v838_v44, %v3095_v36  ;;  %v855_v1 = vmul.f32 %v838_v44, %v2967_v13  ;;  %v856_v55 = vmul.f32 %v838_v44, %v3098_v11 }
  0xaf   : > { %4389 = vst [vmem:[#allocation16_spill] sm:$0xff] %v3122_v54  ;;  %v857_v8 = vmul.f32 %v838_v44, %v2971_v37  ;;  %v858_v51 = vmul.f32 %v838_v44, %v3101_v24  ;;  %v859_v19 = vmul.f32 %v838_v44, %v2975_v46  ;;  %v860_v30 = vmul.f32 %v838_v44, %v3104_v32 }
  0xb0   : > { %v861_v40 = vmul.f32 %v838_v44, %v2979_v58  ;;  %v862_v14 = vmul.f32 %v838_v44, %v3107_v12  ;;  %v863_v60 = vmul.f32 %v838_v44, %v2983_v59  ;;  %v864_v54 = vmul.f32 %v838_v44, %v3110_v25 }
  0xb1   : > { %v865_v3 = vmul.f32 %v838_v44, %v2987_v52  ;;  %v866_v11 = vmul.f32 %v838_v44, %v3113_v41  ;;  %v867_v37 = vmul.f32 %v838_v44, %v2991_v26  ;;  %v868_v24 = vmul.f32 %v838_v44, %v3116_v28 }
  0xb2   : > { %v869_v46 = vmul.f32 %v838_v44, %v2995_v21  ;;  %v870_v32 = vmul.f32 %v838_v44, %v3119_v5  ;;  %v3155_v58 = vadd.f32 %v839_v49, %v2804_v33  ;;  %v3158_v12 = vadd.f32 %v839_v49, %v2807_v18  ;;  %v4391_v21 = vld [vmem:[#allocation65_spill] sm:$0xff]  ;;  %v4392_v33 = vld [vmem:[#allocation51_spill] sm:$0xff]  ;;  %v4393_v18 = vld [vmem:[#allocation66_spill] sm:$0xff] }
  0xb3   : > { %v3161_v25 = vadd.f32 %v841_v45, %v2810_v7  ;;  %v3164_v52 = vadd.f32 %v842_v23, %v2813_v20  ;;  %v3167_v26 = vadd.f32 %v843_v63, %v2816_v17  ;;  %v3170_v28 = vadd.f32 %v844_v27, %v2819_v34  ;;  %v4394_v7 = vld [vmem:[#allocation8_spill] sm:$0xff]  ;;  %v4395_v20 = vld [vmem:[#allocation67_spill] sm:$0xff]  ;;  %v4397_v34 = vld [vmem:[#allocation69_spill] sm:$0xff] }
  0xb4   : > { %4390 = vst [vmem:[#allocation19_spill] sm:$0xff] %v3155_v58  ;;  %v3173_v44 = vadd.f32 %v845_v39, %v4391_v21  ;;  %v3176_v58 = vadd.f32 %v846_v35, %v4392_v33  ;;  %v3179_v49 = vadd.f32 %v847_v50, %v4393_v18  ;;  %v3182_v45 = vadd.f32 %v848_v61, %v4394_v7  ;;  %v4396_v17 = vld [vmem:[#allocation68_spill] sm:$0xff]  ;;  %v4398_v21 = vld [vmem:[#allocation70_spill] sm:$0xff]  ;;  %v4399_v35 = vld [vmem:[#allocation71_spill] sm:$0xff] }
  0xb5   : > { %v3185_v23 = vadd.f32 %v849_v6, %v4395_v20  ;;  %v3188_v63 = vadd.f32 %v850_v53, %v4396_v17  ;;  %v3191_v27 = vadd.f32 %v851_v2, %v4397_v34  ;;  %v3194_v39 = vadd.f32 %v852_v29, %v4398_v21  ;;  %v4400_v50 = vld [vmem:[#allocation72_spill] sm:$0xff]  ;;  %v4401_v61 = vld [vmem:[#allocation73_spill] sm:$0xff]  ;;  %v4403_v53 = vld [vmem:[#allocation22_spill] sm:$0xff] }
  0xb6   : > { %v3197_v33 = vadd.f32 %v853_v10, %v4399_v35  ;;  %v3200_v18 = vadd.f32 %v854_v9, %v4400_v50  ;;  %v3203_v7 = vadd.f32 %v855_v1, %v4401_v61  ;;  %v4402_v6 = vld [vmem:[#allocation52_spill] sm:$0xff]  ;;  %v3209_v17 = vadd.f32 %v857_v8, %v4403_v53  ;;  %v4404_v2 = vld [vmem:[#allocation29_spill] sm:$0xff]  ;;  %v4408_v9 = vld [vmem:[#allocation54_spill] sm:$0xff] }
  0xb7   : > { %v3206_v20 = vadd.f32 %v856_v55, %v4402_v6  ;;  %v3212_v34 = vadd.f32 %v858_v51, %v4404_v2  ;;  %v4405_v29 = vld [vmem:[#allocation53_spill] sm:$0xff]  ;;  %v3221_v50 = vadd.f32 %v861_v40, %v4408_v9  ;;  %v4412_v55 = vld [vmem:[#allocation55_spill] sm:$0xff]  ;;  %v4416_v51 = vld [vmem:[#allocation56_spill] sm:$0xff] }
  0xb8   : > { %v3215_v21 = vadd.f32 %v859_v19, %v4405_v29  ;;  %v4406_v10 = vld [vmem:[#allocation33_spill] sm:$0xff]  ;;  %v3227_v6 = vadd.f32 %v863_v60, %v4412_v55  ;;  %v3233_v2 = vadd.f32 %v865_v3, %v4416_v51  ;;  %v4418_v19 = vld [vmem:[#allocation42_spill] sm:$0xff]  ;;  %v4422_v40 = vld [vmem:[#allocation43_spill] sm:$0xff]  ;;  %v908_v3 = vmul.f32 %v3076_v47, %v3071_v4 }
  0xb9   : > { %v3218_v35 = vadd.f32 %v860_v30, %v4406_v10  ;;  %4409 = vst [vmem:[#allocation23_spill] sm:$0xff] %v3221_v50  ;;  %v4410_v1 = vld [vmem:[#allocation37_spill] sm:$0xff]  ;;  %v3236_v29 = vadd.f32 %v866_v11, %v4418_v19  ;;  %v4420_v30 = vld [vmem:[#allocation40_spill] sm:$0xff]  ;;  %v3242_v9 = vadd.f32 %v868_v24, %v4422_v40  ;;  %v909_v11 = vmul.f32 %v3076_v47, %v2937_v62 }
  0xba   : > { %v3224_v61 = vadd.f32 %v862_v14, %v4410_v1  ;;  %4413 = vst [vmem:[#allocation27_spill] sm:$0xff] %v3227_v6  ;;  %v4414_v8 = vld [vmem:[#allocation41_spill] sm:$0xff]  ;;  %4417 = vst [vmem:[#allocation34_spill] sm:$0xff] %v3233_v2  ;;  %v3239_v10 = vadd.f32 %v867_v37, %v4420_v30  ;;  %v4424_v14 = vld [vmem:[#allocation58_spill] sm:$0xff]  ;;  %v910_v37 = vmul.f32 %v3076_v47, %v3074_v31 }
  0xbb   : > { %4407 = vst [vmem:[#allocation20_spill] sm:$0xff] %v3218_v35  ;;  %v3230_v53 = vadd.f32 %v864_v54, %v4414_v8  ;;  %4419 = vst [vmem:[#allocation35_spill] sm:$0xff] %v3236_v29  ;;  %v3245_v1 = vadd.f32 %v869_v46, %v4424_v14  ;;  %v4426_v60 = vld [vmem:[#allocation44_spill] sm:$0xff]  ;;  %v907_v54 = vmul.f32 %v3076_v47, %v2931_v38  ;;  %v4439_v29 = vld [vmem:[#allocation62_spill] sm:$0xff] }
  0xbc   : > { %4411 = vst [vmem:[#allocation26_spill] sm:$0xff] %v3224_v61  ;;  %4421 = vst [vmem:[#allocation38_spill] sm:$0xff] %v3239_v10  ;;  %v3248_v55 = vadd.f32 %v870_v32, %v4426_v60  ;;  %v911_v24 = vmul.f32 %v3076_v47, %v2943_v57  ;;  %v912_v46 = vmul.f32 %v3076_v47, %v3083_v22  ;;  %v4428_v30 = vld [vmem:[#allocation32_spill] sm:$0xff]  ;;  %v4433_v22 = vld [vmem:[#allocation61_spill] sm:$0xff] }
  0xbd   : > { %4415 = vst [vmem:[#allocation30_spill] sm:$0xff] %v3230_v53  ;;  %4423 = vst [vmem:[#allocation3_spill] sm:$0xff] %v3242_v9  ;;  %v913_v32 = vmul.f32 %v3076_v47, %v2949_v0  ;;  %v914_v38 = vmul.f32 %v3076_v47, %v3086_v16  ;;  %v915_v4 = vmul.f32 %v3076_v47, %v2955_v15  ;;  %v4429_v40 = vld [vmem:[#allocation60_spill] sm:$0xff]  ;;  %v4432_v16 = vld [vmem:[#allocation39_spill] sm:$0xff] }
  0xbe   : > { %4425 = vst [vmem:[#allocation5_spill] sm:$0xff] %v3245_v1  ;;  %4427 = vst [vmem:[#allocation7_spill] sm:$0xff] %v3248_v55  ;;  %v916_v62 = vmul.f32 %v3076_v47, %v3089_v42  ;;  %v917_v8 = vmul.f32 %v3076_v47, %v2959_v48  ;;  %v918_v57 = vmul.f32 %v3076_v47, %v3092_v56  ;;  %v4430_v60 = vld [vmem:[#allocation36_spill] sm:$0xff]  ;;  %v4431_v42 = vld [vmem:[#allocation46_spill] sm:$0xff] }
  0xbf   : > { %v919_v51 = vmul.f32 %v3076_v47, %v2963_v43  ;;  %v920_v0 = vmul.f32 %v3076_v47, %v3095_v36  ;;  %v921_v19 = vmul.f32 %v3076_v47, %v2967_v13  ;;  %v922_v15 = vmul.f32 %v3076_v47, %v4428_v30  ;;  %v4434_v31 = vld [vmem:[#allocation4_spill] sm:$0xff]  ;;  %v4435_v55 = vld [vmem:[#allocation6_spill] sm:$0xff]  ;;  %v4437_v9 = vld [vmem:[#allocation47_spill] sm:$0xff] }
  0xc0   : > { %v923_v14 = vmul.f32 %v3076_v47, %v4429_v40  ;;  %v924_v48 = vmul.f32 %v3076_v47, %v4430_v60  ;;  %v925_v56 = vmul.f32 %v3076_v47, %v4431_v42  ;;  %v926_v43 = vmul.f32 %v3076_v47, %v4432_v16  ;;  %v4436_v1 = vld [vmem:[#allocation2_spill] sm:$0xff]  ;;  %v4438_v10 = vld [vmem:[#allocation13_spill] sm:$0xff]  ;;  %v4440_v2 = vld [vmem:[#allocation48_spill] sm:$0xff] }
  0xc1   : > { %v927_v36 = vmul.f32 %v3076_v47, %v4433_v22  ;;  %v928_v13 = vmul.f32 %v3076_v47, %v4434_v31  ;;  %v929_v30 = vmul.f32 %v3076_v47, %v2983_v59  ;;  %v930_v40 = vmul.f32 %v3076_v47, %v4435_v55  ;;  %v4441_v53 = vld [vmem:[#allocation16_spill] sm:$0xff]  ;;  %v4442_v6 = vld [vmem:[#allocation19_spill] sm:$0xff] }
  0xc2   : > { %v931_v60 = vmul.f32 %v3076_v47, %v4436_v1  ;;  %v932_v42 = vmul.f32 %v3076_v47, %v3113_v41  ;;  %v933_v16 = vmul.f32 %v3076_v47, %v4437_v9  ;;  %v934_v22 = vmul.f32 %v3076_v47, %v4438_v10 }
  0xc3   : > { %v935_v31 = vmul.f32 %v3076_v47, %v4439_v29  ;;  %v936_v59 = vmul.f32 %v3076_v47, %v3119_v5  ;;  %v937_v55 = vmul.f32 %v3076_v47, %v4440_v2  ;;  %v938_v1 = vmul.f32 %v3076_v47, %v4441_v53  ;;  %v4478_v53 = vld [vmem:[#allocation48_spill] sm:$0xff] }
  0xc4   : > { %v939_v41 = vadd.f32 %v907_v54, %v4442_v6  ;;  %v940_v61 = vadd.f32 %v908_v3, %v3158_v12  ;;  %v941_v9 = vadd.f32 %v909_v11, %v3161_v25  ;;  %v942_v10 = vadd.f32 %v910_v37, %v3164_v52  ;;  %v4443_v54 = vld [vmem:[#allocation20_spill] sm:$0xff]  ;;  %v4444_v3 = vld [vmem:[#allocation23_spill] sm:$0xff]  ;;  %v4445_v11 = vld [vmem:[#allocation26_spill] sm:$0xff] }
  0xc5   : > { %v943_v50 = vadd.f32 %v911_v24, %v3167_v26  ;;  %v944_v29 = vadd.f32 %v912_v46, %v3170_v28  ;;  %v945_v5 = vadd.f32 %v913_v32, %v3173_v44  ;;  %v946_v35 = vadd.f32 %v914_v38, %v3176_v58  ;;  %v4446_v37 = vld [vmem:[#allocation27_spill] sm:$0xff]  ;;  %v4447_v24 = vld [vmem:[#allocation30_spill] sm:$0xff] }
  0xc6   : > { %v947_v2 = vadd.f32 %v915_v4, %v3179_v49  ;;  %v948_v47 = vadd.f32 %v916_v62, %v3182_v45  ;;  %v949_v6 = vadd.f32 %v917_v8, %v3185_v23  ;;  %v950_v12 = vadd.f32 %v918_v57, %v3188_v63  ;;  %v4448_v46 = vld [vmem:[#allocation34_spill] sm:$0xff]  ;;  %v4449_v32 = vld [vmem:[#allocation35_spill] sm:$0xff]  ;;  %v4454_v4 = vld [vmem:[#allocation17_spill] sm:$0xff] }
  0xc7   : > { %v951_v25 = vadd.f32 %v919_v51, %v3191_v27  ;;  %v952_v52 = vadd.f32 %v920_v0, %v3194_v39  ;;  %v953_v26 = vadd.f32 %v921_v19, %v3197_v33  ;;  %v954_v28 = vadd.f32 %v922_v15, %v3200_v18  ;;  %v4450_v38 = vld [vmem:[#allocation38_spill] sm:$0xff]  ;;  %v4455_v62 = vld [vmem:[#allocation63_spill] sm:$0xff]  ;;  %v4456_v57 = vld [vmem:[#allocation21_spill] sm:$0xff] }
  0xc8   : > { %v955_v44 = vadd.f32 %v923_v14, %v3203_v7  ;;  %v956_v58 = vadd.f32 %v924_v48, %v3206_v20  ;;  %v957_v49 = vadd.f32 %v925_v56, %v3209_v17  ;;  %v958_v45 = vadd.f32 %v926_v43, %v3212_v34  ;;  %v4451_v17 = vld [vmem:[#allocation3_spill] sm:$0xff]  ;;  %v4452_v34 = vld [vmem:[#allocation5_spill] sm:$0xff]  ;;  %v4457_v0 = vld [vmem:[#allocation24_spill] sm:$0xff] }
  0xc9   : > { %v959_v23 = vadd.f32 %v927_v36, %v3215_v21  ;;  %v960_v63 = vadd.f32 %v928_v13, %v4443_v54  ;;  %v961_v27 = vadd.f32 %v929_v30, %v4444_v3  ;;  %v962_v39 = vadd.f32 %v930_v40, %v4445_v11  ;;  %v4453_v21 = vld [vmem:[#allocation7_spill] sm:$0xff]  ;;  %v4459_v19 = vld [vmem:[#allocation28_spill] sm:$0xff]  ;;  %v4462_v15 = vld [vmem:[#allocation45_spill] sm:$0xff] }
  0xca   : > { %v963_v33 = vadd.f32 %v931_v60, %v4446_v37  ;;  %v964_v18 = vadd.f32 %v932_v42, %v4447_v24  ;;  %v965_v7 = vadd.f32 %v933_v16, %v4448_v46  ;;  %v966_v20 = vadd.f32 %v934_v22, %v4449_v32  ;;  %v4458_v16 = vld [vmem:[#allocation25_spill] sm:$0xff]  ;;  %v4461_v30 = vld [vmem:[#allocation31_spill] sm:$0xff]  ;;  %v4463_v14 = vld [vmem:[#allocation32_spill] sm:$0xff] }
  0xcb   : > { %v967_v56 = vadd.f32 %v935_v31, %v4450_v38  ;;  %v968_v43 = vadd.f32 %v936_v59, %v4451_v17  ;;  %v969_v36 = vadd.f32 %v937_v55, %v4452_v34  ;;  %v970_v13 = vadd.f32 %v938_v1, %v4453_v21  ;;  %v4460_v59 = vld [vmem:[#allocation59_spill] sm:$0xff]  ;;  %v4464_v48 = vld [vmem:[#allocation60_spill] sm:$0xff]  ;;  %v4466_v37 = vld [vmem:[#allocation46_spill] sm:$0xff] }
  0xcc   : > { %v976_v8 = vmul.f32 %v4455_v62, %v4454_v4  ;;  %v978_v51 = vmul.f32 %v4455_v62, %v4456_v57  ;;  %v980_v42 = vmul.f32 %v4455_v62, %v4457_v0  ;;  %v982_v22 = vmul.f32 %v4455_v62, %v4458_v16  ;;  %v4465_v3 = vld [vmem:[#allocation36_spill] sm:$0xff]  ;;  %v4467_v46 = vld [vmem:[#allocation39_spill] sm:$0xff]  ;;  %v4468_v38 = vld [vmem:[#allocation61_spill] sm:$0xff] }
  0xcd   : > { %v984_v31 = vmul.f32 %v4455_v62, %v4459_v19  ;;  %v985_v55 = vmul.f32 %v4455_v62, %v4460_v59  ;;  %v986_v1 = vmul.f32 %v4455_v62, %v4461_v30  ;;  %v987_v40 = vmul.f32 %v4455_v62, %v4462_v15  ;;  %v4469_v34 = vld [vmem:[#allocation4_spill] sm:$0xff]  ;;  %v4470_v4 = vld [vmem:[#allocation57_spill] sm:$0xff]  ;;  %v4471_v0 = vld [vmem:[#allocation6_spill] sm:$0xff] }
  0xce   : > { %v988_v60 = vmul.f32 %v4455_v62, %v4463_v14  ;;  %v989_v54 = vmul.f32 %v4455_v62, %v4464_v48  ;;  %v990_v11 = vmul.f32 %v4455_v62, %v4465_v3  ;;  %v991_v24 = vmul.f32 %v4455_v62, %v4466_v37  ;;  %v4472_v19 = vld [vmem:[#allocation2_spill] sm:$0xff]  ;;  %v4474_v14 = vld [vmem:[#allocation47_spill] sm:$0xff]  ;;  %v4475_v3 = vld [vmem:[#allocation13_spill] sm:$0xff] }
  0xcf   : > { %v992_v32 = vmul.f32 %v4455_v62, %v4467_v46  ;;  %v993_v17 = vmul.f32 %v4455_v62, %v4468_v38  ;;  %v994_v21 = vmul.f32 %v4455_v62, %v4469_v34  ;;  %v995_v57 = vmul.f32 %v4455_v62, %v4470_v4  ;;  %v4473_v30 = vld [vmem:[#allocation10_spill] sm:$0xff] }
  0xd0   : > { %v996_v16 = vmul.f32 %v4455_v62, %v4471_v0  ;;  %v997_v59 = vmul.f32 %v4455_v62, %v4472_v19  ;;  %v998_v15 = vmul.f32 %v4455_v62, %v4473_v30  ;;  %v999_v48 = vmul.f32 %v4455_v62, %v4474_v14  ;;  %v4476_v46 = vld [vmem:[#allocation62_spill] sm:$0xff]  ;;  %v4479_v19 = vld [vmem:[#allocation16_spill] sm:$0xff] }
  0xd1   : > { %v1000_v37 = vmul.f32 %v4455_v62, %v4475_v3  ;;  %v1001_v38 = vmul.f32 %v4455_v62, %v4476_v46  ;;  %v4477_v34 = vld [vmem:[#allocation14_spill] sm:$0xff]  ;;  %v1003_v0 = vmul.f32 %v4455_v62, %v4478_v53  ;;  %v1004_v30 = vmul.f32 %v4455_v62, %v4479_v19  ;;  %v4480_v3 = vld [vmem:[#allocation49_spill] sm:$0xff]  ;;  %v4481_v53 = vld [vmem:[#allocation64_spill] sm:$0xff] }
  0xd2   : > { %v1002_v4 = vmul.f32 %v4455_v62, %v4477_v34  ;;  %v1005_v14 = vmul.f32 0.0, %v4455_v62  ;;  %v1007_v46 = vadd.f32 %v4480_v3, %v939_v41  ;;  %v1008_v34 = vadd.f32 %v976_v8, %v940_v61  ;;  %v4482_v3 = vld [vmem:[#allocation50_spill] sm:$0xff]  ;;  %v4483_v61 = vld [vmem:[#allocation15_spill] sm:$0xff] }
  0xd3   : > { %v1009_v19 = vadd.f32 %v4481_v53, %v941_v9  ;;  %v1010_v62 = vadd.f32 %v978_v51, %v942_v10  ;;  %v1011_v41 = vadd.f32 %v4482_v3, %v943_v50  ;;  %v1012_v8 = vadd.f32 %v980_v42, %v944_v29  ;;  %v4484_v10 = vld [vmem:[#allocation18_spill] sm:$0xff] }
  0xd4   : > { %v1013_v9 = vadd.f32 %v4483_v61, %v945_v5  ;;  %v1014_v53 = vadd.f32 %v982_v22, %v946_v35  ;;  %v1015_v51 = vadd.f32 %v4484_v10, %v947_v2  ;;  %v1016_v3 = vadd.f32 %v984_v31, %v948_v47  ;;  %v1535_v2 = vld [vmem:[%s3856_s2] ss:$0 sm:$0xff] }
  0xd5   : > { %v1017_v50 = vadd.f32 %v985_v55, %v949_v6  ;;  %v1018_v29 = vadd.f32 %v986_v1, %v950_v12  ;;  %v1019_v42 = vadd.f32 %v987_v40, %v951_v25  ;;  %v1020_v5 = vadd.f32 %v988_v60, %v952_v52 }
  0xd6   : > { %v1021_v61 = vadd.f32 %v989_v54, %v953_v26  ;;  %v1022_v22 = vadd.f32 %v990_v11, %v954_v28  ;;  %v1023_v35 = vadd.f32 %v991_v24, %v955_v44  ;;  %v1024_v10 = vadd.f32 %v992_v32, %v956_v58 }
  0xd7   : > { %v1025_v31 = vadd.f32 %v993_v17, %v957_v49  ;;  %v1026_v47 = vadd.f32 %v994_v21, %v958_v45  ;;  %v1027_v6 = vadd.f32 %v995_v57, %v959_v23  ;;  %v1028_v55 = vadd.f32 %v996_v16, %v960_v63 }
  0xd8   : > { %v1029_v1 = vadd.f32 %v997_v59, %v961_v27  ;;  %v1030_v12 = vadd.f32 %v998_v15, %v962_v39  ;;  %v1031_v25 = vadd.f32 %v999_v48, %v963_v33  ;;  %v1032_v40 = vadd.f32 %v1000_v37, %v964_v18 }
  0xd9   : > { %v1033_v52 = vadd.f32 %v1001_v38, %v965_v7  ;;  %v1034_v60 = vadd.f32 %v1002_v4, %v966_v20  ;;  %v1035_v26 = vadd.f32 %v1003_v0, %v967_v56  ;;  %v1036_v54 = vadd.f32 %v1004_v30, %v968_v43 }
  0xda   : > { %v1037_v11 = vadd.f32 %v1005_v14, %v969_v36  ;;  %v1038_v28 = vadd.f32 %v1005_v14, %v970_v13  ;;  %v3405_v44 = vadd.f32 %v1535_v2, %v1007_v46  ;;  %v3407_v24 = vadd.f32 %v1535_v2, %v1008_v34 }
  0xdb   : > { %v3409_v32 = vadd.f32 %v1535_v2, %v1009_v19  ;;  %v3411_v58 = vadd.f32 %v1535_v2, %v1010_v62  ;;  %v3413_v49 = vadd.f32 %v1535_v2, %v1011_v41  ;;  %v3415_v45 = vadd.f32 %v1535_v2, %v1012_v8 }
  0xdc   : > { %v3417_v23 = vadd.f32 %v1535_v2, %v1013_v9  ;;  %v3419_v63 = vadd.f32 %v1535_v2, %v1014_v53  ;;  %v3421_v27 = vadd.f32 %v1535_v2, %v1015_v51  ;;  %v3423_v39 = vadd.f32 %v1535_v2, %v1016_v3 }
  0xdd   : > { %v3425_v33 = vadd.f32 %v1535_v2, %v1017_v50  ;;  %v3427_v18 = vadd.f32 %v1535_v2, %v1018_v29  ;;  %v3429_v7 = vadd.f32 %v1535_v2, %v1019_v42  ;;  %v3431_v20 = vadd.f32 %v1535_v2, %v1020_v5 }
  0xde   : > { %v3433_v56 = vadd.f32 %v1535_v2, %v1021_v61  ;;  %v3435_v43 = vadd.f32 %v1535_v2, %v1022_v22  ;;  %v3437_v36 = vadd.f32 %v1535_v2, %v1023_v35  ;;  %v3439_v13 = vadd.f32 %v1535_v2, %v1024_v10 }
  0xdf   : > { %v3441_v17 = vadd.f32 %v1535_v2, %v1025_v31  ;;  %v3443_v21 = vadd.f32 %v1535_v2, %v1026_v47  ;;  %v3445_v57 = vadd.f32 %v1535_v2, %v1027_v6  ;;  %v3447_v16 = vadd.f32 %v1535_v2, %v1028_v55 }
  0xe0   : > { %v3449_v59 = vadd.f32 %v1535_v2, %v1029_v1  ;;  %v3451_v15 = vadd.f32 %v1535_v2, %v1030_v12  ;;  %v3453_v48 = vadd.f32 %v1535_v2, %v1031_v25  ;;  %v3455_v37 = vadd.f32 %v1535_v2, %v1032_v40 }
  0xe1   : > { %v3457_v38 = vadd.f32 %v1535_v2, %v1033_v52  ;;  %v3459_v4 = vadd.f32 %v1535_v2, %v1034_v60  ;;  %v3461_v0 = vadd.f32 %v1535_v2, %v1035_v26  ;;  %v3463_v30 = vadd.f32 %v1535_v2, %v1036_v54 }
  0xe2   : > { %v3465_v14 = vadd.f32 %v1535_v2, %v1037_v11  ;;  %v3467_v46 = vadd.f32 %v1535_v2, %v1038_v28  ;;  %v3470_v34 = vmul.f32 0.5, %v3405_v44  ;;  %v3473_v19 = vmul.f32 0.5, %v3407_v24 }
  0xe3   : > { %v3476_v62 = vmul.f32 0.5, %v3409_v32  ;;  %v1109_v41 = vmul.f32 %v3405_v44, %v3405_v44  ;;  %v1110_v8 = vmul.f32 %v3407_v24, %v3407_v24  ;;  %v3483_v9 = vmul.f32 0.5, %v3411_v58 }
  0xe4   : > { %v3486_v53 = vmul.f32 0.5, %v3413_v49  ;;  %v1111_v51 = vmul.f32 %v3409_v32, %v3409_v32  ;;  %v1112_v3 = vmul.f32 %v3411_v58, %v3411_v58  ;;  %v3493_v50 = vmul.f32 0.5, %v3415_v45 }
  0xe5   : > { %v3496_v29 = vmul.f32 0.5, %v3417_v23  ;;  %v3499_v42 = vmul.f32 0.5, %v3419_v63  ;;  %v1113_v5 = vmul.f32 %v3413_v49, %v3413_v49  ;;  %v3504_v61 = vmul.f32 0.5, %v3421_v27 }
  0xe6   : > { %4485 = vst [vmem:[#allocation11_spill] sm:$0xff] %v3486_v53  ;;  %4486 = vst [vmem:[#allocation12_spill] sm:$0xff] %v3493_v50  ;;  %v3507_v22 = vmul.f32 0.5, %v3423_v39  ;;  %v3510_v35 = vmul.f32 0.5, %v3425_v33  ;;  %v1114_v2 = vmul.f32 %v3415_v45, %v3415_v45  ;;  %v3515_v10 = vmul.f32 0.5, %v3427_v18 }
  0xe7   : > { %4487 = vst [vmem:[#allocation9_spill] sm:$0xff] %v3496_v29  ;;  %4488 = vst [vmem:[#allocation65_spill] sm:$0xff] %v3499_v42  ;;  %v3518_v31 = vmul.f32 0.5, %v3429_v7  ;;  %v1141_v47 = vmul.f32 %v1109_v41, %v3405_v44  ;;  %v1142_v6 = vmul.f32 %v1110_v8, %v3407_v24  ;;  %v3523_v55 = vmul.f32 0.5, %v3431_v20 }
  0xe8   : > { %4489 = vst [vmem:[#allocation51_spill] sm:$0xff] %v3504_v61  ;;  %4490 = vst [vmem:[#allocation66_spill] sm:$0xff] %v3507_v22  ;;  %v1115_v1 = vmul.f32 %v3417_v23, %v3417_v23  ;;  %v1143_v12 = vmul.f32 %v1111_v51, %v3409_v32  ;;  %v1144_v25 = vmul.f32 %v1112_v3, %v3411_v58  ;;  %v3530_v40 = vmul.f32 0.5, %v3433_v56 }
  0xe9   : > { %4491 = vst [vmem:[#allocation8_spill] sm:$0xff] %v3510_v35  ;;  %4492 = vst [vmem:[#allocation67_spill] sm:$0xff] %v3515_v10  ;;  %v3533_v52 = vmul.f32 0.5, %v3435_v43  ;;  %v3536_v60 = vmul.f32 0.5, %v3437_v36  ;;  %v1145_v26 = vmul.f32 %v1113_v5, %v3413_v49  ;;  %v3540_v54 = vmul.f32 0.5, %v3439_v13 }
  0xea   : > { %4493 = vst [vmem:[#allocation68_spill] sm:$0xff] %v3518_v31  ;;  %4494 = vst [vmem:[#allocation69_spill] sm:$0xff] %v3523_v55  ;;  %v3543_v11 = vmul.f32 0.5, %v3441_v17  ;;  %v1116_v28 = vmul.f32 %v3419_v63, %v3419_v63  ;;  %v1146_v41 = vmul.f32 %v1114_v2, %v3415_v45  ;;  %v3549_v8 = vmul.f32 0.5, %v3443_v21 }
  0xeb   : > { %4495 = vst [vmem:[#allocation70_spill] sm:$0xff] %v3530_v40  ;;  %4496 = vst [vmem:[#allocation71_spill] sm:$0xff] %v3533_v52  ;;  %v3552_v51 = vmul.f32 0.5, %v3445_v57  ;;  %v1173_v3 = vmul.f32 0.044715, %v1141_v47  ;;  %v1117_v5 = vmul.f32 %v3421_v27, %v3421_v27  ;;  %v1118_v40 = vmul.f32 %v3423_v39, %v3423_v39 }
  0xec   : > { %4497 = vst [vmem:[#allocation72_spill] sm:$0xff] %v3536_v60  ;;  %4498 = vst [vmem:[#allocation73_spill] sm:$0xff] %v3540_v54  ;;  %v1174_v60 = vmul.f32 0.044715, %v1142_v6  ;;  %v1147_v54 = vmul.f32 %v1115_v1, %v3417_v23  ;;  %v1175_v52 = vmul.f32 0.044715, %v1143_v12  ;;  %v1119_v2 = vmul.f32 %v3425_v33, %v3425_v33 }
  0xed   : > { %4499 = vst [vmem:[#allocation52_spill] sm:$0xff] %v3543_v11  ;;  %4500 = vst [vmem:[#allocation22_spill] sm:$0xff] %v3549_v8  ;;  %v1176_v11 = vmul.f32 0.044715, %v1144_v25  ;;  %v1120_v8 = vmul.f32 %v3427_v18, %v3427_v18  ;;  %v1177_v55 = vmul.f32 0.044715, %v1145_v26  ;;  %v1121_v47 = vmul.f32 %v3429_v7, %v3429_v7 }
  0xee   : > { %4501 = vst [vmem:[#allocation29_spill] sm:$0xff] %v3552_v51  ;;  %v1122_v6 = vmul.f32 %v3431_v20, %v3431_v20  ;;  %v1148_v1 = vmul.f32 %v1116_v28, %v3419_v63  ;;  %v1178_v12 = vmul.f32 0.044715, %v1146_v41  ;;  %v1123_v25 = vmul.f32 %v3433_v56, %v3433_v56 }
  0xef   : > { %v1124_v51 = vmul.f32 %v3435_v43, %v3435_v43  ;;  %v1205_v31 = vadd.f32 %v1173_v3, %v3405_v44  ;;  %v1206_v10 = vadd.f32 %v1174_v60, %v3407_v24  ;;  %v1149_v26 = vmul.f32 %v1117_v5, %v3421_v27 }
  0xf0   : > { %v1179_v35 = vmul.f32 0.044715, %v1147_v54  ;;  %v1207_v22 = vadd.f32 %v1175_v52, %v3409_v32  ;;  %v1208_v61 = vadd.f32 %v1176_v11, %v3411_v58  ;;  %v1125_v28 = vmul.f32 %v3437_v36, %v3437_v36 }
  0xf1   : > { %v1126_v41 = vmul.f32 %v3439_v13, %v3439_v13  ;;  %v1127_v42 = vmul.f32 %v3441_v17, %v3441_v17  ;;  %v1209_v44 = vadd.f32 %v1177_v55, %v3413_v49  ;;  %v3586_v24 = vmul.f32 %v3443_v21, %v3443_v21 }
  0xf2   : > { %v1150_v60 = vmul.f32 %v1118_v40, %v3423_v39  ;;  %v1180_v32 = vmul.f32 0.044715, %v1148_v1  ;;  %v1210_v58 = vadd.f32 %v1178_v12, %v3415_v45  ;;  %v1129_v52 = vmul.f32 %v3445_v57, %v3445_v57 }
  0xf3   : > { %v1151_v54 = vmul.f32 %v1119_v2, %v3425_v33  ;;  %v1237_v11 = vmul.f32 0.7978846, %v1205_v31  ;;  %v1238_v3 = vmul.f32 0.7978846, %v1206_v10  ;;  %v1181_v5 = vmul.f32 0.044715, %v1149_v26 }
  0xf4   : > { %v1211_v29 = vadd.f32 %v1179_v35, %v3417_v23  ;;  %v1239_v49 = vmul.f32 0.7978846, %v1207_v22  ;;  %v1240_v55 = vmul.f32 0.7978846, %v1208_v61  ;;  %v1130_v50 = vmul.f32 %v3447_v16, %v3447_v16 }
  0xf5   : > { %v1152_v40 = vmul.f32 %v1120_v8, %v3427_v18  ;;  %v1241_v1 = vmul.f32 0.7978846, %v1209_v44  ;;  %1547 = vtanh.f32 %v1237_v11  ;;  %v1182_v45 = vmul.f32 0.044715, %v1150_v60 }
  0xf6   : > { %v1212_v12 = vadd.f32 %v1180_v32, %v3419_v63  ;;  %v1242_v53 = vmul.f32 0.7978846, %v1210_v58  ;;  %1549 = vtanh.f32 %v1238_v3  ;;  %v1131_v10 = vmul.f32 %v3449_v59, %v3449_v59 }
  0xf7   : > { %v3602_v23 = vmul.f32 %v3451_v15, %v3451_v15  ;;  %v1153_v61 = vmul.f32 %v1121_v47, %v3429_v7  ;;  %1551 = vtanh.f32 %v1239_v49  ;;  %v1183_v22 = vmul.f32 0.044715, %v1151_v54 }
  0xf8   : > { %v1213_v35 = vadd.f32 %v1181_v5, %v3421_v27  ;;  %v1243_v31 = vmul.f32 0.7978846, %v1211_v29  ;;  %1553 = vtanh.f32 %v1240_v55  ;;  %v3608_v63 = vmul.f32 %v3453_v48, %v3453_v48 }
  0xf9   : > { %v3612_v8 = vmul.f32 %v3455_v37, %v3455_v37  ;;  %v1154_v2 = vmul.f32 %v1122_v6, %v3431_v20  ;;  %1555 = vtanh.f32 %v1241_v1  ;;  %v1184_v26 = vmul.f32 0.044715, %v1152_v40 }
  0xfa   : > { %v1214_v47 = vadd.f32 %v1182_v45, %v3423_v39  ;;  %v1244_v44 = vmul.f32 0.7978846, %v1212_v12  ;;  %1557 = vtanh.f32 %v1242_v53  ;;  %v3618_v27 = vmul.f32 %v3457_v38, %v3457_v38 }
  0xfb   : > { %v3622_v29 = vmul.f32 %v3459_v4, %v3459_v4  ;;  %v3626_v60 = vmul.f32 %v3461_v0, %v3461_v0  ;;  %v1155_v6 = vmul.f32 %v1123_v25, %v3433_v56  ;;  %v1185_v32 = vmul.f32 0.044715, %v1153_v61 }
  0xfc   : > { %v1215_v58 = vadd.f32 %v1183_v22, %v3425_v33  ;;  %v1245_v39 = vmul.f32 0.7978846, %v1213_v35  ;;  %1559 = vtanh.f32 %v1243_v31  ;;  %v3632_v53 = vmul.f32 %v3463_v30, %v3463_v30 }
  0xfd   : > { %v3636_v54 = vmul.f32 %v3465_v14, %v3465_v14  ;;  %v3640_v11 = vmul.f32 %v3467_v46, %v3467_v46  ;;  %v1156_v3 = vmul.f32 %v1124_v51, %v3435_v43  ;;  %v1186_v25 = vmul.f32 0.044715, %v1154_v2 }
  0xfe   : > { %v1216_v5 = vadd.f32 %v1184_v26, %v3427_v18  ;;  %v1246_v33 = vmul.f32 0.7978846, %v1214_v47  ;;  %1561 = vtanh.f32 %v1244_v44  ;;  %v1157_v55 = vmul.f32 %v1125_v28, %v3437_v36 }
  0xff   : > { %v1548_v49 = vpop.eup %1547  ;;  %v1158_v40 = vmul.f32 %v1126_v41, %v3439_v13  ;;  %v1159_v1 = vmul.f32 %v1127_v42, %v3441_v17  ;;  %v1187_v45 = vmul.f32 0.044715, %v1155_v6  ;;  %v1217_v61 = vadd.f32 %v1185_v32, %v3429_v7 }
 0x100   : > { %v1550_v12 = vpop.eup %1549  ;;  %v1247_v22 = vmul.f32 0.7978846, %v1215_v58  ;;  %1563 = vtanh.f32 %v1245_v39  ;;  %v1301_v35 = vadd.f32 1.0, %v1548_v49  ;;  %v1160_v18 = vmul.f32 %v3586_v24, %v3443_v21 }
 0x101   : > { %v1552_v51 = vpop.eup %1551  ;;  %v1161_v31 = vmul.f32 %v1129_v52, %v3445_v57  ;;  %v1188_v2 = vmul.f32 0.044715, %v1156_v3  ;;  %v1302_v26 = vadd.f32 1.0, %v1550_v12  ;;  %v1218_v41 = vadd.f32 %v1186_v25, %v3431_v20 }
 0x102   : > { %v1554_v28 = vpop.eup %1553  ;;  %v1248_v47 = vmul.f32 0.7978846, %v1216_v5  ;;  %1565 = vtanh.f32 %v1246_v33  ;;  %v1303_v42 = vadd.f32 1.0, %v1552_v51  ;;  %v1162_v7 = vmul.f32 %v1130_v50, %v3447_v16 }
 0x103   : > { %v1556_v44 = vpop.eup %1555  ;;  %v1304_v6 = vadd.f32 1.0, %v1554_v28  ;;  %v3654_v32 = vmul.f32 %v1301_v35, %v3470_v34  ;;  %v3657_v58 = vmul.f32 %v1302_v26, %v3473_v19  ;;  %v1189_v52 = vmul.f32 0.044715, %v1157_v55  ;;  %v4502_v35 = vld [vmem:[#allocation11_spill] sm:$0xff] }
 0x104   : > { %v1558_v24 = vpop.eup %1557  ;;  %v1219_v39 = vadd.f32 %v1187_v45, %v3433_v56  ;;  %v1249_v3 = vmul.f32 0.7978846, %v1217_v61  ;;  %1567 = vtanh.f32 %v1247_v22  ;;  %v1163_v20 = vmul.f32 %v1131_v10, %v3449_v59 }
 0x105   : > { %v1305_v25 = vadd.f32 1.0, %v1556_v44  ;;  %v3662_v5 = vmul.f32 %v1303_v42, %v3476_v62  ;;  %v1365_v50 = vadd.f32 %v3657_v58, %v3654_v32  ;;  %v1190_v33 = vmul.f32 0.044715, %v1158_v40 }
 0x106   : > { %v1560_v34 = vpop.eup %1559  ;;  %v1220_v19 = vadd.f32 %v1188_v2, %v3435_v43  ;;  %v1250_v49 = vmul.f32 0.7978846, %v1218_v41  ;;  %1569 = vtanh.f32 %v1248_v47  ;;  %v1164_v56 = vmul.f32 %v3602_v23, %v3451_v15  ;;  %v4503_v41 = vld [vmem:[#allocation12_spill] sm:$0xff] }
 0x107   : > { %v1306_v55 = vadd.f32 1.0, %v1558_v24  ;;  %v3670_v45 = vmul.f32 %v1304_v6, %v3483_v9  ;;  %v1366_v10 = vadd.f32 %v1365_v50, %v3662_v5  ;;  %v1191_v12 = vmul.f32 0.044715, %v1159_v1 }
 0x108   : > { %v1562_v62 = vpop.eup %1561  ;;  %v1221_v61 = vadd.f32 %v1189_v52, %v3437_v36  ;;  %v1251_v22 = vmul.f32 0.7978846, %v1219_v39  ;;  %1571 = vtanh.f32 %v1249_v3  ;;  %v1165_v43 = vmul.f32 %v3608_v63, %v3453_v48  ;;  %v4504_v52 = vld [vmem:[#allocation9_spill] sm:$0xff] }
 0x109   : > { %v1307_v40 = vadd.f32 1.0, %v1560_v34  ;;  %v3677_v51 = vmul.f32 %v1305_v25, %v4502_v35  ;;  %v1367_v23 = vadd.f32 %v1366_v10, %v3670_v45  ;;  %v1192_v9 = vmul.f32 0.044715, %v1160_v18 }
 0x10a   : > { %v1564_v2 = vpop.eup %1563  ;;  %v1222_v26 = vadd.f32 %v1190_v33, %v3439_v13  ;;  %v1252_v28 = vmul.f32 0.7978846, %v1220_v19  ;;  %1573 = vtanh.f32 %v1250_v49  ;;  %v1166_v36 = vmul.f32 %v3612_v8, %v3455_v37  ;;  %v4505_v33 = vld [vmem:[#allocation65_spill] sm:$0xff] }
 0x10b   : > { %v1308_v1 = vadd.f32 1.0, %v1562_v62  ;;  %v3684_v47 = vmul.f32 %v1306_v55, %v4503_v41  ;;  %v1368_v63 = vadd.f32 %v1367_v23, %v3677_v51  ;;  %v1193_v44 = vmul.f32 0.044715, %v1161_v31 }
 0x10c   : > { %v1566_v42 = vpop.eup %1565  ;;  %v1223_v6 = vadd.f32 %v1191_v12, %v3441_v17  ;;  %v1253_v24 = vmul.f32 0.7978846, %v1221_v61  ;;  %1575 = vtanh.f32 %v1251_v22  ;;  %v1167_v13 = vmul.f32 %v3618_v27, %v3457_v38  ;;  %v4506_v12 = vld [vmem:[#allocation51_spill] sm:$0xff] }
 0x10d   : > { %v1309_v18 = vadd.f32 1.0, %v1564_v2  ;;  %v3691_v39 = vmul.f32 %v1307_v40, %v4504_v52  ;;  %v1369_v8 = vadd.f32 %v1368_v63, %v3684_v47  ;;  %v1194_v25 = vmul.f32 0.044715, %v1162_v7  ;;  %v4507_v2 = vld [vmem:[#allocation66_spill] sm:$0xff] }
 0x10e   : > { %v1568_v3 = vpop.eup %1567  ;;  %v1224_v50 = vadd.f32 %v1192_v9, %v3443_v21  ;;  %v1254_v34 = vmul.f32 0.7978846, %v1222_v26  ;;  %1577 = vtanh.f32 %v1252_v28  ;;  %v1168_v17 = vmul.f32 %v3622_v29, %v3459_v4 }
 0x10f   : > { %v1310_v31 = vadd.f32 1.0, %v1566_v42  ;;  %v3698_v19 = vmul.f32 %v1308_v1, %v4505_v33  ;;  %v1370_v27 = vadd.f32 %v1369_v8, %v3691_v39  ;;  %v1195_v55 = vmul.f32 0.044715, %v1163_v20  ;;  %v4508_v42 = vld [vmem:[#allocation8_spill] sm:$0xff] }
 0x110   : > { %v1570_v49 = vpop.eup %1569  ;;  %v1225_v10 = vadd.f32 %v1193_v44, %v3445_v57  ;;  %v1255_v62 = vmul.f32 0.7978846, %v1223_v6  ;;  %1579 = vtanh.f32 %v1253_v24  ;;  %v1169_v21 = vmul.f32 %v3626_v60, %v3461_v0 }
 0x111   : > { %v1311_v7 = vadd.f32 1.0, %v1568_v3  ;;  %v3705_v61 = vmul.f32 %v1309_v18, %v4506_v12  ;;  %v1371_v29 = vadd.f32 %v1370_v27, %v3698_v19  ;;  %v1196_v40 = vmul.f32 0.044715, %v1164_v56  ;;  %v4509_v3 = vld [vmem:[#allocation67_spill] sm:$0xff] }
 0x112   : > { %v1572_v22 = vpop.eup %1571  ;;  %v1226_v35 = vadd.f32 %v1194_v25, %v3447_v16  ;;  %v1256_v23 = vmul.f32 0.7978846, %v1224_v50  ;;  %1581 = vtanh.f32 %v1254_v34  ;;  %v1170_v57 = vmul.f32 %v3632_v53, %v3463_v30 }
 0x113   : > { %v1312_v20 = vadd.f32 1.0, %v1570_v49  ;;  %v3712_v9 = vmul.f32 %v1310_v31, %v4507_v2  ;;  %v1372_v60 = vadd.f32 %v1371_v29, %v3705_v61  ;;  %v1197_v28 = vmul.f32 0.044715, %v1165_v43  ;;  %v4510_v49 = vld [vmem:[#allocation68_spill] sm:$0xff] }
 0x114   : > { %v1574_v26 = vpop.eup %1573  ;;  %v1227_v1 = vadd.f32 %v1195_v55, %v3449_v59  ;;  %v1257_v41 = vmul.f32 0.7978846, %v1225_v10  ;;  %1583 = vtanh.f32 %v1255_v62  ;;  %v1171_v56 = vmul.f32 %v3636_v54, %v3465_v14 }
 0x115   : > { %v1313_v63 = vadd.f32 1.0, %v1572_v22  ;;  %v3719_v44 = vmul.f32 %v1311_v7, %v4508_v42  ;;  %v1373_v53 = vadd.f32 %v1372_v60, %v3712_v9  ;;  %v1198_v24 = vmul.f32 0.044715, %v1166_v36 }
 0x116   : > { %v1576_v6 = vpop.eup %1575  ;;  %v1228_v18 = vadd.f32 %v1196_v40, %v3451_v15  ;;  %v1258_v52 = vmul.f32 0.7978846, %v1226_v35  ;;  %1585 = vtanh.f32 %v1256_v23  ;;  %v1172_v43 = vmul.f32 %v3640_v11, %v3467_v46 }
 0x117   : > { %v1314_v8 = vadd.f32 1.0, %v1574_v26  ;;  %v3726_v25 = vmul.f32 %v1312_v20, %v4509_v3  ;;  %v1374_v54 = vadd.f32 %v1373_v53, %v3719_v44  ;;  %v1199_v34 = vmul.f32 0.044715, %v1167_v13  ;;  %v4511_v13 = vld [vmem:[#allocation69_spill] sm:$0xff]  ;;  %v4512_v26 = vld [vmem:[#allocation70_spill] sm:$0xff] }
 0x118   : > { %v1578_v50 = vpop.eup %1577  ;;  %v1229_v31 = vadd.f32 %v1197_v28, %v3453_v48  ;;  %v1259_v33 = vmul.f32 0.7978846, %v1227_v1  ;;  %1587 = vtanh.f32 %v1257_v41  ;;  %v1200_v36 = vmul.f32 0.044715, %v1168_v17 }
 0x119   : > { %v1315_v27 = vadd.f32 1.0, %v1576_v6  ;;  %v3731_v55 = vmul.f32 %v1313_v63, %v4510_v49  ;;  %v1375_v10 = vadd.f32 %v1374_v54, %v3726_v25  ;;  %v1201_v62 = vmul.f32 0.044715, %v1169_v21  ;;  %v4513_v6 = vld [vmem:[#allocation71_spill] sm:$0xff] }
 0x11a   : > { %v1580_v11 = vpop.eup %1579  ;;  %v1230_v7 = vadd.f32 %v1198_v24, %v3455_v37  ;;  %v1260_v12 = vmul.f32 0.7978846, %v1228_v18  ;;  %1589 = vtanh.f32 %v1258_v52  ;;  %v1202_v29 = vmul.f32 0.044715, %v1170_v57 }
 0x11b   : > { %v1316_v22 = vadd.f32 1.0, %v1578_v50  ;;  %v3736_v40 = vmul.f32 %v1314_v8, %v4511_v13  ;;  %v1376_v35 = vadd.f32 %v1375_v10, %v3731_v55  ;;  %v1203_v23 = vmul.f32 0.044715, %v1171_v56 }
 0x11c   : > { %v1582_v17 = vpop.eup %1581  ;;  %v1231_v20 = vadd.f32 %v1199_v34, %v3457_v38  ;;  %v1261_v2 = vmul.f32 0.7978846, %v1229_v31  ;;  %1591 = vtanh.f32 %v1259_v33  ;;  %v1232_v60 = vadd.f32 %v1200_v36, %v3459_v4  ;;  %v4514_v34 = vld [vmem:[#allocation72_spill] sm:$0xff] }
 0x11d   : > { %v1317_v21 = vadd.f32 1.0, %v1580_v11  ;;  %v3742_v28 = vmul.f32 %v1315_v27, %v4512_v26  ;;  %v1377_v57 = vadd.f32 %v1376_v35, %v3736_v40  ;;  %v1262_v41 = vmul.f32 0.7978846, %v1230_v7  ;;  %v4515_v11 = vld [vmem:[#allocation73_spill] sm:$0xff] }
 0x11e   : > { %v1584_v1 = vpop.eup %1583  ;;  %1593 = vtanh.f32 %v1260_v12  ;;  %v1403_v63 = vmul.f32 %v3654_v32, %v3654_v32  ;;  %v1404_v56 = vmul.f32 %v3657_v58, %v3657_v58  ;;  %v1204_v42 = vmul.f32 0.044715, %v1172_v43 }
 0x11f   : > { %v1318_v53 = vadd.f32 1.0, %v1582_v17  ;;  %v3750_v24 = vmul.f32 %v1316_v22, %v4513_v6  ;;  %v1378_v18 = vadd.f32 %v1377_v57, %v3742_v28  ;;  %v1233_v8 = vadd.f32 %v1201_v62, %v3461_v0 }
 0x120   : > { %v1586_v52 = vpop.eup %1585  ;;  %v1263_v3 = vmul.f32 0.7978846, %v1231_v20  ;;  %1595 = vtanh.f32 %v1261_v2  ;;  %v1405_v54 = vmul.f32 %v3662_v5, %v3662_v5  ;;  %v1234_v32 = vadd.f32 %v1202_v29, %v3463_v30 }
 0x121   : > { %v1319_v50 = vadd.f32 1.0, %v1584_v1  ;;  %v3758_v58 = vmul.f32 %v1317_v21, %v4514_v34  ;;  %v1379_v43 = vadd.f32 %v1378_v18, %v3750_v24  ;;  %v1264_v33 = vmul.f32 0.7978846, %v1232_v60 }
 0x122   : > { %v1588_v31 = vpop.eup %1587  ;;  %1597 = vtanh.f32 %v1262_v41  ;;  %v1406_v36 = vmul.f32 %v3670_v45, %v3670_v45  ;;  %v1435_v27 = vadd.f32 %v1404_v56, %v1403_v63  ;;  %v1235_v49 = vadd.f32 %v1203_v23, %v3465_v14  ;;  %v4516_v45 = vld [vmem:[#allocation52_spill] sm:$0xff] }
 0x123   : > { %v1320_v10 = vadd.f32 1.0, %v1586_v52  ;;  %v3765_v5 = vmul.f32 %v1318_v53, %v4515_v11  ;;  %v1380_v62 = vadd.f32 %v1379_v43, %v3758_v58  ;;  %v1265_v12 = vmul.f32 0.7978846, %v1233_v8 }
 0x124   : > { %v1590_v7 = vpop.eup %1589  ;;  %1599 = vtanh.f32 %v1263_v3  ;;  %v1407_v29 = vmul.f32 %v3677_v51, %v3677_v51  ;;  %v1436_v22 = vadd.f32 %v1435_v27, %v1405_v54  ;;  %v1236_v13 = vadd.f32 %v1204_v42, %v3467_v46  ;;  %v4517_v51 = vld [vmem:[#allocation22_spill] sm:$0xff] }
 0x125   : > { %v1321_v35 = vadd.f32 1.0, %v1588_v31  ;;  %v3772_v17 = vmul.f32 %v1319_v50, %v4516_v45  ;;  %v1381_v23 = vadd.f32 %v1380_v62, %v3765_v5  ;;  %v1266_v2 = vmul.f32 0.7978846, %v1234_v32 }
 0x126   : > { %v1592_v20 = vpop.eup %1591  ;;  %1601 = vtanh.f32 %v1264_v33  ;;  %v1408_v60 = vmul.f32 %v3684_v47, %v3684_v47  ;;  %v1437_v21 = vadd.f32 %v1436_v22, %v1406_v36  ;;  %v1098_v26 = vmul.f32 0.5, %v3447_v16  ;;  %v4518_v47 = vld [vmem:[#allocation29_spill] sm:$0xff] }
 0x127   : > { %v1322_v57 = vadd.f32 1.0, %v1590_v7  ;;  %v3779_v1 = vmul.f32 %v1320_v10, %v4517_v51  ;;  %v1382_v41 = vadd.f32 %v1381_v23, %v3772_v17  ;;  %v1267_v56 = vmul.f32 0.7978846, %v1235_v49 }
 0x128   : > { %v1594_v63 = vpop.eup %1593  ;;  %1603 = vtanh.f32 %v1265_v12  ;;  %v1409_v42 = vmul.f32 %v3691_v39, %v3691_v39  ;;  %v1438_v53 = vadd.f32 %v1437_v21, %v1407_v29  ;;  %v1099_v6 = vmul.f32 0.5, %v3449_v59 }
 0x129   : > { %v1323_v18 = vadd.f32 1.0, %v1592_v20  ;;  %v3786_v52 = vmul.f32 %v1321_v35, %v4518_v47  ;;  %v1383_v16 = vadd.f32 %v1382_v41, %v3779_v1  ;;  %v1268_v3 = vmul.f32 0.7978846, %v1236_v13 }
 0x12a   : > { %v1596_v8 = vpop.eup %1595  ;;  %1605 = vtanh.f32 %v1266_v2  ;;  %v1410_v54 = vmul.f32 %v3698_v19, %v3698_v19  ;;  %v1439_v32 = vadd.f32 %v1438_v53, %v1408_v60  ;;  %v1100_v50 = vmul.f32 0.5, %v3451_v15 }
 0x12b   : > { %v1324_v34 = vadd.f32 1.0, %v1594_v63  ;;  %v3792_v39 = vmul.f32 %v1322_v57, %v1098_v26  ;;  %v1384_v59 = vadd.f32 %v1383_v16, %v3786_v52  ;;  %1607 = vtanh.f32 %v1267_v56 }
 0x12c   : > { %v1598_v43 = vpop.eup %1597  ;;  %v1411_v31 = vmul.f32 %v3705_v61, %v3705_v61  ;;  %v1440_v33 = vadd.f32 %v1439_v32, %v1409_v42  ;;  %v1101_v36 = vmul.f32 0.5, %v3453_v48  ;;  %v1325_v27 = vadd.f32 1.0, %v1596_v8 }
 0x12d   : > { %v3798_v49 = vmul.f32 %v1323_v18, %v1099_v6  ;;  %v1385_v19 = vadd.f32 %v1384_v59, %v3792_v39  ;;  %1609 = vtanh.f32 %v1268_v3  ;;  %v1412_v15 = vmul.f32 %v3712_v9, %v3712_v9 }
 0x12e   : > { %v1600_v10 = vpop.eup %1599  ;;  %v1441_v11 = vadd.f32 %v1440_v33, %v1410_v54  ;;  %v1102_v62 = vmul.f32 0.5, %v3455_v37  ;;  %v1326_v7 = vadd.f32 1.0, %v1598_v43  ;;  %v3804_v12 = vmul.f32 %v1324_v34, %v1100_v50 }
 0x12f   : > { %v1386_v61 = vadd.f32 %v1385_v19, %v3798_v49  ;;  %v1413_v48 = vmul.f32 %v3719_v44, %v3719_v44  ;;  %v1103_v13 = vmul.f32 0.5, %v3457_v38  ;;  %v1327_v35 = vadd.f32 1.0, %v1600_v10 }
 0x130   : > { %v1602_v29 = vpop.eup %1601  ;;  %v1442_v22 = vadd.f32 %v1441_v11, %v1411_v31  ;;  %v3810_v45 = vmul.f32 %v1325_v27, %v1101_v36  ;;  %v1414_v37 = vmul.f32 %v3726_v25, %v3726_v25  ;;  %v1104_v2 = vmul.f32 0.5, %v3459_v4 }
 0x131   : > { %v1387_v9 = vadd.f32 %v1386_v61, %v3804_v12  ;;  %v1328_v60 = vadd.f32 1.0, %v1602_v29  ;;  %v1358_v21 = vmul.f32 %v1326_v7, %v1102_v62  ;;  %v1415_v38 = vmul.f32 %v3731_v55, %v3731_v55 }
 0x132   : > { %v1604_v23 = vpop.eup %1603  ;;  %v1443_v20 = vadd.f32 %v1442_v22, %v1412_v15  ;;  %v1105_v51 = vmul.f32 0.5, %v3461_v0  ;;  %v1359_v63 = vmul.f32 %v1327_v35, %v1103_v13  ;;  %v1416_v25 = vmul.f32 %v3736_v40, %v3736_v40 }
 0x133   : > { %v1388_v26 = vadd.f32 %v1387_v9, %v3810_v45  ;;  %v1329_v41 = vadd.f32 1.0, %v1604_v23  ;;  %v1106_v4 = vmul.f32 0.5, %v3463_v30  ;;  %v1360_v18 = vmul.f32 %v1328_v60, %v1104_v2 }
 0x134   : > { %v1606_v44 = vpop.eup %1605  ;;  %v1444_v57 = vadd.f32 %v1443_v20, %v1413_v48  ;;  %v1417_v55 = vmul.f32 %v3742_v28, %v3742_v28  ;;  %v1107_v0 = vmul.f32 0.5, %v3465_v14  ;;  %v1418_v50 = vmul.f32 %v3750_v24, %v3750_v24 }
 0x135   : > { %v1389_v56 = vadd.f32 %v1388_v26, %v1358_v21  ;;  %v1608_v42 = vpop.eup %1607  ;;  %v1330_v6 = vadd.f32 1.0, %v1606_v44  ;;  %v1361_v54 = vmul.f32 %v1329_v41, %v1105_v51  ;;  %v1108_v34 = vmul.f32 0.5, %v3467_v46 }
 0x136   : > { %v1445_v53 = vadd.f32 %v1444_v57, %v1414_v37  ;;  %v1331_v3 = vadd.f32 1.0, %v1608_v42  ;;  %v1419_v31 = vmul.f32 %v3758_v58, %v3758_v58  ;;  %v1420_v14 = vmul.f32 %v3765_v5, %v3765_v5 }
 0x137   : > { %v1390_v47 = vadd.f32 %v1389_v56, %v1359_v63  ;;  %v1610_v16 = vpop.eup %1609  ;;  %v1362_v59 = vmul.f32 %v1330_v6, %v1106_v4  ;;  %v1421_v24 = vmul.f32 %v3772_v17, %v3772_v17  ;;  %v1422_v11 = vmul.f32 %v3779_v1, %v3779_v1 }
 0x138   : > { %v1446_v8 = vadd.f32 %v1445_v53, %v1415_v38  ;;  %v1332_v30 = vadd.f32 1.0, %v1610_v16  ;;  %v1363_v28 = vmul.f32 %v1331_v3, %v1107_v0  ;;  %v1423_v7 = vmul.f32 %v3786_v52, %v3786_v52 }
 0x139   : > { %v1391_v32 = vadd.f32 %v1390_v47, %v1360_v18  ;;  %v1424_v5 = vmul.f32 %v3792_v39, %v3792_v39  ;;  %v1425_v17 = vmul.f32 %v3798_v49, %v3798_v49  ;;  %v1426_v1 = vmul.f32 %v3804_v12, %v3804_v12 }
 0x13a   : > { %v1447_v40 = vadd.f32 %v1446_v8, %v1416_v25  ;;  %v1364_v19 = vmul.f32 %v1332_v30, %v1108_v34  ;;  %v1427_v52 = vmul.f32 %v3810_v45, %v3810_v45  ;;  %v1428_v20 = vmul.f32 %v1358_v21, %v1358_v21 }
 0x13b   : > { %v1392_v43 = vadd.f32 %v1391_v32, %v1361_v54  ;;  %v1429_v49 = vmul.f32 %v1359_v63, %v1359_v63  ;;  %v1430_v26 = vmul.f32 %v1360_v18, %v1360_v18  ;;  %v1431_v38 = vmul.f32 %v1361_v54, %v1361_v54 }
 0x13c   : > { %v1448_v33 = vadd.f32 %v1447_v40, %v1417_v55  ;;  %v1432_v57 = vmul.f32 %v1362_v59, %v1362_v59  ;;  %v1433_v41 = vmul.f32 %v1363_v28, %v1363_v28  ;;  %v1434_v42 = vmul.f32 %v1364_v19, %v1364_v19 }
 0x13d   : > { %v1393_v36 = vadd.f32 %v1392_v43, %v1362_v59 }
 0x13e   : > { %v1449_v27 = vadd.f32 %v1448_v33, %v1418_v50 }
 0x13f   : > { %v1394_v10 = vadd.f32 %v1393_v36, %v1363_v28 }
 0x140   : > { %v1450_v46 = vadd.f32 %v1449_v27, %v1419_v31 }
 0x141   : > { %v1395_v15 = vadd.f32 %v1394_v10, %v1364_v19 }
 0x142   : > { %v1451_v62 = vadd.f32 %v1450_v46, %v1420_v14 }
 0x143   : > { %v1396_v58 = vrot.slane %v1395_v15, 4 }
 0x144   : > { %v1452_v61 = vadd.f32 %v1451_v62, %v1421_v24 }
 0x145   : > { %v1397_v29 = vadd.f32 %v1396_v58, %v1395_v15 }
 0x146   : > { %v1453_v48 = vadd.f32 %v1452_v61, %v1422_v11 }
 0x147   : > { %v1398_v22 = vrot.slane %v1397_v29, 2 }
 0x148   : > { %v1454_v13 = vadd.f32 %v1453_v48, %v1423_v7 }
 0x149   : > { %v1399_v35 = vadd.f32 %v1398_v22, %v1397_v29 }
 0x14a   : > { %v1455_v9 = vadd.f32 %v1454_v13, %v1424_v5 }
 0x14b   : > { %v1400_v23 = vrot.slane %v1399_v35, 1 }
 0x14c   : > { %v1456_v39 = vadd.f32 %v1455_v9, %v1425_v17 }
 0x14d   : > { %v1401_v37 = vadd.f32 %v1400_v23, %v1399_v35 }
 0x14e   : > { %v1457_v2 = vadd.f32 %v1456_v39, %v1426_v1 }
 0x14f   : > { %1402 = vst [vmem:[%s168_s29] sm:$0x1] %v1401_v37 }
 0x150   : > { %v1458_v60 = vadd.f32 %v1457_v2, %v1427_v52 }
 0x152   : > { %v1459_v44 = vadd.f32 %v1458_v60, %v1428_v20 }
 0x154   : > { %v1460_v12 = vadd.f32 %v1459_v44, %v1429_v49 }
 0x156   : > { %v1461_v51 = vadd.f32 %v1460_v12, %v1430_v26 }
 0x158   : > { %v1462_v56 = vadd.f32 %v1461_v51, %v1431_v38 }
 0x15a   : > { %v1463_v25 = vadd.f32 %v1462_v56, %v1432_v57 }
 0x15c   : > { %v1464_v53 = vadd.f32 %v1463_v25, %v1433_v41 }
 0x15e   : > { %v1465_v4 = vadd.f32 %v1464_v53, %v1434_v42 }
 0x160   : > { %v1466_v45 = vrot.slane %v1465_v4, 4 }
 0x162   : > { %v1467_v6 = vadd.f32 %v1466_v45, %v1465_v4 }
 0x164   : > { %v1468_v47 = vrot.slane %v1467_v6, 2 }
 0x166   : > { %v1469_v21 = vadd.f32 %v1468_v47, %v1467_v6 }
 0x168   : > { %v1470_v16 = vrot.slane %v1469_v21, 1 }
 0x16a   : > { %v1471_v55 = vadd.f32 %v1470_v16, %v1469_v21 }
 0x16c   : > { %1472 = vst [vmem:[%s168_s29 + $0x1] sm:$0x1] %v1471_v55 }
 0x16d PF: > { %s13_s12 = sadd.s32 1, %s1618_s12  }
 0x16e   : > { %p10_p4 = scmp.ge.s32.totalorder %s13_s12, 4  }
 0x170   :  { %12 = sbr.rel (!%p10_p4) target bundleno = 1 (0x1), region = 62 }

// kernel: convmixer_layer.3
= control target key start
LH: loop header
LB: loop body
LE: loop exit
PB: predicated region body
PF: predicated region fallthrough
CT: control target
= control target key end

     0   :  { %s2964_s24 = smov 0   ;;  %s4610_s0 = inlined_call_operand.vmem [shape: f32[2,16,16,128], index: 0, kind: input, shape index: {}]   ;;  %s4611_s1 = inlined_call_operand.vmem [shape: f32[9,128], index: 1, kind: input, shape index: {}]   ;;  %s4612_s2 = inlined_call_operand.vmem [shape: f32[1,128], index: 2, kind: input, shape index: {}]   ;;  %s4613_s3 = inlined_call_operand.vmem [shape: f32[2,128], index: 3, kind: input, shape index: {}]   ;;  %s4614_s4 = inlined_call_operand.vmem [shape: bf16[128,128], index: 4, kind: input, shape index: {}]   ;;  %s4615_s5 = inlined_call_operand.vmem [shape: f32[1,128], index: 5, kind: input, shape index: {}]   ;;  %s4616_s6 = inlined_call_operand.vmem [shape: bf16[2,16,16,128], index: 6, kind: output, shape index: {0}]   ;;  %s4617_s7 = inlined_call_operand.vmem [shape: f32[2,2,128], index: 7, kind: output, shape index: {1}]  }
   0x1 LB: > { %s2482_s25 = sadd.s32 4294967295, %s2922_s24   ;;  %p2486_p0 = scmp.ge.s32.totalorder %s2922_s24, 1  ;;  %s2922_s24 = sphi %s2964_s24, %s18_s24  }
   0x2   : > { %p240_p1 = scmp.lt.s32.totalorder %s2922_s24, 3 }
   0x4   : > { %p241_p2 = pnand %p2486_p0, %p240_p1 }
   0x6   : > { %244 = sbr.rel (%p241_p2) target bundleno = 603 (0x25b), region = 44 }
   0xd   : > { %v2762_v0 = vld [vmem:[%s4614_s4] sm:$0xff]   ;;  %p276_p3 = scmp.lt.s32.totalorder %s2482_s25, 1  ;;  %v326_v1 = vlaneseq  ;;  %v2763_v2 = vld [vmem:[%s4614_s4 + $0x8] sm:$0xff]   ;;  %v2764_v4 = vld [vmem:[%s4614_s4 + $0x10] sm:$0xff]  }
   0xe   : > { %2690 = vmatprep.subr.bf16.mxu0 %v2762_v0  ;;  %2738 = vmatprep.subr.bf16.mxu1 %v2762_v0  ;;  %v2765_v5 = vld [vmem:[%s4614_s4 + $0x18] sm:$0xff]   ;;  %v2766_v33 = vld [vmem:[%s4614_s4 + $0x20] sm:$0xff]   ;;  %v2767_v50 = vld [vmem:[%s4614_s4 + $0x28] sm:$0xff]  }
   0xf   : > { %s4830_s25 = smov (!%p276_p3, %s2482_s25), 1  ;;  %2691 = vmatpush3.bf16.msra.mxu0 %v2762_v0  ;;  %2746 = vmatpush3.bf16.msra.mxu1 %v2762_v0  ;;  %v2980_v3 = vshrl.u32 %v326_v1, 7  ;;  %v3053_v34 = vld [vmem:[%s4611_s1] sm:$0xff] }
  0x10   : > { %2692 = vmatprep.subr.bf16.mxu0 %v2763_v2  ;;  %2739 = vmatprep.subr.bf16.mxu1 %v2763_v2  ;;  %s2537_s9 = sshll.u32 %s4830_s25, 8  ;;  %s2538_s16 = sshll.u32 %s4830_s25, 7 }
  0x11   : > { %4699 = vst [vmem:[#allocation2_spill] sm:$0xff] %v2980_v3  ;;  %s2989_s12 = scalar_lea.vmem %s4610_s0, %s2537_s9  ;;  %v2995_v6 = vadd.s32 8, %v2980_v3  ;;  %vm361_vm0 = vcmp.lt.s32.totalorder %v2980_v3, 1  ;;  %v2999_v7 = vadd.s32 4294967295, %v2980_v3  ;;  %v4619_v11 = vsub.s32 0, %v2980_v3  ;;  %s4421_s19 = scalar_lea.vmem %s4616_s6, %s2538_s16 }
  0x12   : > { %v3002_v8 = vld [vmem:[%s2989_s12] sm:$0xff]  ;;  %v3005_v9 = vld [vmem:[%s2989_s12 + $0x8] sm:$0xff]  ;;  %v3008_v10 = vld [vmem:[%s2989_s12 + $0x10] sm:$0xff]  ;;  %v510_v12 = vsub.s32 3, %v2980_v3  ;;  %v578_v13 = vsub.s32 6, %v2980_v3  ;;  %vm878_vm2 = vcmp.lt.s32.totalorder %v2980_v3, 7 }
  0x13   : > { %2693 = vmatpush3.bf16.msra.mxu0 %v2763_v2  ;;  %2747 = vmatpush3.bf16.msra.mxu1 %v2763_v2  ;;  %4700 = vst [vmem:[#allocation3_spill] sm:$0xff] %v2999_v7  ;;  %v3014_v14 = vld [vmem:[%s2989_s12 + $0x18] sm:$0xff]  ;;  %v3017_v15 = vld [vmem:[%s2989_s12 + $0x20] sm:$0xff]  ;;  %v3020_v16 = vld [vmem:[%s2989_s12 + $0x28] sm:$0xff]  ;;  %v329_v17 = vrot.slane %v3002_v8, 7  ;;  %v330_v18 = vrot.slane %v3008_v10, 7  ;;  %v3080_v45 = vrot.slane %v3053_v34, %v4619_v11 }
  0x14   : > { %2694 = vmatprep.subr.bf16.mxu0 %v2764_v4  ;;  %2740 = vmatprep.subr.bf16.mxu1 %v2764_v4  ;;  %v345_v19 = vrot.slane %v3005_v9, 7  ;;  %v3026_v20 = vld [vmem:[%s2989_s12 + $0x30] sm:$0xff]  ;;  %v3029_v21 = vld [vmem:[%s2989_s12 + $0x38] sm:$0xff]  ;;  %v3032_v22 = vld [vmem:[%s2989_s12 + $0x40] sm:$0xff]  ;;  %v331_v23 = vrot.slane %v3017_v15, 7  ;;  %v346_v24 = vrot.slane %v3014_v14, 7 }
  0x15   : > { %4701 = vst [vmem:[#allocation4_spill] sm:$0xff] %v3026_v20  ;;  %4702 = vst [vmem:[#allocation5_spill] sm:$0xff] %v3029_v21  ;;  %v347_v25 = vrot.slane %v3020_v16, 7  ;;  %v3038_v26 = vld [vmem:[%s2989_s12 + $0x48] sm:$0xff]  ;;  %v301_v27 = vld [vmem:[%s2989_s12 + $0x50] sm:$0xff]  ;;  %v332_v29 = vrot.slane %v3026_v20, 7 }
  0x16   : > { %4703 = vst [vmem:[#allocation6_spill] sm:$0xff] %v3032_v22  ;;  %4704 = vst [vmem:[#allocation7_spill] sm:$0xff] %v3038_v26  ;;  %v302_v28 = vld [vmem:[%s2989_s12 + $0x58] sm:$0xff]  ;;  %v333_v30 = vrot.slane %v3032_v22, 7  ;;  %v348_v31 = vrot.slane %v3029_v21, 7  ;;  %v362_v32 = vsel %vm361_vm0, %v329_v17, %v345_v19  ;;  %v334_v35 = vrot.slane %v301_v27, 7 }
  0x17   : > { %2695 = vmatpush3.bf16.msra.mxu0 %v2764_v4  ;;  %2748 = vmatpush3.bf16.msra.mxu1 %v2764_v4  ;;  %v3057_v36 = vsel %vm361_vm0, %v330_v18, %v346_v24  ;;  %v3061_v37 = vsel %vm361_vm0, %v331_v23, %v347_v25  ;;  %v378_v38 = vsel %vm361_vm0, %v345_v19, %v329_v17  ;;  %v349_v39 = vrot.slane %v3038_v26, 7  ;;  %v2768_v4 = vld [vmem:[%s4614_s4 + $0x30] sm:$0xff]   ;;  %s2491_s20 = sshll.u32 %s4830_s25, 1 }
  0x18   : > { %2696 = vmatprep.subr.bf16.mxu0 %v2765_v5  ;;  %2741 = vmatprep.subr.bf16.mxu1 %v2765_v5  ;;  %v350_v40 = vrot.slane %v302_v28, 7  ;;  %v3068_v41 = vsel %vm361_vm0, %v332_v29, %v348_v31  ;;  %v379_v42 = vsel %vm361_vm0, %v346_v24, %v330_v18  ;;  %v380_v43 = vsel %vm361_vm0, %v347_v25, %v331_v23  ;;  %s289_s23 = scalar_lea.vmem %s4617_s7, %s2491_s20 }
  0x19   : > { %v381_v44 = vsel %vm361_vm0, %v348_v31, %v332_v29  ;;  %vm396_vm1 = vcmp.ge.s32.totalorder %v2999_v7, 0  ;;  %4705 = vst [vmem:[#allocation8_spill] sm:$0xff] %v3080_v45  ;;  %v3084_v46 = vsel %vm361_vm0, %v333_v30, %v349_v39  ;;  %v382_v48 = vsel %vm361_vm0, %v349_v39, %v333_v30 }
  0x1a   : > { %v3088_v47 = vsel %vm361_vm0, %v334_v35, %v350_v40  ;;  %v408_v49 = vsel %vm396_vm1, %v378_v38, 0.0  ;;  %v383_v51 = vsel %vm361_vm0, %v350_v40, %v334_v35  ;;  %v410_v52 = vsel %vm396_vm1, %v379_v42, 0.0 }
  0x1b   : > { %2697 = vmatpush3.bf16.msra.mxu0 %v2765_v5  ;;  %2749 = vmatpush3.bf16.msra.mxu1 %v2765_v5  ;;  %4706 = vst [vmem:[#allocation9_spill] sm:$0xff] %v3088_v47  ;;  %v412_v53 = vsel %vm396_vm1, %v380_v43, 0.0  ;;  %v414_v54 = vsel %vm396_vm1, %v381_v44, 0.0  ;;  %v3107_v55 = vsel %vm396_vm1, %v382_v48, 0.0  ;;  %v3111_v56 = vsel %vm396_vm1, %v383_v51, 0.0 }
  0x1c   : > { %2698 = vmatprep.subr.bf16.mxu0 %v2766_v33  ;;  %2742 = vmatprep.subr.bf16.mxu1 %v2766_v33  ;;  %4707 = vst [vmem:[#allocation10_spill] sm:$0xff] %v3111_v56  ;;  %v444_v57 = vmul.f32 0.0, %v3080_v45  ;;  %v446_v58 = vmul.f32 %v3080_v45, %v408_v49  ;;  %v447_v59 = vmul.f32 %v3080_v45, %v362_v32  ;;  %v4618_v2 = vsub.s32 1, %v2980_v3 }
  0x1d   : > { %v448_v60 = vmul.f32 %v3080_v45, %v410_v52  ;;  %v449_v61 = vmul.f32 %v3080_v45, %v3057_v36  ;;  %v450_v62 = vmul.f32 %v3080_v45, %v412_v53  ;;  %v451_v63 = vmul.f32 %v3080_v45, %v3061_v37 }
  0x1e   : > { %v452_v0 = vmul.f32 %v3080_v45, %v414_v54  ;;  %v453_v1 = vmul.f32 %v3080_v45, %v3068_v41  ;;  %v454_v5 = vmul.f32 %v3080_v45, %v3107_v55  ;;  %v455_v17 = vmul.f32 %v3080_v45, %v3084_v46 }
  0x1f   : > { %2699 = vmatpush3.bf16.msra.mxu0 %v2766_v33  ;;  %2750 = vmatpush3.bf16.msra.mxu1 %v2766_v33  ;;  %v3136_v18 = vrot.slane %v3053_v34, %v510_v12  ;;  %v3142_v23 = vrot.slane %v3053_v34, %v578_v13  ;;  %v3147_v24 = vrot.slane %v3053_v34, %v4618_v2 }
  0x20   : > { %2700 = vmatprep.subr.bf16.mxu0 %v2767_v50  ;;  %2743 = vmatprep.subr.bf16.mxu1 %v2767_v50 }
  0x21   : > { %4708 = vst [vmem:[#allocation11_spill] sm:$0xff] %v3136_v18  ;;  %4709 = vst [vmem:[#allocation12_spill] sm:$0xff] %v3142_v23  ;;  %v512_v28 = vmul.f32 %v3136_v18, %v408_v49  ;;  %v513_v12 = vmul.f32 %v3136_v18, %v362_v32  ;;  %v514_v29 = vmul.f32 %v3136_v18, %v410_v52  ;;  %v648_v35 = vmul.f32 0.0, %v3147_v24  ;;  %v2769_v32 = vld [vmem:[%s4614_s4 + $0x38] sm:$0xff]  }
  0x22   : > { %v515_v30 = vmul.f32 %v3136_v18, %v3057_v36  ;;  %v516_v13 = vmul.f32 %v3136_v18, %v412_v53  ;;  %v517_v31 = vmul.f32 %v3136_v18, %v3061_v37  ;;  %v518_v33 = vmul.f32 %v3136_v18, %v414_v54 }
  0x23   : > { %2701 = vmatpush3.bf16.msra.mxu0 %v2767_v50  ;;  %2751 = vmatpush3.bf16.msra.mxu1 %v2767_v50  ;;  %v519_v38 = vmul.f32 %v3136_v18, %v3068_v41  ;;  %v520_v39 = vmul.f32 %v3136_v18, %v3107_v55  ;;  %v521_v40 = vmul.f32 %v3136_v18, %v3084_v46 }
  0x24   : > { %2702 = vmatprep.subr.bf16.mxu0 %v2768_v4  ;;  %v522_v42 = vmul.f32 %v3136_v18, %v3111_v56  ;;  %v523_v43 = vmul.f32 %v3136_v18, %v3088_v47  ;;  %v544_v44 = vadd.f32 %v512_v28, %v444_v57  ;;  %v545_v48 = vadd.f32 %v513_v12, %v444_v57 }
  0x25   : > { %v546_v49 = vadd.f32 %v514_v29, %v446_v58  ;;  %2744 = vmatprep.subr.bf16.mxu1 %v2768_v4  ;;  %v547_v50 = vadd.f32 %v515_v30, %v447_v59  ;;  %v548_v51 = vadd.f32 %v516_v13, %v448_v60  ;;  %v549_v2 = vadd.f32 %v517_v31, %v449_v61 }
  0x26   : > { %v550_v11 = vadd.f32 %v518_v33, %v450_v62  ;;  %v551_v27 = vadd.f32 %v519_v38, %v451_v63  ;;  %v3174_v25 = vadd.f32 %v520_v39, %v452_v0  ;;  %v3176_v19 = vadd.f32 %v521_v40, %v453_v1 }
  0x27   : > { %2703 = vmatpush3.bf16.msra.mxu0 %v2768_v4  ;;  %v3178_v26 = vadd.f32 %v522_v42, %v454_v5  ;;  %v3180_v56 = vadd.f32 %v523_v43, %v455_v17  ;;  %v580_v28 = vmul.f32 %v3142_v23, %v410_v52  ;;  %v581_v57 = vmul.f32 %v3142_v23, %v3057_v36 }
  0x28   : > { %4710 = vst [vmem:[#allocation13_spill] sm:$0xff] %v3174_v25  ;;  %4711 = vst [vmem:[#allocation14_spill] sm:$0xff] %v3176_v19  ;;  %2704 = vmatprep.subr.bf16.mxu0 %v2769_v32  ;;  %v582_v58 = vmul.f32 %v3142_v23, %v412_v53  ;;  %v583_v59 = vmul.f32 %v3142_v23, %v3061_v37  ;;  %v584_v60 = vmul.f32 %v3142_v23, %v414_v54 }
  0x29   : > { %4712 = vst [vmem:[#allocation15_spill] sm:$0xff] %v3178_v26  ;;  %4713 = vst [vmem:[#allocation16_spill] sm:$0xff] %v3180_v56  ;;  %v585_v61 = vmul.f32 %v3142_v23, %v3068_v41  ;;  %v586_v62 = vmul.f32 %v3142_v23, %v3107_v55  ;;  %2752 = vmatpush3.bf16.msra.mxu1 %v2768_v4  ;;  %v587_v52 = vmul.f32 %v3142_v23, %v3084_v46 }
  0x2a   : > { %v612_v63 = vadd.f32 %v580_v28, %v544_v44  ;;  %v613_v0 = vadd.f32 %v581_v57, %v545_v48  ;;  %v614_v36 = vadd.f32 %v582_v58, %v546_v49  ;;  %2745 = vmatprep.subr.bf16.mxu1 %v2769_v32  ;;  %v615_v53 = vadd.f32 %v583_v59, %v547_v50 }
  0x2b   : > { %2705 = vmatpush3.bf16.msra.mxu0 %v2769_v32  ;;  %v616_v1 = vadd.f32 %v584_v60, %v548_v51  ;;  %v617_v37 = vadd.f32 %v585_v61, %v549_v2  ;;  %v618_v5 = vadd.f32 %v586_v62, %v550_v11  ;;  %v619_v54 = vadd.f32 %v587_v52, %v551_v27  ;;  %v3247_v52 = vld [vmem:[%s4611_s1 + $0x8] ss:$0 sm:$0xff] }
  0x2c   : > { %v649_v41 = vmul.f32 %v3147_v24, %v3002_v8  ;;  %v650_v55 = vmul.f32 %v3147_v24, %v3005_v9  ;;  %v651_v4 = vmul.f32 %v3147_v24, %v3008_v10  ;;  %v652_v46 = vmul.f32 %v3147_v24, %v3014_v14  ;;  %4720 = vst [vmem:[#allocation21_spill] sm:$0xff] %v3247_v52 }
  0x2d   : > { %v653_v17 = vmul.f32 %v3147_v24, %v3017_v15  ;;  %v654_v2 = vmul.f32 %v3147_v24, %v3020_v16  ;;  %v679_v11 = vadd.f32 %v648_v35, %v612_v63  ;;  %2753 = vmatpush3.bf16.msra.mxu1 %v2769_v32  ;;  %v680_v27 = vadd.f32 %v648_v35, %v613_v0 }
  0x2e   : > { %v681_v12 = vadd.f32 %v649_v41, %v614_v36  ;;  %v682_v29 = vadd.f32 %v650_v55, %v615_v53  ;;  %v3207_v30 = vadd.f32 %v651_v4, %v616_v1  ;;  %v3209_v13 = vadd.f32 %v652_v46, %v617_v37 }
  0x2f   : > { %v3211_v31 = vadd.f32 %v653_v17, %v618_v5  ;;  %v3213_v33 = vadd.f32 %v654_v2, %v619_v54  ;;  %v4716_v38 = vsub.s32 4, %v2980_v3  ;;  %v4718_v40 = vsub.s32 7, %v2980_v3  ;;  %v1487_v54 = vld [vmem:[%s4613_s3] sm:$0x3] }
  0x30   : > { %v847_v35 = vrot.slane %v3008_v10, 1  ;;  %v862_v42 = vrot.slane %v3005_v9, 1  ;;  %v863_v43 = vrot.slane %v3014_v14, 1  ;;  %v3251_v63 = vadd.s32 1, %v2995_v6 }
  0x31   : > { %4714 = vst [vmem:[#allocation17_spill] sm:$0xff] %v3211_v31  ;;  %4715 = vst [vmem:[#allocation18_spill] sm:$0xff] %v3213_v33  ;;  %v3218_v39 = vrot.slane %v3053_v34, %v4716_v38  ;;  %v3223_v32 = vrot.slane %v3053_v34, %v4718_v40  ;;  %v959_v0 = vsub.s32 2, %v2980_v3  ;;  %v1027_v36 = vsub.s32 5, %v2980_v3 }
  0x32   : > { %4721 = vst [vmem:[#allocation22_spill] sm:$0xff] %v3251_v63  ;;  %v4722_v41 = vrot.slane %v3002_v8, 1  ;;  %v880_v6 = vsel %vm878_vm2, %v847_v35, %v863_v43  ;;  %v896_v17 = vsel %vm878_vm2, %v863_v43, %v847_v35  ;;  %vm916_vm3 = vcmp.lt.s32.totalorder %v3251_v63, 16 }
  0x33   : > { %4717 = vst [vmem:[#allocation19_spill] sm:$0xff] %v3218_v39  ;;  %4719 = vst [vmem:[#allocation20_spill] sm:$0xff] %v3223_v32  ;;  %v715_v44 = vmul.f32 %v3218_v39, %v3002_v8  ;;  %v716_v48 = vmul.f32 %v3218_v39, %v3005_v9  ;;  %v717_v49 = vmul.f32 %v3218_v39, %v3008_v10  ;;  %v4726_v38 = vsub.s32 0, %v2980_v3 }
  0x34   : > { %v718_v50 = vmul.f32 %v3218_v39, %v3014_v14  ;;  %v783_v51 = vmul.f32 %v3223_v32, %v3008_v10  ;;  %v784_v28 = vmul.f32 %v3223_v32, %v3014_v14  ;;  %v785_v57 = vmul.f32 %v3223_v32, %v3017_v15 }
  0x35   : > { %v786_v58 = vmul.f32 %v3223_v32, %v3020_v16  ;;  %v747_v59 = vadd.f32 %v715_v44, %v679_v11  ;;  %v748_v60 = vadd.f32 %v716_v48, %v680_v27  ;;  %v749_v61 = vadd.f32 %v717_v49, %v681_v12 }
  0x36   : > { %v750_v62 = vadd.f32 %v718_v50, %v682_v29  ;;  %v879_v55 = vsel %vm878_vm2, %v4722_v41, %v862_v42  ;;  %v4723_v4 = vmov %v4722_v41  ;;  %v3272_v2 = vrot.slane %v3053_v34, %v959_v0 }
  0x37   : > { %v814_v53 = vadd.f32 %v783_v51, %v747_v59  ;;  %v815_v1 = vadd.f32 %v784_v28, %v748_v60  ;;  %v816_v37 = vadd.f32 %v785_v57, %v749_v61  ;;  %v895_v46 = vsel %vm878_vm2, %v862_v42, %v4723_v4 }
  0x38   : > { %v817_v5 = vadd.f32 %v786_v58, %v750_v62  ;;  %4724 = vst [vmem:[#allocation23_spill] sm:$0xff] %v3272_v2  ;;  %v3275_v11 = vrot.slane %v3053_v34, %v1027_v36  ;;  %v1097_v27 = vmul.f32 %v3247_v52, %v880_v6  ;;  %v926_v12 = vsel %vm916_vm3, %v895_v46, 0.0 }
  0x39   : > { %v928_v29 = vsel %vm916_vm3, %v896_v17, 0.0  ;;  %v3284_v40 = vrot.slane %v1487_v54, %v4726_v38  ;;  %v4727_v35 = vsub.s32 1, %v2980_v3  ;;  %v961_v43 = vmul.f32 0.0, %v3272_v2 }
  0x3a   : > { %4725 = vst [vmem:[#allocation24_spill] sm:$0xff] %v3275_v11  ;;  %v963_v34 = vmul.f32 %v3272_v2, %v879_v55  ;;  %v964_v44 = vmul.f32 %v3272_v2, %v926_v12  ;;  %v965_v48 = vmul.f32 %v3272_v2, %v880_v6  ;;  %v966_v49 = vmul.f32 %v3272_v2, %v928_v29 }
  0x3b   : > { %v3288_v42 = vrot.slane %v1487_v54, %v4727_v35  ;;  %v1029_v50 = vmul.f32 %v3275_v11, %v879_v55  ;;  %v1030_v51 = vmul.f32 %v3275_v11, %v926_v12  ;;  %v1031_v28 = vmul.f32 %v3275_v11, %v880_v6 }
  0x3c   : > { %v993_v57 = vadd.f32 %v961_v43, %v814_v53  ;;  %v994_v58 = vadd.f32 %v961_v43, %v815_v1  ;;  %v995_v59 = vadd.f32 %v963_v34, %v816_v37  ;;  %v996_v60 = vadd.f32 %v964_v44, %v817_v5  ;;  %v3307_v53 = vld [vmem:[%s4612_s2] ss:$0 sm:$0xff] }
  0x3d   : > { %v1032_v61 = vmul.f32 %v3275_v11, %v928_v29  ;;  %v1098_v62 = vmul.f32 %v3247_v52, %v928_v29  ;;  %v848_v0 = vrot.slane %v3017_v15, 1  ;;  %v864_v36 = vrot.slane %v3020_v16, 1  ;;  %4728 = vst [vmem:[#allocation25_spill] sm:$0xff] %v3307_v53 }
  0x3e   : > { %v1061_v54 = vadd.f32 %v1029_v50, %v993_v57  ;;  %v1062_v41 = vadd.f32 %v1030_v51, %v994_v58  ;;  %v1063_v4 = vadd.f32 %v1031_v28, %v995_v59  ;;  %v719_v55 = vmul.f32 %v3218_v39, %v3017_v15 }
  0x3f   : > { %v1064_v1 = vadd.f32 %v1032_v61, %v996_v60  ;;  %v3311_v37 = vsel %vm878_vm2, %v848_v0, %v864_v36  ;;  %v897_v5 = vsel %vm878_vm2, %v864_v36, %v848_v0  ;;  %v720_v6 = vmul.f32 %v3218_v39, %v3020_v16 }
  0x40   : > { %4729 = vst [vmem:[#allocation26_spill] sm:$0xff] %v3311_v37  ;;  %v1129_v46 = vadd.f32 %v1097_v27, %v1061_v54  ;;  %v1130_v17 = vadd.f32 %v1098_v62, %v1062_v41  ;;  %v3319_v12 = vsel %vm916_vm3, %v897_v5, 0.0  ;;  %v1099_v29 = vmul.f32 %v3247_v52, %v3311_v37 }
  0x41   : > { %4730 = vst [vmem:[#allocation27_spill] sm:$0xff] %v3319_v12  ;;  %v1100_v38 = vmul.f32 %v3247_v52, %v3319_v12  ;;  %v751_v35 = vadd.f32 %v719_v55, %v3207_v30  ;;  %v752_v43 = vadd.f32 %v720_v6, %v3209_v13  ;;  %v787_v34 = vmul.f32 %v3223_v32, %v3026_v20 }
  0x42   : > { %v1167_v27 = vadd.f32 %v3307_v53, %v1129_v46  ;;  %v1168_v44 = vadd.f32 %v3307_v53, %v1130_v17  ;;  %v1131_v50 = vadd.f32 %v1099_v29, %v1063_v4  ;;  %v788_v51 = vmul.f32 %v3223_v32, %v3029_v21 }
  0x43   : > { %v1132_v28 = vadd.f32 %v1100_v38, %v1064_v1  ;;  %v818_v57 = vadd.f32 %v787_v34, %v751_v35  ;;  %v849_v58 = vrot.slane %v3026_v20, 1  ;;  %v865_v59 = vrot.slane %v3029_v21, 1 }
  0x44   : > { %v3335_v30 = vmul.f32 0.5, %v1167_v27  ;;  %v3337_v13 = vmul.f32 0.5, %v1168_v44  ;;  %v1231_v60 = vmul.f32 %v1167_v27, %v1167_v27  ;;  %v1232_v61 = vmul.f32 %v1168_v44, %v1168_v44 }
  0x45   : > { %v1169_v62 = vadd.f32 %v3307_v53, %v1131_v50  ;;  %v1170_v0 = vadd.f32 %v3307_v53, %v1132_v28  ;;  %v819_v36 = vadd.f32 %v788_v51, %v752_v43  ;;  %v3343_v54 = vsel %vm878_vm2, %v849_v58, %v865_v59  ;;  %v3360_v28 = vld [vmem:[%s2989_s12 + $0x60] sm:$0xff] }
  0x46   : > { %4731 = vst [vmem:[#allocation28_spill] sm:$0xff] %v3343_v54  ;;  %v1263_v41 = vmul.f32 %v1231_v60, %v1167_v27  ;;  %v1264_v4 = vmul.f32 %v1232_v61, %v1168_v44  ;;  %v898_v55 = vsel %vm878_vm2, %v865_v59, %v849_v58  ;;  %v997_v1 = vadd.f32 %v965_v48, %v818_v57  ;;  %v3363_v57 = vld [vmem:[%s2989_s12 + $0x70] sm:$0xff]  ;;  %v3370_v61 = vld [vmem:[%s2989_s12 + $0x80] sm:$0xff] }
  0x47   : > { %v3347_v5 = vmul.f32 0.5, %v1169_v62  ;;  %v3349_v6 = vmul.f32 0.5, %v1170_v0  ;;  %v1233_v46 = vmul.f32 %v1169_v62, %v1169_v62  ;;  %v1234_v17 = vmul.f32 %v1170_v0, %v1170_v0  ;;  %4733 = vst [vmem:[#allocation30_spill] sm:$0xff] %v3360_v28  ;;  %4734 = vst [vmem:[#allocation31_spill] sm:$0xff] %v3370_v61 }
  0x48   : > { %v1295_v29 = vmul.f32 0.044715, %v1263_v41  ;;  %v1296_v38 = vmul.f32 0.044715, %v1264_v4  ;;  %v3353_v35 = vsel %vm916_vm3, %v898_v55, 0.0  ;;  %v998_v43 = vadd.f32 %v966_v49, %v819_v36 }
  0x49   : > { %4732 = vst [vmem:[#allocation29_spill] sm:$0xff] %v3353_v35  ;;  %v1265_v34 = vmul.f32 %v1233_v46, %v1169_v62  ;;  %v1266_v50 = vmul.f32 %v1234_v17, %v1170_v0  ;;  %v1033_v48 = vmul.f32 %v3275_v11, %v3311_v37  ;;  %v1034_v51 = vmul.f32 %v3275_v11, %v3319_v12  ;;  %v3373_v46 = vld [vmem:[%s2989_s12 + $0x90] sm:$0xff] }
  0x4a   : > { %v1327_v58 = vadd.f32 %v1295_v29, %v1167_v27  ;;  %v1328_v59 = vadd.f32 %v1296_v38, %v1168_v44  ;;  %v1101_v60 = vmul.f32 %v3247_v52, %v3343_v54  ;;  %v1102_v49 = vmul.f32 %v3247_v52, %v3353_v35  ;;  %4735 = vst [vmem:[#allocation32_spill] sm:$0xff] %v3373_v46  ;;  %v3376_v27 = vld [vmem:[%s2989_s12 + $0xa0] sm:$0xff] }
  0x4b   : > { %v1297_v36 = vmul.f32 0.044715, %v1265_v34  ;;  %v1298_v41 = vmul.f32 0.044715, %v1266_v50  ;;  %v1065_v4 = vadd.f32 %v1033_v48, %v997_v1  ;;  %v1066_v55 = vadd.f32 %v1034_v51, %v998_v43  ;;  %4736 = vst [vmem:[#allocation33_spill] sm:$0xff] %v3376_v27  ;;  %v3381_v1 = vld [vmem:[%s2989_s12 + $0x68] sm:$0xff] }
  0x4c   : > { %v1359_v44 = vmul.f32 0.7978846, %v1327_v58  ;;  %v1360_v17 = vmul.f32 0.7978846, %v1328_v59  ;;  %v335_v29 = vrot.slane %v3360_v28, 7  ;;  %v336_v38 = vrot.slane %v3363_v57, 7 }
  0x4d   : > { %v1329_v56 = vadd.f32 %v1297_v36, %v1169_v62  ;;  %v1330_v26 = vadd.f32 %v1298_v41, %v1170_v0  ;;  %v1133_v19 = vadd.f32 %v1101_v60, %v1065_v4  ;;  %v1134_v34 = vadd.f32 %v1102_v49, %v1066_v55  ;;  %4737 = vst [vmem:[#allocation34_spill] sm:$0xff] %v3381_v1  ;;  %v3384_v43 = vld [vmem:[%s2989_s12 + $0xb0] sm:$0xff]  ;;  %v3387_v50 = vld [vmem:[%s2989_s12 + $0xc0] sm:$0xff]  ;;  %v3390_v48 = vld [vmem:[%s2989_s12 + $0x78] sm:$0xff] }
  0x4e   : > { %4738 = vst [vmem:[#allocation35_spill] sm:$0xff] %v3384_v43  ;;  %4739 = vst [vmem:[#allocation36_spill] sm:$0xff] %v3387_v50  ;;  %2770 = vtanh.f32 %v1359_v44  ;;  %v337_v51 = vrot.slane %v3370_v61, 7  ;;  %v338_v62 = vrot.slane %v3373_v46, 7  ;;  %v339_v0 = vrot.slane %v3376_v27, 7  ;;  %v3397_v49 = vld [vmem:[%s2989_s12 + $0x88] sm:$0xff] }
  0x4f   : > { %2772 = vtanh.f32 %v1360_v17  ;;  %v1361_v58 = vmul.f32 0.7978846, %v1329_v56  ;;  %v1362_v59 = vmul.f32 0.7978846, %v1330_v26  ;;  %v1171_v60 = vadd.f32 %v3307_v53, %v1133_v19  ;;  %4740 = vst [vmem:[#allocation37_spill] sm:$0xff] %v3397_v49  ;;  %v3401_v41 = vld [vmem:[%s2989_s12 + $0x98] sm:$0xff] }
  0x50   : > { %v1172_v36 = vadd.f32 %v3307_v53, %v1134_v34  ;;  %4741 = vst [vmem:[#allocation38_spill] sm:$0xff] %v3401_v41  ;;  %v3404_v4 = vld [vmem:[%s2989_s12 + $0xa8] sm:$0xff]  ;;  %v3407_v55 = vld [vmem:[%s2989_s12 + $0xb8] sm:$0xff]  ;;  %v340_v44 = vrot.slane %v3384_v43, 7  ;;  %v341_v25 = vrot.slane %v3387_v50, 7  ;;  %v351_v17 = vrot.slane %v3381_v1, 7 }
  0x51   : > { %4742 = vst [vmem:[#allocation39_spill] sm:$0xff] %v3404_v4  ;;  %4743 = vst [vmem:[#allocation40_spill] sm:$0xff] %v3407_v55  ;;  %2774 = vtanh.f32 %v1361_v58  ;;  %v3412_v26 = vmul.f32 0.5, %v1171_v60  ;;  %v1235_v56 = vmul.f32 %v1171_v60, %v1171_v60  ;;  %v3415_v19 = vld [vmem:[%s2989_s12 + $0xc8] sm:$0xff]  ;;  %v352_v34 = vrot.slane %v3390_v48, 7 }
  0x52   : > { %4744 = vst [vmem:[#allocation41_spill] sm:$0xff] %v3415_v19  ;;  %2776 = vtanh.f32 %v1362_v59  ;;  %v3418_v47 = vmul.f32 0.5, %v1172_v36  ;;  %v1236_v53 = vmul.f32 %v1172_v36, %v1172_v36  ;;  %v353_v35 = vrot.slane %v3397_v49, 7 }
  0x53   : > { %v1267_v54 = vmul.f32 %v1235_v56, %v1171_v60  ;;  %v354_v43 = vrot.slane %v3401_v41, 7  ;;  %v355_v50 = vrot.slane %v3404_v4, 7  ;;  %v356_v58 = vrot.slane %v3407_v55, 7 }
  0x54   : > { %v1268_v12 = vmul.f32 %v1236_v53, %v1172_v36  ;;  %v357_v37 = vrot.slane %v3415_v19, 7  ;;  %v3427_v22 = vsel %vm361_vm0, %v335_v29, %v351_v17  ;;  %v3431_v59 = vsel %vm361_vm0, %v336_v38, %v352_v34 }
  0x55   : > { %v1299_v33 = vmul.f32 0.044715, %v1267_v54  ;;  %v3435_v56 = vsel %vm361_vm0, %v337_v51, %v353_v35  ;;  %v3439_v31 = vsel %vm361_vm0, %v338_v62, %v354_v43  ;;  %v3443_v53 = vsel %vm361_vm0, %v339_v0, %v355_v50 }
  0x56   : > { %v1300_v19 = vmul.f32 0.044715, %v1268_v12  ;;  %v3447_v55 = vsel %vm361_vm0, %v340_v44, %v356_v58  ;;  %v3451_v54 = vsel %vm361_vm0, %v341_v25, %v357_v37  ;;  %v384_v52 = vsel %vm361_vm0, %v351_v17, %v335_v29 }
  0x57   : > { %4745 = vst [vmem:[#allocation42_spill] sm:$0xff] %v3451_v54  ;;  %v1331_v11 = vadd.f32 %v1299_v33, %v1171_v60  ;;  %v385_v2 = vsel %vm361_vm0, %v352_v34, %v336_v38  ;;  %v386_v63 = vsel %vm361_vm0, %v353_v35, %v337_v51  ;;  %v387_v12 = vsel %vm361_vm0, %v354_v43, %v338_v62 }
  0x58   : > { %v2771_v21 = vpop.eup %2770  ;;  %v1332_v20 = vadd.f32 %v1300_v19, %v1172_v36  ;;  %v388_v4 = vsel %vm361_vm0, %v355_v50, %v339_v0  ;;  %v389_v27 = vsel %vm361_vm0, %v356_v58, %v340_v44  ;;  %v390_v33 = vsel %vm361_vm0, %v357_v37, %v341_v25 }
  0x59   : > { %v2773_v29 = vpop.eup %2772  ;;  %v1423_v60 = vadd.f32 1.0, %v2771_v21  ;;  %v1363_v38 = vmul.f32 0.7978846, %v1331_v11  ;;  %v3469_v35 = vsel %vm396_vm1, %v384_v52, 0.0  ;;  %v3473_v43 = vsel %vm396_vm1, %v385_v2, 0.0 }
  0x5a   : > { %v1424_v51 = vadd.f32 1.0, %v2773_v29  ;;  %v1364_v62 = vmul.f32 0.7978846, %v1332_v20  ;;  %v3477_v50 = vsel %vm396_vm1, %v386_v63, 0.0  ;;  %v3481_v25 = vsel %vm396_vm1, %v387_v12, 0.0 }
  0x5b   : > { %v2775_v21 = vpop.eup %2774  ;;  %v1455_v11 = vmul.f32 %v1423_v60, %v3335_v30  ;;  %2778 = vtanh.f32 %v1363_v38  ;;  %v3486_v52 = vsel %vm396_vm1, %v388_v4, 0.0  ;;  %v3490_v2 = vsel %vm396_vm1, %v389_v27, 0.0 }
  0x5c   : > { %v2777_v20 = vpop.eup %2776  ;;  %v1456_v63 = vmul.f32 %v1424_v51, %v3337_v13  ;;  %v1425_v37 = vadd.f32 1.0, %v2775_v21  ;;  %2780 = vtanh.f32 %v1364_v62  ;;  %v3495_v0 = vsel %vm396_vm1, %v390_v33, 0.0 }
  0x5d   : > { %4746 = vst [vmem:[#allocation43_spill] sm:$0xff] %v3495_v0  ;;  %v1509_v30 = vmul.f32 %v3284_v40, %v1455_v11  ;;  %v1426_v36 = vadd.f32 1.0, %v2777_v20  ;;  %v458_v4 = vmul.f32 %v3080_v45, %v3469_v35  ;;  %v459_v44 = vmul.f32 %v3080_v45, %v3427_v22 }
  0x5e   : > { %v1510_v27 = vmul.f32 %v3284_v40, %v1456_v63  ;;  %v1457_v17 = vmul.f32 %v1425_v37, %v3347_v5  ;;  %v460_v13 = vmul.f32 %v3080_v45, %v3473_v43  ;;  %v461_v19 = vmul.f32 %v3080_v45, %v3431_v59 }
  0x5f   : > { %v1545_v34 = vadd.f32 %v3288_v42, %v1509_v30  ;;  %v1458_v58 = vmul.f32 %v1426_v36, %v3349_v6  ;;  %v462_v12 = vmul.f32 %v3080_v45, %v3477_v50  ;;  %v463_v33 = vmul.f32 %v3080_v45, %v3435_v56 }
  0x60   : > { %v1546_v29 = vadd.f32 %v3288_v42, %v1510_v27  ;;  %v1511_v5 = vmul.f32 %v3284_v40, %v1457_v17  ;;  %v464_v60 = vmul.f32 %v3080_v45, %v3481_v25  ;;  %v465_v38 = vmul.f32 %v3080_v45, %v3439_v31 }
  0x61   : > { %v1577_v51 = vadd.f32 %v1545_v34, %v3002_v8  ;;  %v1512_v6 = vmul.f32 %v3284_v40, %v1458_v58  ;;  %v466_v62 = vmul.f32 %v3080_v45, %v3486_v52  ;;  %v467_v21 = vmul.f32 %v3080_v45, %v3443_v53 }
  0x62   : > { %v1578_v11 = vadd.f32 %v1546_v29, %v3005_v9  ;;  %v1547_v20 = vadd.f32 %v3288_v42, %v1511_v5  ;;  %v3530_v63 = vmul.f32 %v3080_v45, %v3490_v2  ;;  %v3534_v37 = vmul.f32 %v3080_v45, %v3447_v55 }
  0x63   : > { %v1548_v8 = vadd.f32 %v3288_v42, %v1512_v6  ;;  %v3539_v30 = vmul.f32 %v3136_v18, %v3469_v35  ;;  %v3543_v36 = vmul.f32 %v3136_v18, %v3427_v22  ;;  %v526_v9 = vmul.f32 %v3136_v18, %v3473_v43 }
  0x64   : > { %4747 = vst [vmem:[#allocation44_spill] sm:$0xff] %v3530_v63  ;;  %4748 = vst [vmem:[#allocation45_spill] sm:$0xff] %v3534_v37  ;;  %v1609_v27 = vpack.c.bf16 %v1578_v11, %v1577_v51  ;;  %v1579_v17 = vadd.f32 %v1547_v20, %v3008_v10  ;;  %v527_v34 = vmul.f32 %v3136_v18, %v3431_v59 }
  0x65   : > { %4749 = vst [vmem:[#allocation46_spill] sm:$0xff] %v3539_v30  ;;  %4750 = vst [vmem:[#allocation47_spill] sm:$0xff] %v3543_v36  ;;  %v528_v58 = vmul.f32 %v3136_v18, %v3477_v50  ;;  %v2779_v29 = vpop.eup %2778  ;;  %v1580_v5 = vadd.f32 %v1548_v8, %v3014_v14  ;;  %v529_v6 = vmul.f32 %v3136_v18, %v3435_v56 }
  0x66   : > { %v530_v37 = vmul.f32 %v3136_v18, %v3481_v25  ;;  %v531_v51 = vmul.f32 %v3136_v18, %v3439_v31  ;;  %v2781_v11 = vpop.eup %2780  ;;  %2706 = vmatprep.mubr.bf16.mxu0 %v1609_v27  ;;  %v1427_v10 = vadd.f32 1.0, %v2779_v29  ;;  %v532_v20 = vmul.f32 %v3136_v18, %v3486_v52 }
  0x67   : > { %v533_v63 = vmul.f32 %v3136_v18, %v3443_v53  ;;  %v534_v14 = vmul.f32 %v3136_v18, %v3490_v2  ;;  %v1610_v8 = vpack.c.bf16 %v1580_v5, %v1579_v17  ;;  %v1428_v7 = vadd.f32 1.0, %v2781_v11 }
  0x68   : > { %v535_v36 = vmul.f32 %v3136_v18, %v3447_v55  ;;  %v558_v30 = vadd.f32 %v526_v9, %v458_v4  ;;  %v1459_v45 = vmul.f32 %v1427_v10, %v3412_v26  ;;  %v559_v3 = vadd.f32 %v527_v34, %v459_v44  ;;  %v4757_v9 = vld [vmem:[#allocation19_spill] sm:$0xff]  ;;  %v4786_v18 = vld [vmem:[#allocation25_spill] sm:$0xff] }
  0x69   : > { %v560_v27 = vadd.f32 %v528_v58, %v460_v13  ;;  %v561_v29 = vadd.f32 %v529_v6, %v461_v19  ;;  %2707 = vmatmul.mubr.bf16.vlgmr.msra.gmra.mrb[0].mxu0 %v1610_v8  ;;  %v1460_v32 = vmul.f32 %v1428_v7, %v3418_v47  ;;  %v562_v41 = vadd.f32 %v530_v37, %v462_v12 }
  0x6a   : > { %v563_v46 = vadd.f32 %v531_v51, %v463_v33  ;;  %v564_v39 = vadd.f32 %v532_v20, %v464_v60  ;;  %v1513_v49 = vmul.f32 %v3284_v40, %v1459_v45  ;;  %v565_v61 = vadd.f32 %v533_v63, %v465_v38 }
  0x6b   : > { %v566_v17 = vadd.f32 %v534_v14, %v466_v62  ;;  %v567_v5 = vadd.f32 %v535_v36, %v467_v21  ;;  %v1514_v11 = vmul.f32 %v3284_v40, %v1460_v32  ;;  %v3573_v4 = vmul.f32 %v3142_v23, %v3469_v35 }
  0x6c   : > { %v3577_v26 = vmul.f32 %v3142_v23, %v3427_v22  ;;  %v3581_v7 = vmul.f32 %v3142_v23, %v3473_v43  ;;  %v1549_v47 = vadd.f32 %v3288_v42, %v1513_v49  ;;  %v3586_v45 = vmul.f32 %v3142_v23, %v3431_v59 }
  0x6d   : > { %v594_v32 = vmul.f32 %v3142_v23, %v3477_v50  ;;  %v595_v35 = vmul.f32 %v3142_v23, %v3435_v56  ;;  %v1550_v44 = vadd.f32 %v3288_v42, %v1514_v11  ;;  %v596_v22 = vmul.f32 %v3142_v23, %v3481_v25 }
  0x6e   : > { %4751 = vst [vmem:[#allocation48_spill] sm:$0xff] %v3581_v7  ;;  %4752 = vst [vmem:[#allocation49_spill] sm:$0xff] %v3586_v45  ;;  %v597_v43 = vmul.f32 %v3142_v23, %v3439_v31  ;;  %v598_v49 = vmul.f32 %v3142_v23, %v3486_v52  ;;  %v1581_v59 = vadd.f32 %v1549_v47, %v3017_v15 }
  0x6f   : > { %v599_v13 = vmul.f32 %v3142_v23, %v3443_v53  ;;  %v600_v50 = vmul.f32 %v3142_v23, %v3490_v2  ;;  %v601_v56 = vmul.f32 %v3142_v23, %v3447_v55  ;;  %v1582_v19 = vadd.f32 %v1550_v44, %v3020_v16 }
  0x70   : > { %v602_v25 = vmul.f32 %v3142_v23, %v3495_v0  ;;  %v603_v31 = vmul.f32 %v3142_v23, %v3451_v54  ;;  %v626_v52 = vadd.f32 %v594_v32, %v558_v30  ;;  %v627_v12 = vadd.f32 %v595_v35, %v559_v3  ;;  %v4760_v32 = vld [vmem:[#allocation20_spill] sm:$0xff]  ;;  %v4782_v54 = vld [vmem:[#allocation26_spill] sm:$0xff] }
  0x71   : > { %v628_v15 = vadd.f32 %v596_v22, %v560_v27  ;;  %v629_v33 = vadd.f32 %v597_v43, %v561_v29  ;;  %v630_v60 = vadd.f32 %v598_v49, %v562_v41  ;;  %v1611_v53 = vpack.c.bf16 %v1582_v19, %v1581_v59  ;;  %v4756_v41 = vld [vmem:[#allocation37_spill] sm:$0xff]  ;;  %v4758_v27 = vld [vmem:[#allocation32_spill] sm:$0xff] }
  0x72   : > { %v631_v38 = vadd.f32 %v599_v13, %v563_v46  ;;  %v3611_v62 = vadd.f32 %v600_v50, %v564_v39  ;;  %v3613_v2 = vadd.f32 %v601_v56, %v565_v61  ;;  %v3615_v55 = vadd.f32 %v602_v25, %v566_v17  ;;  %v4755_v46 = vld [vmem:[#allocation31_spill] sm:$0xff]  ;;  %v4759_v17 = vld [vmem:[#allocation38_spill] sm:$0xff]  ;;  %v4761_v56 = vld [vmem:[#allocation33_spill] sm:$0xff] }
  0x73   : > { %v3617_v16 = vadd.f32 %v603_v31, %v567_v5  ;;  %v661_v21 = vmul.f32 %v3147_v24, %v3360_v28  ;;  %v662_v63 = vmul.f32 %v3147_v24, %v3381_v1  ;;  %2710 = vmatprep.mubr.bf16.mxu0 %v1611_v53  ;;  %v663_v3 = vmul.f32 %v3147_v24, %v3363_v57  ;;  %v4762_v25 = vld [vmem:[#allocation39_spill] sm:$0xff] }
  0x74   : > { %4753 = vst [vmem:[#allocation50_spill] sm:$0xff] %v3615_v55  ;;  %v664_v39 = vmul.f32 %v3147_v24, %v3390_v48  ;;  %v665_v61 = vmul.f32 %v3147_v24, %v4755_v46  ;;  %v666_v37 = vmul.f32 %v3147_v24, %v4756_v41  ;;  %v729_v34 = vmul.f32 %v4757_v9, %v3363_v57 }
  0x75   : > { %4754 = vst [vmem:[#allocation51_spill] sm:$0xff] %v3617_v16  ;;  %v693_v30 = vadd.f32 %v661_v21, %v626_v52  ;;  %v694_v36 = vadd.f32 %v662_v63, %v627_v12  ;;  %v730_v58 = vmul.f32 %v4757_v9, %v3390_v48  ;;  %v695_v6 = vadd.f32 %v663_v3, %v628_v15 }
  0x76   : > { %v696_v51 = vadd.f32 %v664_v39, %v629_v33  ;;  %v697_v10 = vadd.f32 %v665_v61, %v630_v60  ;;  %v698_v20 = vadd.f32 %v666_v37, %v631_v38  ;;  %v731_v14 = vmul.f32 %v4757_v9, %v4755_v46 }
  0x77   : > { %v732_v8 = vmul.f32 %v4757_v9, %v4756_v41  ;;  %v733_v29 = vmul.f32 %v4757_v9, %v4758_v27  ;;  %v734_v5 = vmul.f32 %v4757_v9, %v4759_v17  ;;  %v761_v11 = vadd.f32 %v729_v34, %v693_v30  ;;  %v4764_v34 = vld [vmem:[#allocation5_spill] sm:$0xff] }
  0x78   : > { %v762_v47 = vadd.f32 %v730_v58, %v694_v36  ;;  %v797_v35 = vmul.f32 %v4760_v32, %v4755_v46  ;;  %v798_v44 = vmul.f32 %v4760_v32, %v4756_v41  ;;  %v763_v22 = vadd.f32 %v731_v14, %v695_v6  ;;  %v4763_v36 = vld [vmem:[#allocation4_spill] sm:$0xff] }
  0x79   : > { %v764_v43 = vadd.f32 %v732_v8, %v696_v51  ;;  %v765_v49 = vadd.f32 %v733_v29, %v697_v10  ;;  %v766_v59 = vadd.f32 %v734_v5, %v698_v20  ;;  %v799_v13 = vmul.f32 %v4760_v32, %v4758_v27 }
  0x7a   : > { %v800_v50 = vmul.f32 %v4760_v32, %v4759_v17  ;;  %v801_v19 = vmul.f32 %v4760_v32, %v4761_v56  ;;  %v802_v31 = vmul.f32 %v4760_v32, %v4762_v25  ;;  %v828_v52 = vadd.f32 %v797_v35, %v761_v11 }
  0x7b   : > { %v829_v12 = vadd.f32 %v798_v44, %v762_v47  ;;  %v852_v15 = vrot.slane %v3360_v28, 1  ;;  %v853_v33 = vrot.slane %v3363_v57, 1  ;;  %v830_v60 = vadd.f32 %v799_v13, %v763_v22 }
  0x7c   : > { %v831_v53 = vadd.f32 %v800_v50, %v764_v43  ;;  %v3657_v38 = vadd.f32 %v801_v19, %v765_v49  ;;  %v3659_v21 = vadd.f32 %v802_v31, %v766_v59  ;;  %v854_v63 = vrot.slane %v4755_v46, 1  ;;  %v4773_v43 = vld [vmem:[#allocation23_spill] sm:$0xff] }
  0x7d   : > { %v855_v3 = vrot.slane %v4758_v27, 1  ;;  %v868_v39 = vrot.slane %v3381_v1, 1  ;;  %v869_v61 = vrot.slane %v3390_v48, 1  ;;  %v870_v37 = vrot.slane %v4756_v41, 1 }
  0x7e   : > { %v871_v30 = vrot.slane %v4759_v17, 1  ;;  %v721_v57 = vmul.f32 %v4757_v9, %v4763_v36  ;;  %v722_v58 = vmul.f32 %v4757_v9, %v4764_v34 }
  0x7f   : > { %v3673_v51 = vsel %vm878_vm2, %v852_v15, %v868_v39  ;;  %v3677_v10 = vsel %vm878_vm2, %v853_v33, %v869_v61  ;;  %v901_v48 = vsel %vm878_vm2, %v868_v39, %v852_v15  ;;  %v902_v20 = vsel %vm878_vm2, %v869_v61, %v853_v33 }
  0x80   : > { %4766 = vst [vmem:[#allocation31_spill] sm:$0xff] %v3673_v51  ;;  %4767 = vst [vmem:[#allocation37_spill] sm:$0xff] %v3677_v10  ;;  %v3685_v14 = vsel %vm878_vm2, %v854_v63, %v870_v37  ;;  %v888_v8 = vsel %vm878_vm2, %v855_v3, %v871_v30  ;;  %v903_v29 = vsel %vm878_vm2, %v870_v37, %v854_v63  ;;  %v3695_v47 = vsel %vm916_vm3, %v901_v48, 0.0  ;;  %v4776_v37 = vld [vmem:[#allocation24_spill] sm:$0xff] }
  0x81   : > { %4768 = vst [vmem:[#allocation19_spill] sm:$0xff] %v3685_v14  ;;  %v904_v5 = vsel %vm878_vm2, %v871_v30, %v855_v3  ;;  %4770 = vst [vmem:[#allocation32_spill] sm:$0xff] %v3695_v47  ;;  %v3699_v35 = vsel %vm916_vm3, %v902_v20, 0.0  ;;  %v3703_v44 = vsel %vm916_vm3, %v903_v29, 0.0  ;;  %v975_v49 = vmul.f32 %v4773_v43, %v3673_v51  ;;  %v4777_v20 = vld [vmem:[#allocation21_spill] sm:$0xff]  ;;  %v3830_v51 = vld [vmem:[%s2989_s12 + $0x50] sm:$0xff] }
  0x82   : > { %4771 = vst [vmem:[#allocation38_spill] sm:$0xff] %v3699_v35  ;;  %4772 = vst [vmem:[#allocation20_spill] sm:$0xff] %v3703_v44  ;;  %v944_v22 = vsel %vm916_vm3, %v904_v5, 0.0  ;;  %v976_v59 = vmul.f32 %v4773_v43, %v3695_v47  ;;  %v977_v13 = vmul.f32 %v4773_v43, %v3677_v10  ;;  %v978_v50 = vmul.f32 %v4773_v43, %v3699_v35  ;;  %v4787_v35 = vld [vmem:[#allocation10_spill] sm:$0xff] }
  0x83   : > { %v979_v19 = vmul.f32 %v4773_v43, %v3685_v14  ;;  %v980_v31 = vmul.f32 %v4773_v43, %v3703_v44  ;;  %v3720_v15 = vmul.f32 %v4773_v43, %v888_v8  ;;  %v3723_v33 = vmul.f32 %v4773_v43, %v944_v22 }
  0x84   : > { %v3725_v63 = vadd.f32 %v975_v49, %v828_v52  ;;  %v3727_v3 = vadd.f32 %v976_v59, %v829_v12  ;;  %v1009_v39 = vadd.f32 %v977_v13, %v830_v60  ;;  %v1010_v61 = vadd.f32 %v978_v50, %v831_v53  ;;  %v4778_v52 = vld [vmem:[#allocation17_spill] sm:$0xff]  ;;  %v4779_v12 = vld [vmem:[#allocation18_spill] sm:$0xff] }
  0x85   : > { %v1045_v30 = vmul.f32 %v4776_v37, %v3685_v14  ;;  %v1046_v36 = vmul.f32 %v4776_v37, %v3703_v44  ;;  %v1047_v34 = vmul.f32 %v4776_v37, %v888_v8  ;;  %v1048_v48 = vmul.f32 %v4776_v37, %v944_v22  ;;  %v4780_v13 = vld [vmem:[#allocation6_spill] sm:$0xff] }
  0x86   : > { %4774 = vst [vmem:[#allocation33_spill] sm:$0xff] %v3725_v63  ;;  %4775 = vst [vmem:[#allocation39_spill] sm:$0xff] %v3727_v3  ;;  %v1113_v29 = vmul.f32 %v4777_v20, %v888_v8  ;;  %v1114_v5 = vmul.f32 %v4777_v20, %v944_v22  ;;  %v753_v49 = vadd.f32 %v721_v57, %v4778_v52  ;;  %v4781_v3 = vld [vmem:[#allocation7_spill] sm:$0xff]  ;;  %v850_v14 = vrot.slane %v4780_v13, 1 }
  0x87   : > { %v754_v59 = vadd.f32 %v722_v58, %v4779_v12  ;;  %v1077_v60 = vadd.f32 %v1045_v30, %v1009_v39  ;;  %v1078_v53 = vadd.f32 %v1046_v36, %v1010_v61  ;;  %v789_v50 = vmul.f32 %v4760_v32, %v4780_v13  ;;  %v4783_v22 = vld [vmem:[#allocation27_spill] sm:$0xff]  ;;  %v4784_v12 = vld [vmem:[#allocation28_spill] sm:$0xff]  ;;  %v4785_v13 = vld [vmem:[#allocation29_spill] sm:$0xff] }
  0x88   : > { %v790_v44 = vmul.f32 %v4760_v32, %v4781_v3  ;;  %v866_v63 = vrot.slane %v4781_v3, 1  ;;  %v967_v8 = vmul.f32 %v4773_v43, %v4782_v54  ;;  %v968_v57 = vmul.f32 %v4773_v43, %v4783_v22 }
  0x89   : > { %v1145_v52 = vadd.f32 %v1113_v29, %v1077_v60  ;;  %v1146_v58 = vadd.f32 %v1114_v5, %v1078_v53  ;;  %v820_v39 = vadd.f32 %v789_v50, %v753_v49  ;;  %v1035_v3 = vmul.f32 %v4776_v37, %v4784_v12 }
  0x8a   : > { %v821_v61 = vadd.f32 %v790_v44, %v754_v59  ;;  %v3751_v30 = vsel %vm878_vm2, %v850_v14, %v866_v63  ;;  %v899_v36 = vsel %vm878_vm2, %v866_v63, %v850_v14  ;;  %v1036_v54 = vmul.f32 %v4776_v37, %v4785_v13 }
  0x8b   : > { %v1183_v0 = vadd.f32 %v4786_v18, %v1145_v52  ;;  %v1184_v29 = vadd.f32 %v4786_v18, %v1146_v58  ;;  %v3763_v44 = vsel %vm916_vm3, %v899_v36, 0.0  ;;  %v999_v5 = vadd.f32 %v967_v8, %v820_v39 }
  0x8c   : > { %v1000_v49 = vadd.f32 %v968_v57, %v821_v61  ;;  %v1103_v59 = vmul.f32 %v4777_v20, %v3751_v30  ;;  %v1104_v14 = vmul.f32 %v4777_v20, %v3763_v44  ;;  %v856_v63 = vrot.slane %v4761_v56, 1 }
  0x8d   : > { %v3770_v60 = vmul.f32 0.5, %v1183_v0  ;;  %v3772_v53 = vmul.f32 0.5, %v1184_v29  ;;  %v1247_v50 = vmul.f32 %v1183_v0, %v1183_v0  ;;  %v1248_v22 = vmul.f32 %v1184_v29, %v1184_v29 }
  0x8e   : > { %v1067_v52 = vadd.f32 %v1035_v3, %v999_v5  ;;  %v1068_v58 = vadd.f32 %v1036_v54, %v1000_v49  ;;  %v872_v36 = vrot.slane %v4762_v25, 1  ;;  %v1011_v8 = vadd.f32 %v979_v19, %v3657_v38 }
  0x8f   : > { %v1279_v57 = vmul.f32 %v1247_v50, %v1183_v0  ;;  %v1280_v39 = vmul.f32 %v1248_v22, %v1184_v29  ;;  %v1012_v61 = vadd.f32 %v980_v31, %v3659_v21  ;;  %v588_v10 = vmul.f32 %v3142_v23, %v4787_v35  ;;  %v4788_v22 = vld [vmem:[#allocation9_spill] sm:$0xff] }
  0x90   : > { %v1135_v45 = vadd.f32 %v1103_v59, %v1067_v52  ;;  %v1136_v7 = vadd.f32 %v1104_v14, %v1068_v58  ;;  %v3781_v16 = vsel %vm878_vm2, %v856_v63, %v872_v36  ;;  %v905_v3 = vsel %vm878_vm2, %v872_v36, %v856_v63 }
  0x91   : > { %v1311_v54 = vmul.f32 0.044715, %v1279_v57  ;;  %v1312_v5 = vmul.f32 0.044715, %v1280_v39  ;;  %v3787_v38 = vsel %vm916_vm3, %v905_v3, 0.0  ;;  %v1079_v19 = vadd.f32 %v1047_v34, %v1011_v8  ;;  %v4789_v39 = vld [vmem:[#allocation13_spill] sm:$0xff] }
  0x92   : > { %v1173_v21 = vadd.f32 %v4786_v18, %v1135_v45  ;;  %v1174_v31 = vadd.f32 %v4786_v18, %v1136_v7  ;;  %v1080_v49 = vadd.f32 %v1048_v48, %v1012_v61  ;;  %v1115_v59 = vmul.f32 %v4777_v20, %v3781_v16  ;;  %v4790_v3 = vld [vmem:[#allocation14_spill] sm:$0xff] }
  0x93   : > { %v1343_v14 = vadd.f32 %v1311_v54, %v1183_v0  ;;  %v1344_v50 = vadd.f32 %v1312_v5, %v1184_v29  ;;  %v1116_v63 = vmul.f32 %v4777_v20, %v3787_v38  ;;  %v589_v52 = vmul.f32 %v3142_v23, %v4788_v22  ;;  %v3806_v22 = vld [vmem:[%s2989_s12 + $0x30] sm:$0xff] }
  0x94   : > { %v3797_v58 = vmul.f32 0.5, %v1173_v21  ;;  %v3799_v34 = vmul.f32 0.5, %v1174_v31  ;;  %v1237_v45 = vmul.f32 %v1173_v21, %v1173_v21  ;;  %v1238_v36 = vmul.f32 %v1174_v31, %v1174_v31 }
  0x95   : > { %v1375_v7 = vmul.f32 0.7978846, %v1343_v14  ;;  %v1376_v48 = vmul.f32 0.7978846, %v1344_v50  ;;  %v1147_v8 = vadd.f32 %v1115_v59, %v1079_v19  ;;  %v1148_v57 = vadd.f32 %v1116_v63, %v1080_v49  ;;  %v3811_v59 = vld [vmem:[%s2989_s12 + $0x38] sm:$0xff] }
  0x96   : > { %v1269_v0 = vmul.f32 %v1237_v45, %v1173_v21  ;;  %v1270_v29 = vmul.f32 %v1238_v36, %v1174_v31  ;;  %v620_v61 = vadd.f32 %v588_v10, %v4789_v39  ;;  %v621_v54 = vadd.f32 %v589_v52, %v4790_v3  ;;  %v3825_v3 = vld [vmem:[%s2989_s12 + $0x48] sm:$0xff] }
  0x97   : > { %2782 = vtanh.f32 %v1375_v7  ;;  %v1185_v5 = vadd.f32 %v4786_v18, %v1147_v8  ;;  %v1186_v23 = vadd.f32 %v4786_v18, %v1148_v57  ;;  %v655_v14 = vmul.f32 %v3806_v22, %v3147_v24  ;;  %4791 = vst [vmem:[#allocation4_spill] sm:$0xff] %v3825_v3 }
  0x98   : > { %2784 = vtanh.f32 %v1376_v48  ;;  %v1301_v19 = vmul.f32 0.044715, %v1269_v0  ;;  %v1302_v49 = vmul.f32 0.044715, %v1270_v29  ;;  %v656_v10 = vmul.f32 %v3811_v59, %v3147_v24  ;;  %v3820_v29 = vld [vmem:[%s2989_s12 + $0x40] sm:$0xff] }
  0x99   : > { %v3815_v50 = vmul.f32 0.5, %v1185_v5  ;;  %v3817_v63 = vmul.f32 0.5, %v1186_v23  ;;  %v1249_v52 = vmul.f32 %v1185_v5, %v1185_v5  ;;  %v1250_v45 = vmul.f32 %v1186_v23, %v1186_v23 }
  0x9a   : > { %v1333_v36 = vadd.f32 %v1301_v19, %v1173_v21  ;;  %v1334_v7 = vadd.f32 %v1302_v49, %v1174_v31  ;;  %v687_v8 = vadd.f32 %v655_v14, %v620_v61  ;;  %v688_v48 = vadd.f32 %v656_v10, %v621_v54  ;;  %v3835_v31 = vld [vmem:[%s2989_s12 + $0x58] sm:$0xff] }
  0x9b   : > { %v1281_v57 = vmul.f32 %v1249_v52, %v1185_v5  ;;  %v1282_v0 = vmul.f32 %v1250_v45, %v1186_v23  ;;  %v723_v39 = vmul.f32 %v3820_v29, %v4757_v9  ;;  %v724_v35 = vmul.f32 %v3825_v3, %v4757_v9 }
  0x9c   : > { %v1365_v55 = vmul.f32 0.7978846, %v1333_v36  ;;  %v1366_v47 = vmul.f32 0.7978846, %v1334_v7  ;;  %v791_v21 = vmul.f32 %v3830_v51, %v4760_v32  ;;  %v792_v61 = vmul.f32 %v3835_v31, %v4760_v32 }
  0x9d   : > { %v1313_v54 = vmul.f32 0.044715, %v1281_v57  ;;  %v1314_v14 = vmul.f32 0.044715, %v1282_v0  ;;  %v755_v19 = vadd.f32 %v723_v39, %v687_v8  ;;  %v756_v49 = vadd.f32 %v724_v35, %v688_v48 }
  0x9e   : > { %2786 = vtanh.f32 %v1365_v55  ;;  %v851_v10 = vrot.slane %v3830_v51, 1  ;;  %v867_v52 = vrot.slane %v3835_v31, 1  ;;  %v969_v45 = vmul.f32 %v4773_v43, %v4784_v12 }
  0x9f   : > { %2788 = vtanh.f32 %v1366_v47  ;;  %v1345_v36 = vadd.f32 %v1313_v54, %v1185_v5  ;;  %v1346_v7 = vadd.f32 %v1314_v14, %v1186_v23  ;;  %v822_v1 = vadd.f32 %v791_v21, %v755_v19 }
  0xa0   : > { %v823_v28 = vadd.f32 %v792_v61, %v756_v49  ;;  %v3845_v3 = vsel %vm878_vm2, %v851_v10, %v867_v52  ;;  %v900_v35 = vsel %vm878_vm2, %v867_v52, %v851_v10  ;;  %v970_v55 = vmul.f32 %v4773_v43, %v4785_v13 }
  0xa1   : > { %v2783_v8 = vpop.eup %2782  ;;  %v1377_v48 = vmul.f32 0.7978846, %v1345_v36  ;;  %v1378_v57 = vmul.f32 0.7978846, %v1346_v7  ;;  %v3853_v47 = vsel %vm916_vm3, %v900_v35, 0.0  ;;  %v1001_v23 = vadd.f32 %v969_v45, %v822_v1 }
  0xa2   : > { %v2785_v12 = vpop.eup %2784  ;;  %v1439_v5 = vadd.f32 1.0, %v2783_v8  ;;  %v1002_v0 = vadd.f32 %v970_v55, %v823_v28  ;;  %v1037_v39 = vmul.f32 %v4776_v37, %v3751_v30  ;;  %v1038_v21 = vmul.f32 %v4776_v37, %v3763_v44  ;;  %v4792_v55 = vld [vmem:[#allocation35_spill] sm:$0xff] }
  0xa3   : > { %v1440_v61 = vadd.f32 1.0, %v2785_v12  ;;  %2790 = vtanh.f32 %v1377_v48  ;;  %v1105_v13 = vmul.f32 %v4777_v20, %v3845_v3  ;;  %v1106_v54 = vmul.f32 %v4777_v20, %v3853_v47 }
  0xa4   : > { %v1471_v14 = vmul.f32 %v1439_v5, %v3770_v60  ;;  %2792 = vtanh.f32 %v1378_v57  ;;  %v1069_v1 = vadd.f32 %v1037_v39, %v1001_v23  ;;  %v1070_v19 = vadd.f32 %v1038_v21, %v1002_v0  ;;  %v4793_v5 = vld [vmem:[#allocation40_spill] sm:$0xff] }
  0xa5   : > { %v1472_v28 = vmul.f32 %v1440_v61, %v3772_v53  ;;  %v667_v49 = vmul.f32 %v3147_v24, %v4758_v27  ;;  %v668_v10 = vmul.f32 %v3147_v24, %v4759_v17  ;;  %v735_v52 = vmul.f32 %v4757_v9, %v4761_v56 }
  0xa6   : > { %v1525_v45 = vmul.f32 %v3284_v40, %v1471_v14  ;;  %v1137_v36 = vadd.f32 %v1105_v13, %v1069_v1  ;;  %v1138_v20 = vadd.f32 %v1106_v54, %v1070_v19  ;;  %v736_v60 = vmul.f32 %v4757_v9, %v4762_v25 }
  0xa7   : > { %v1526_v7 = vmul.f32 %v3284_v40, %v1472_v28  ;;  %v699_v53 = vadd.f32 %v667_v49, %v3611_v62  ;;  %v700_v35 = vadd.f32 %v668_v10, %v3613_v2  ;;  %v803_v8 = vmul.f32 %v4760_v32, %v4792_v55 }
  0xa8   : > { %v2787_v48 = vpop.eup %2786  ;;  %v1561_v57 = vadd.f32 %v3288_v42, %v1525_v45  ;;  %v1175_v23 = vadd.f32 %v4786_v18, %v1137_v36  ;;  %v1176_v12 = vadd.f32 %v4786_v18, %v1138_v20  ;;  %v804_v0 = vmul.f32 %v4760_v32, %v4793_v5 }
  0xa9   : > { %v2789_v39 = vpop.eup %2788  ;;  %v1562_v21 = vadd.f32 %v3288_v42, %v1526_v7  ;;  %v1429_v61 = vadd.f32 1.0, %v2787_v48  ;;  %v767_v62 = vadd.f32 %v735_v52, %v699_v53  ;;  %v768_v13 = vadd.f32 %v736_v60, %v700_v35 }
  0xaa   : > { %v1593_v2 = vadd.f32 %v1561_v57, %v4755_v46  ;;  %v1430_v54 = vadd.f32 1.0, %v2789_v39  ;;  %v3886_v14 = vmul.f32 0.5, %v1175_v23  ;;  %v3888_v1 = vmul.f32 0.5, %v1176_v12 }
  0xab   : > { %v1594_v19 = vadd.f32 %v1562_v21, %v4756_v41  ;;  %v1461_v18 = vmul.f32 %v1429_v61, %v3797_v58  ;;  %v1239_v28 = vmul.f32 %v1175_v23, %v1175_v23  ;;  %v1240_v49 = vmul.f32 %v1176_v12, %v1176_v12 }
  0xac   : > { %v1462_v10 = vmul.f32 %v1430_v54, %v3799_v34  ;;  %v834_v45 = vadd.f32 %v803_v8, %v767_v62  ;;  %v835_v36 = vadd.f32 %v804_v0, %v768_v13  ;;  %v857_v52 = vrot.slane %v4792_v55, 1 }
  0xad   : > { %v2791_v20 = vpop.eup %2790  ;;  %v1617_v60 = vpack.c.bf16 %v1594_v19, %v1593_v2  ;;  %v1515_v46 = vmul.f32 %v3284_v40, %v1461_v18  ;;  %v1271_v7 = vmul.f32 %v1239_v28, %v1175_v23  ;;  %v1272_v53 = vmul.f32 %v1240_v49, %v1176_v12 }
  0xae   : > { %v2793_v35 = vpop.eup %2792  ;;  %v1516_v48 = vmul.f32 %v3284_v40, %v1462_v10  ;;  %v1441_v41 = vadd.f32 1.0, %v2791_v20  ;;  %v873_v58 = vrot.slane %v4793_v5, 1  ;;  %v1013_v57 = vadd.f32 %v3720_v15, %v834_v45 }
  0xaf   : > { %2722 = vmatprep.mubr.bf16.mxu1 %v1617_v60  ;;  %v1551_v34 = vadd.f32 %v3288_v42, %v1515_v46  ;;  %v1442_v8 = vadd.f32 1.0, %v2793_v35  ;;  %v1303_v0 = vmul.f32 0.044715, %v1271_v7  ;;  %v1304_v39 = vmul.f32 0.044715, %v1272_v53  ;;  %v4794_v53 = vld [vmem:[#allocation15_spill] sm:$0xff] }
  0xb0   : > { %v1552_v21 = vadd.f32 %v3288_v42, %v1516_v48  ;;  %v1473_v61 = vmul.f32 %v1441_v41, %v3815_v50  ;;  %v3903_v62 = vsel %vm878_vm2, %v857_v52, %v873_v58  ;;  %v906_v13 = vsel %vm878_vm2, %v873_v58, %v857_v52  ;;  %v4795_v58 = vld [vmem:[#allocation16_spill] sm:$0xff] }
  0xb1   : > { %v1583_v2 = vadd.f32 %v3806_v22, %v1551_v34  ;;  %v1474_v15 = vmul.f32 %v1442_v8, %v3817_v63  ;;  %v1335_v54 = vadd.f32 %v1303_v0, %v1175_v23  ;;  %v1336_v19 = vadd.f32 %v1304_v39, %v1176_v12  ;;  %v3925_v12 = vld [vmem:[%s4611_s1 + $0x8] ss:$0 sm:$0xff]  ;;  %v4796_v0 = vld [vmem:[#allocation4_spill] sm:$0xff] }
  0xb2   : > { %v1584_v18 = vadd.f32 %v3811_v59, %v1552_v21  ;;  %v1527_v28 = vmul.f32 %v3284_v40, %v1473_v61  ;;  %v3913_v50 = vsel %vm916_vm3, %v906_v13, 0.0  ;;  %v1014_v49 = vadd.f32 %v3723_v33, %v835_v36  ;;  %v4797_v13 = vld [vmem:[#allocation30_spill] sm:$0xff] }
  0xb3   : > { %v1528_v10 = vmul.f32 %v3284_v40, %v1474_v15  ;;  %v1367_v45 = vmul.f32 0.7978846, %v1335_v54  ;;  %v1368_v52 = vmul.f32 0.7978846, %v1336_v19  ;;  %v1049_v22 = vmul.f32 %v4776_v37, %v3781_v16  ;;  %v4798_v19 = vld [vmem:[#allocation34_spill] sm:$0xff] }
  0xb4   : > { %v1612_v63 = vpack.c.bf16 %v1584_v18, %v1583_v2  ;;  %v1563_v23 = vadd.f32 %v3288_v42, %v1527_v28  ;;  %v1050_v59 = vmul.f32 %v4776_v37, %v3787_v38  ;;  %v1117_v33 = vmul.f32 %v3925_v12, %v3903_v62 }
  0xb5   : > { %v1564_v36 = vadd.f32 %v3288_v42, %v1528_v10  ;;  %2794 = vtanh.f32 %v1367_v45  ;;  %v1081_v20 = vadd.f32 %v1049_v22, %v1013_v57  ;;  %v1118_v60 = vmul.f32 %v3925_v12, %v3913_v50 }
  0xb6   : > { %2711 = vmatmul.mubr.bf16.gmra.mrb[4].mxu0 %v1612_v63  ;;  %v1595_v46 = vadd.f32 %v1563_v23, %v4758_v27  ;;  %2796 = vtanh.f32 %v1368_v52  ;;  %v1082_v7 = vadd.f32 %v1050_v59, %v1014_v49  ;;  %v622_v35 = vadd.f32 %v3573_v4, %v4794_v53  ;;  %v4800_v53 = vld [vmem:[#allocation32_spill] sm:$0xff] }
  0xb7   : > { %v1596_v48 = vadd.f32 %v1564_v36, %v4759_v17  ;;  %v1149_v41 = vadd.f32 %v1117_v33, %v1081_v20  ;;  %v623_v34 = vadd.f32 %v3577_v26, %v4795_v58  ;;  %v657_v57 = vmul.f32 %v3820_v29, %v3147_v24  ;;  %v3949_v17 = vld [vmem:[%s4612_s2] ss:$0 sm:$0xff]  ;;  %v4799_v20 = vld [vmem:[#allocation31_spill] sm:$0xff] }
  0xb8   : > { %v1150_v8 = vadd.f32 %v1118_v60, %v1082_v7  ;;  %v658_v39 = vmul.f32 %v4796_v0, %v3147_v24  ;;  %v725_v27 = vmul.f32 %v3830_v51, %v4757_v9  ;;  %v726_v21 = vmul.f32 %v3835_v31, %v4757_v9 }
  0xb9   : > { %v1618_v4 = vpack.c.bf16 %v1596_v48, %v1595_v46  ;;  %v1187_v26 = vadd.f32 %v3949_v17, %v1149_v41  ;;  %v689_v61 = vadd.f32 %v657_v57, %v622_v35  ;;  %v793_v2 = vmul.f32 %v4760_v32, %v4797_v13 }
  0xba   : > { %v1188_v15 = vadd.f32 %v3949_v17, %v1150_v8  ;;  %v690_v54 = vadd.f32 %v658_v39, %v623_v34  ;;  %v794_v18 = vmul.f32 %v4760_v32, %v4798_v19  ;;  %v971_v28 = vmul.f32 %v4773_v43, %v3751_v30  ;;  %v4802_v19 = vld [vmem:[#allocation51_spill] sm:$0xff] }
  0xbb   : > { %2723 = vmatmul.mubr.bf16.vlgmr.msra.gmra.mrb[0].mxu1 %v1618_v4  ;;  %v3959_v49 = vmul.f32 0.5, %v1187_v26  ;;  %v1251_v10 = vmul.f32 %v1187_v26, %v1187_v26  ;;  %v757_v45 = vadd.f32 %v725_v27, %v689_v61  ;;  %v972_v52 = vmul.f32 %v4773_v43, %v3763_v44  ;;  %v4801_v4 = vld [vmem:[#allocation50_spill] sm:$0xff] }
  0xbc   : > { %v3963_v22 = vmul.f32 0.5, %v1188_v15  ;;  %v1252_v63 = vmul.f32 %v1188_v15, %v1188_v15  ;;  %v758_v23 = vadd.f32 %v726_v21, %v690_v54  ;;  %v1039_v59 = vmul.f32 %v4776_v37, %v3845_v3 }
  0xbd   : > { %v1283_v33 = vmul.f32 %v1251_v10, %v1187_v26  ;;  %v824_v36 = vadd.f32 %v793_v2, %v757_v45  ;;  %v1040_v30 = vmul.f32 %v4776_v37, %v3853_v47  ;;  %v1107_v60 = vmul.f32 %v3925_v12, %v4799_v20 }
  0xbe   : > { %v1284_v46 = vmul.f32 %v1252_v63, %v1188_v15  ;;  %v825_v7 = vadd.f32 %v794_v18, %v758_v23  ;;  %v1108_v44 = vmul.f32 %v3925_v12, %v4800_v53  ;;  %v669_v35 = vmul.f32 %v3147_v24, %v4761_v56 }
  0xbf   : > { %v2795_v48 = vpop.eup %2794  ;;  %v1315_v41 = vmul.f32 0.044715, %v1283_v33  ;;  %v1003_v58 = vadd.f32 %v971_v28, %v824_v36  ;;  %v670_v34 = vmul.f32 %v3147_v24, %v4762_v25  ;;  %v737_v57 = vmul.f32 %v4757_v9, %v4792_v55 }
  0xc0   : > { %v2797_v8 = vpop.eup %2796  ;;  %v1431_v39 = vadd.f32 1.0, %v2795_v48  ;;  %v1316_v27 = vmul.f32 0.044715, %v1284_v46  ;;  %v1004_v21 = vadd.f32 %v972_v52, %v825_v7  ;;  %v701_v61 = vadd.f32 %v669_v35, %v4801_v4 }
  0xc1   : > { %v1432_v13 = vadd.f32 1.0, %v2797_v8  ;;  %v1347_v2 = vadd.f32 %v1315_v41, %v1187_v26  ;;  %v1071_v54 = vadd.f32 %v1039_v59, %v1003_v58  ;;  %v702_v56 = vadd.f32 %v670_v34, %v4802_v19 }
  0xc2   : > { %v1463_v18 = vmul.f32 %v1431_v39, %v3886_v14  ;;  %v1348_v28 = vadd.f32 %v1316_v27, %v1188_v15  ;;  %v1072_v10 = vadd.f32 %v1040_v30, %v1004_v21  ;;  %v738_v25 = vmul.f32 %v4757_v9, %v4793_v5  ;;  %v4803_v15 = vld [vmem:[#allocation36_spill] sm:$0xff]  ;;  %v4002_v27 = vld [vmem:[%s2989_s12 + $0xc0] sm:$0xff] }
  0xc3   : > { %v1464_v55 = vmul.f32 %v1432_v13, %v3888_v1  ;;  %v1379_v45 = vmul.f32 0.7978846, %v1347_v2  ;;  %v1139_v63 = vadd.f32 %v1107_v60, %v1071_v54  ;;  %v769_v23 = vadd.f32 %v737_v57, %v701_v61  ;;  %v4804_v60 = vld [vmem:[#allocation41_spill] sm:$0xff] }
  0xc4   : > { %v1517_v52 = vmul.f32 %v3284_v40, %v1463_v18  ;;  %v1380_v33 = vmul.f32 0.7978846, %v1348_v28  ;;  %v1140_v36 = vadd.f32 %v1108_v44, %v1072_v10  ;;  %v770_v26 = vadd.f32 %v738_v25, %v702_v56 }
  0xc5   : > { %v1518_v59 = vmul.f32 %v3284_v40, %v1464_v55  ;;  %2798 = vtanh.f32 %v1379_v45  ;;  %v1177_v14 = vadd.f32 %v3949_v17, %v1139_v63  ;;  %v805_v30 = vmul.f32 %v4760_v32, %v4803_v15 }
  0xc6   : > { %v1553_v5 = vadd.f32 %v3288_v42, %v1517_v52  ;;  %2800 = vtanh.f32 %v1380_v33  ;;  %v1178_v1 = vadd.f32 %v3949_v17, %v1140_v36  ;;  %v806_v46 = vmul.f32 %v4760_v32, %v4804_v60  ;;  %v4805_v52 = vld [vmem:[#allocation10_spill] sm:$0xff]  ;;  %v4806_v33 = vld [vmem:[#allocation8_spill] sm:$0xff] }
  0xc7   : > { %v1554_v7 = vadd.f32 %v3288_v42, %v1518_v59  ;;  %v3995_v44 = vmul.f32 0.5, %v1177_v14  ;;  %v1241_v35 = vmul.f32 %v1177_v14, %v1177_v14  ;;  %v836_v48 = vadd.f32 %v805_v30, %v769_v23 }
  0xc8   : > { %v1585_v41 = vadd.f32 %v3820_v29, %v1553_v5  ;;  %v3998_v58 = vmul.f32 0.5, %v1178_v1  ;;  %v1242_v34 = vmul.f32 %v1178_v1, %v1178_v1  ;;  %v837_v57 = vadd.f32 %v806_v46, %v770_v26  ;;  %v4807_v26 = vld [vmem:[#allocation9_spill] sm:$0xff] }
  0xc9   : > { %v1586_v8 = vadd.f32 %v4796_v0, %v1554_v7  ;;  %v1273_v39 = vmul.f32 %v1241_v35, %v1177_v14  ;;  %v858_v21 = vrot.slane %v4002_v27, 1  ;;  %v874_v4 = vrot.slane %v4804_v60, 1 }
  0xca   : > { %v1274_v61 = vmul.f32 %v1242_v34, %v1178_v1  ;;  %v983_v13 = vmul.f32 %v4773_v43, %v3781_v16  ;;  %v984_v29 = vmul.f32 %v4773_v43, %v3787_v38  ;;  %v1051_v2 = vmul.f32 %v4776_v37, %v3903_v62 }
  0xcb   : > { %v1613_v54 = vpack.c.bf16 %v1586_v8, %v1585_v41  ;;  %v1305_v19 = vmul.f32 0.044715, %v1273_v39  ;;  %v4014_v0 = vsel %vm878_vm2, %v858_v21, %v874_v4  ;;  %v907_v56 = vsel %vm878_vm2, %v874_v4, %v858_v21  ;;  %v4809_v8 = vld [vmem:[#allocation47_spill] sm:$0xff] }
  0xcc   : > { %v1306_v18 = vmul.f32 0.044715, %v1274_v61  ;;  %v4020_v28 = vsel %vm916_vm3, %v907_v56, 0.0  ;;  %v1015_v16 = vadd.f32 %v983_v13, %v836_v48  ;;  %v1016_v10 = vadd.f32 %v984_v29, %v837_v57  ;;  %v4808_v48 = vld [vmem:[#allocation46_spill] sm:$0xff]  ;;  %v4810_v61 = vld [vmem:[#allocation48_spill] sm:$0xff] }
  0xcd   : > { %2714 = vmatprep.mubr.bf16.mxu0 %v1613_v54  ;;  %v1337_v38 = vadd.f32 %v1305_v19, %v1177_v14  ;;  %v1052_v25 = vmul.f32 %v4776_v37, %v3913_v50  ;;  %v1119_v55 = vmul.f32 %v3925_v12, %v4014_v0  ;;  %v1120_v45 = vmul.f32 %v3925_v12, %v4020_v28  ;;  %v4811_v54 = vld [vmem:[#allocation49_spill] sm:$0xff]  ;;  %v4045_v56 = vld [vmem:[%s2989_s12 + $0x60] sm:$0xff] }
  0xce   : > { %v1338_v63 = vadd.f32 %v1306_v18, %v1178_v1  ;;  %v1083_v23 = vadd.f32 %v1051_v2, %v1015_v16  ;;  %v456_v36 = vmul.f32 %v4806_v33, %v4805_v52  ;;  %v457_v59 = vmul.f32 %v4806_v33, %v4807_v26  ;;  %v4057_v52 = vld [vmem:[%s2989_s12 + $0x68] sm:$0xff] }
  0xcf   : > { %v2799_v15 = vpop.eup %2798  ;;  %v1369_v30 = vmul.f32 0.7978846, %v1337_v38  ;;  %v1084_v14 = vadd.f32 %v1052_v25, %v1016_v10  ;;  %v659_v5 = vmul.f32 %v3830_v51, %v3147_v24  ;;  %v660_v60 = vmul.f32 %v3835_v31, %v3147_v24 }
  0xd0   : > { %v2801_v46 = vpop.eup %2800  ;;  %v1443_v7 = vadd.f32 1.0, %v2799_v15  ;;  %v1370_v1 = vmul.f32 0.7978846, %v1338_v63  ;;  %v1151_v35 = vadd.f32 %v1119_v55, %v1083_v23  ;;  %v556_v41 = vadd.f32 %v4808_v48, %v456_v36 }
  0xd1   : > { %v1444_v34 = vadd.f32 1.0, %v2801_v46  ;;  %2802 = vtanh.f32 %v1369_v30  ;;  %v1152_v57 = vadd.f32 %v1120_v45, %v1084_v14  ;;  %v557_v39 = vadd.f32 %v4809_v8, %v457_v59  ;;  %v4063_v30 = vld [vmem:[%s2989_s12 + $0x70] sm:$0xff]  ;;  %v2911_v46 = vld [vmem:[%s2989_s12 + $0xa0] sm:$0xff] }
  0xd2   : > { %v1475_v21 = vmul.f32 %v1443_v7, %v3959_v49  ;;  %2804 = vtanh.f32 %v1370_v1  ;;  %v1189_v4 = vadd.f32 %v3949_v17, %v1151_v35  ;;  %v624_v13 = vadd.f32 %v4810_v61, %v556_v41  ;;  %4812 = vst [vmem:[#allocation5_spill] sm:$0xff] %v4063_v30  ;;  %v2912_v41 = vld [vmem:[%s2989_s12 + $0xa8] sm:$0xff] }
  0xd3   : > { %v1476_v29 = vmul.f32 %v1444_v34, %v3963_v22  ;;  %v1190_v2 = vadd.f32 %v3949_v17, %v1152_v57  ;;  %v625_v19 = vadd.f32 %v4811_v54, %v557_v39  ;;  %v727_v18 = vmul.f32 %v4045_v56, %v4757_v9  ;;  %v4083_v54 = vld [vmem:[%s2989_s12 + $0xd0] sm:$0xff] }
  0xd4   : > { %v1529_v49 = vmul.f32 %v3284_v40, %v1475_v21  ;;  %v4050_v16 = vmul.f32 0.5, %v1189_v4  ;;  %v1253_v10 = vmul.f32 %v1189_v4, %v1189_v4  ;;  %v691_v38 = vadd.f32 %v659_v5, %v624_v13  ;;  %v4068_v5 = vld [vmem:[%s2989_s12 + $0x78] sm:$0xff] }
  0xd5   : > { %v1530_v22 = vmul.f32 %v3284_v40, %v1476_v29  ;;  %v4053_v25 = vmul.f32 0.5, %v1190_v2  ;;  %v1254_v55 = vmul.f32 %v1190_v2, %v1190_v2  ;;  %v692_v45 = vadd.f32 %v660_v60, %v625_v19  ;;  %4813 = vst [vmem:[#allocation2_spill] sm:$0xff] %v4068_v5 }
  0xd6   : > { %v1565_v63 = vadd.f32 %v3288_v42, %v1529_v49  ;;  %v1285_v23 = vmul.f32 %v1253_v10, %v1189_v4  ;;  %v728_v36 = vmul.f32 %v4057_v52, %v4757_v9  ;;  %v759_v26 = vadd.f32 %v727_v18, %v691_v38  ;;  %v4814_v10 = vld [vmem:[#allocation37_spill] sm:$0xff] }
  0xd7   : > { %v1566_v59 = vadd.f32 %v3288_v42, %v1530_v22  ;;  %v1286_v15 = vmul.f32 %v1254_v55, %v1190_v2  ;;  %v795_v14 = vmul.f32 %v4063_v30, %v4760_v32  ;;  %v796_v60 = vmul.f32 %v4068_v5, %v4760_v32  ;;  %v4088_v22 = vld [vmem:[%s2989_s12 + $0xd8] sm:$0xff] }
  0xd8   : > { %v1597_v7 = vadd.f32 %v2911_v46, %v1565_v63  ;;  %v1317_v1 = vmul.f32 0.044715, %v1285_v23  ;;  %v760_v35 = vadd.f32 %v728_v36, %v692_v45  ;;  %v973_v48 = vmul.f32 %v4773_v43, %v3845_v3  ;;  %v4815_v63 = vld [vmem:[#allocation38_spill] sm:$0xff]  ;;  %v4816_v46 = vld [vmem:[#allocation43_spill] sm:$0xff] }
  0xd9   : > { %v1598_v34 = vadd.f32 %v2912_v41, %v1566_v59  ;;  %v1318_v57 = vmul.f32 0.044715, %v1286_v15  ;;  %v826_v8 = vadd.f32 %v795_v14, %v759_v26  ;;  %v974_v39 = vmul.f32 %v4773_v43, %v3853_v47 }
  0xda   : > { %v1349_v21 = vadd.f32 %v1317_v1, %v1189_v4  ;;  %v827_v61 = vadd.f32 %v796_v60, %v760_v35  ;;  %v1041_v13 = vmul.f32 %v4776_v37, %v4799_v20  ;;  %v1042_v29 = vmul.f32 %v4776_v37, %v4800_v53 }
  0xdb   : > { %v2803_v19 = vpop.eup %2802  ;;  %v1619_v3 = vpack.c.bf16 %v1598_v34, %v1597_v7  ;;  %v1350_v18 = vadd.f32 %v1318_v57, %v1190_v2  ;;  %v1005_v49 = vadd.f32 %v973_v48, %v826_v8  ;;  %v1109_v38 = vmul.f32 %v3925_v12, %v4814_v10  ;;  %v4817_v7 = vld [vmem:[#allocation11_spill] sm:$0xff] }
  0xdc   : > { %v2805_v47 = vpop.eup %2804  ;;  %v1433_v4 = vadd.f32 1.0, %v2803_v19  ;;  %v1381_v55 = vmul.f32 0.7978846, %v1349_v21  ;;  %v1006_v45 = vadd.f32 %v974_v39, %v827_v61  ;;  %v1110_v20 = vmul.f32 %v3925_v12, %v4815_v63  ;;  %v4819_v39 = vld [vmem:[#allocation42_spill] sm:$0xff] }
  0xdd   : > { %2726 = vmatprep.mubr.bf16.mxu1 %v1619_v3  ;;  %v1434_v53 = vadd.f32 1.0, %v2805_v47  ;;  %v1382_v23 = vmul.f32 0.7978846, %v1350_v18  ;;  %v1073_v36 = vadd.f32 %v1041_v13, %v1005_v49  ;;  %v342_v26 = vrot.slane %v4083_v54, 7  ;;  %v4821_v3 = vld [vmem:[#allocation12_spill] sm:$0xff] }
  0xde   : > { %v1465_v2 = vmul.f32 %v1433_v4, %v3995_v44  ;;  %2806 = vtanh.f32 %v1381_v55  ;;  %v1074_v59 = vadd.f32 %v1042_v29, %v1006_v45  ;;  %v358_v15 = vrot.slane %v4088_v22, 7  ;;  %v4820_v29 = vld [vmem:[#allocation44_spill] sm:$0xff]  ;;  %v4822_v4 = vld [vmem:[#allocation45_spill] sm:$0xff] }
  0xdf   : > { %v1466_v14 = vmul.f32 %v1434_v53, %v3998_v58  ;;  %2808 = vtanh.f32 %v1382_v23  ;;  %v1141_v60 = vadd.f32 %v1109_v38, %v1073_v36  ;;  %v536_v1 = vmul.f32 %v4817_v7, %v4816_v46 }
  0xe0   : > { %v1519_v35 = vmul.f32 %v3284_v40, %v1465_v2  ;;  %v1142_v48 = vadd.f32 %v1110_v20, %v1074_v59  ;;  %v4101_v41 = vsel %vm361_vm0, %v342_v26, %v358_v15  ;;  %v391_v44 = vsel %vm361_vm0, %v358_v15, %v342_v26  ;;  %v2913_v59 = vld [vmem:[%s2989_s12 + $0xb0] sm:$0xff] }
  0xe1   : > { %v1520_v34 = vmul.f32 %v3284_v40, %v1466_v14  ;;  %v1179_v57 = vadd.f32 %v3949_v17, %v1141_v60  ;;  %v4109_v8 = vsel %vm396_vm1, %v391_v44, 0.0  ;;  %v537_v21 = vmul.f32 %v4817_v7, %v4819_v39 }
  0xe2   : > { %v1555_v61 = vadd.f32 %v3288_v42, %v1519_v35  ;;  %v1180_v13 = vadd.f32 %v3949_v17, %v1142_v48  ;;  %v568_v19 = vadd.f32 %v536_v1, %v4820_v29  ;;  %v604_v18 = vmul.f32 %v4821_v3, %v4109_v8  ;;  %v2914_v1 = vld [vmem:[%s2989_s12 + $0xb8] sm:$0xff] }
  0xe3   : > { %v1556_v49 = vadd.f32 %v3288_v42, %v1520_v34  ;;  %v4119_v38 = vmul.f32 0.5, %v1179_v57  ;;  %v1243_v47 = vmul.f32 %v1179_v57, %v1179_v57  ;;  %v569_v55 = vadd.f32 %v537_v21, %v4822_v4  ;;  %v4135_v21 = vld [vmem:[%s2989_s12 + $0xc8] sm:$0xff] }
  0xe4   : > { %v1587_v45 = vadd.f32 %v3830_v51, %v1555_v61  ;;  %v4123_v20 = vmul.f32 0.5, %v1180_v13  ;;  %v1244_v53 = vmul.f32 %v1180_v13, %v1180_v13  ;;  %v605_v23 = vmul.f32 %v4821_v3, %v4101_v41 }
  0xe5   : > { %v1588_v36 = vadd.f32 %v3835_v31, %v1556_v49  ;;  %v1275_v26 = vmul.f32 %v1243_v47, %v1179_v57  ;;  %v636_v2 = vadd.f32 %v604_v18, %v568_v19  ;;  %v671_v15 = vmul.f32 %v2913_v59, %v3147_v24 }
  0xe6   : > { %v1276_v14 = vmul.f32 %v1244_v53, %v1180_v13  ;;  %v637_v60 = vadd.f32 %v605_v23, %v569_v55  ;;  %v672_v35 = vmul.f32 %v2914_v1, %v3147_v24  ;;  %v739_v51 = vmul.f32 %v4002_v27, %v4757_v9 }
  0xe7   : > { %v1614_v48 = vpack.c.bf16 %v1588_v36, %v1587_v45  ;;  %v1307_v44 = vmul.f32 0.044715, %v1275_v26  ;;  %v703_v34 = vadd.f32 %v671_v15, %v636_v2  ;;  %v740_v31 = vmul.f32 %v4135_v21, %v4757_v9 }
  0xe8   : > { %v2807_v61 = vpop.eup %2806  ;;  %v1308_v29 = vmul.f32 0.044715, %v1276_v14  ;;  %v704_v19 = vadd.f32 %v672_v35, %v637_v60  ;;  %v807_v18 = vmul.f32 %v4760_v32, %v4083_v54  ;;  %v808_v49 = vmul.f32 %v4760_v32, %v4088_v22 }
  0xe9   : > { %v2809_v47 = vpop.eup %2808  ;;  %2715 = vmatmul.mubr.bf16.gmra.mrb[8].mxu0 %v1614_v48  ;;  %v1445_v4 = vadd.f32 1.0, %v2807_v61  ;;  %v1339_v55 = vadd.f32 %v1307_v44, %v1179_v57  ;;  %v771_v45 = vadd.f32 %v739_v51, %v703_v34  ;;  %v859_v53 = vrot.slane %v4083_v54, 1 }
  0xea   : > { %v1446_v23 = vadd.f32 1.0, %v2809_v47  ;;  %v1340_v36 = vadd.f32 %v1308_v29, %v1180_v13  ;;  %v772_v26 = vadd.f32 %v740_v31, %v704_v19  ;;  %v875_v2 = vrot.slane %v4088_v22, 1  ;;  %v4176_v47 = vld [vmem:[%s2989_s12 + $0xe0] sm:$0xff] }
  0xeb   : > { %v1477_v15 = vmul.f32 %v1445_v4, %v4050_v16  ;;  %v1371_v14 = vmul.f32 0.7978846, %v1339_v55  ;;  %v838_v60 = vadd.f32 %v807_v18, %v771_v45  ;;  %v985_v35 = vmul.f32 %v4773_v43, %v3903_v62 }
  0xec   : > { %v1478_v5 = vmul.f32 %v1446_v23, %v4053_v25  ;;  %v1372_v48 = vmul.f32 0.7978846, %v1340_v36  ;;  %v839_v61 = vadd.f32 %v808_v49, %v772_v26  ;;  %v4151_v57 = vsel %vm878_vm2, %v859_v53, %v875_v2  ;;  %v4181_v23 = vld [vmem:[%s2989_s12 + $0xe8] sm:$0xff]  ;;  %v4823_v26 = vld [vmem:[#allocation33_spill] sm:$0xff] }
  0xed   : > { %v1531_v13 = vmul.f32 %v3284_v40, %v1477_v15  ;;  %2810 = vtanh.f32 %v1371_v14  ;;  %v908_v16 = vsel %vm878_vm2, %v875_v2, %v859_v53  ;;  %v986_v51 = vmul.f32 %v4773_v43, %v3913_v50  ;;  %v4824_v15 = vld [vmem:[#allocation19_spill] sm:$0xff] }
  0xee   : > { %v1532_v62 = vmul.f32 %v3284_v40, %v1478_v5  ;;  %2812 = vtanh.f32 %v1372_v48  ;;  %v4161_v25 = vsel %vm916_vm3, %v908_v16, 0.0  ;;  %v1017_v44 = vadd.f32 %v985_v35, %v838_v60  ;;  %v4825_v60 = vld [vmem:[#allocation20_spill] sm:$0xff] }
  0xef   : > { %v1567_v34 = vadd.f32 %v3288_v42, %v1531_v13  ;;  %v1018_v31 = vadd.f32 %v986_v51, %v839_v61  ;;  %v1053_v29 = vmul.f32 %v4776_v37, %v4014_v0  ;;  %v1054_v19 = vmul.f32 %v4776_v37, %v4020_v28  ;;  %v4826_v61 = vld [vmem:[#allocation39_spill] sm:$0xff] }
  0xf0   : > { %v1568_v50 = vadd.f32 %v3288_v42, %v1532_v62  ;;  %v1121_v5 = vmul.f32 %v3925_v12, %v4151_v57  ;;  %v1122_v18 = vmul.f32 %v3925_v12, %v4161_v25  ;;  %v1043_v49 = vmul.f32 %v4776_v37, %v4814_v10 }
  0xf1   : > { %v1599_v4 = vadd.f32 %v2913_v59, %v1567_v34  ;;  %v1085_v55 = vadd.f32 %v1053_v29, %v1017_v44  ;;  %v1086_v45 = vadd.f32 %v1054_v19, %v1018_v31  ;;  %v1044_v53 = vmul.f32 %v4776_v37, %v4815_v63 }
  0xf2   : > { %v1600_v36 = vadd.f32 %v2914_v1, %v1568_v50  ;;  %v1075_v2 = vadd.f32 %v1043_v49, %v4823_v26  ;;  %v1111_v14 = vmul.f32 %v3925_v12, %v4824_v15  ;;  %v1112_v35 = vmul.f32 %v3925_v12, %v4825_v60 }
  0xf3   : > { %v1153_v10 = vadd.f32 %v1121_v5, %v1085_v55  ;;  %v1154_v48 = vadd.f32 %v1122_v18, %v1086_v45  ;;  %v1076_v59 = vadd.f32 %v1044_v53, %v4826_v61  ;;  %v343_v13 = vrot.slane %v4176_v47, 7 }
  0xf4   : > { %v1620_v16 = vpack.c.bf16 %v1600_v36, %v1599_v4  ;;  %v1143_v51 = vadd.f32 %v1111_v14, %v1075_v2  ;;  %v359_v63 = vrot.slane %v4181_v23, 7  ;;  %v470_v1 = vmul.f32 %v4806_v33, %v4816_v46 }
  0xf5   : > { %v1191_v62 = vadd.f32 %v3949_v17, %v1153_v10  ;;  %v1192_v44 = vadd.f32 %v3949_v17, %v1154_v48  ;;  %v1144_v34 = vadd.f32 %v1112_v35, %v1076_v59  ;;  %v471_v31 = vmul.f32 %v4806_v33, %v4819_v39 }
  0xf6   : > { %2727 = vmatmul.mubr.bf16.gmra.mrb[4].mxu1 %v1620_v16  ;;  %v1181_v29 = vadd.f32 %v3949_v17, %v1143_v51  ;;  %v4200_v19 = vsel %vm361_vm0, %v343_v13, %v359_v63  ;;  %v392_v50 = vsel %vm361_vm0, %v359_v63, %v343_v13  ;;  %v538_v46 = vmul.f32 %v4817_v7, %v4109_v8 }
  0xf7   : > { %v2811_v5 = vpop.eup %2810  ;;  %v4206_v18 = vmul.f32 0.5, %v1191_v62  ;;  %v4208_v49 = vmul.f32 0.5, %v1192_v44  ;;  %v1255_v4 = vmul.f32 %v1191_v62, %v1191_v62  ;;  %v1256_v39 = vmul.f32 %v1192_v44, %v1192_v44 }
  0xf8   : > { %v2813_v55 = vpop.eup %2812  ;;  %v1435_v45 = vadd.f32 1.0, %v2811_v5  ;;  %v1182_v53 = vadd.f32 %v3949_v17, %v1144_v34  ;;  %v4211_v36 = vmul.f32 0.5, %v1181_v29  ;;  %v1245_v26 = vmul.f32 %v1181_v29, %v1181_v29 }
  0xf9   : > { %v1436_v2 = vadd.f32 1.0, %v2813_v55  ;;  %v1287_v15 = vmul.f32 %v1255_v4, %v1191_v62  ;;  %v1288_v14 = vmul.f32 %v1256_v39, %v1192_v44  ;;  %v4215_v60 = vsel %vm396_vm1, %v392_v50, 0.0 }
  0xfa   : > { %v1467_v35 = vmul.f32 %v1435_v45, %v4119_v38  ;;  %v4218_v10 = vmul.f32 0.5, %v1182_v53  ;;  %v1246_v48 = vmul.f32 %v1182_v53, %v1182_v53  ;;  %v1277_v61 = vmul.f32 %v1245_v26, %v1181_v29 }
  0xfb   : > { %v1468_v59 = vmul.f32 %v1436_v2, %v4123_v20  ;;  %v1319_v13 = vmul.f32 0.044715, %v1287_v15  ;;  %v1320_v16 = vmul.f32 0.044715, %v1288_v14  ;;  %v539_v51 = vmul.f32 %v4817_v7, %v4101_v41 }
  0xfc   : > { %v1521_v63 = vmul.f32 %v3284_v40, %v1467_v35  ;;  %v1278_v34 = vmul.f32 %v1246_v48, %v1182_v53  ;;  %v1309_v5 = vmul.f32 0.044715, %v1277_v61  ;;  %v570_v4 = vadd.f32 %v538_v46, %v470_v1 }
  0xfd   : > { %v1522_v50 = vmul.f32 %v3284_v40, %v1468_v59  ;;  %v1351_v39 = vadd.f32 %v1319_v13, %v1191_v62  ;;  %v1352_v38 = vadd.f32 %v1320_v16, %v1192_v44  ;;  %v571_v55 = vadd.f32 %v539_v51, %v471_v31 }
  0xfe   : > { %v1557_v45 = vadd.f32 %v3288_v42, %v1521_v63  ;;  %v1310_v26 = vmul.f32 0.044715, %v1278_v34  ;;  %v1341_v30 = vadd.f32 %v1309_v5, %v1181_v29  ;;  %v606_v20 = vmul.f32 %v4821_v3, %v4215_v60  ;;  %v4246_v63 = vld [vmem:[%s2989_s12 + $0xf0] sm:$0xff] }
  0xff   : > { %v1558_v2 = vadd.f32 %v3288_v42, %v1522_v50  ;;  %v1383_v15 = vmul.f32 0.7978846, %v1351_v39  ;;  %v1384_v14 = vmul.f32 0.7978846, %v1352_v38  ;;  %v607_v35 = vmul.f32 %v4821_v3, %v4200_v19  ;;  %v4253_v39 = vld [vmem:[%s2989_s12 + $0xf8] sm:$0xff] }
 0x100   : > { %v1589_v1 = vadd.f32 %v4045_v56, %v1557_v45  ;;  %v1342_v46 = vadd.f32 %v1310_v26, %v1182_v53  ;;  %v1373_v62 = vmul.f32 0.7978846, %v1341_v30  ;;  %v638_v44 = vadd.f32 %v606_v20, %v570_v4 }
 0x101   : > { %v1590_v31 = vadd.f32 %v4057_v52, %v1558_v2  ;;  %2814 = vtanh.f32 %v1383_v15  ;;  %v639_v29 = vadd.f32 %v607_v35, %v571_v55  ;;  %v673_v48 = vmul.f32 %v4002_v27, %v3147_v24 }
 0x102   : > { %2816 = vtanh.f32 %v1384_v14  ;;  %v1374_v61 = vmul.f32 0.7978846, %v1342_v46  ;;  %v674_v59 = vmul.f32 %v4135_v21, %v3147_v24  ;;  %v741_v56 = vmul.f32 %v4757_v9, %v4083_v54 }
 0x103   : > { %v1615_v53 = vpack.c.bf16 %v1590_v31, %v1589_v1  ;;  %2818 = vtanh.f32 %v1373_v62  ;;  %v705_v30 = vadd.f32 %v673_v48, %v638_v44  ;;  %v742_v52 = vmul.f32 %v4757_v9, %v4088_v22 }
 0x104   : > { %2820 = vtanh.f32 %v1374_v61  ;;  %v706_v13 = vadd.f32 %v674_v59, %v639_v29  ;;  %v809_v16 = vmul.f32 %v4760_v32, %v4176_v47  ;;  %v810_v51 = vmul.f32 %v4760_v32, %v4181_v23 }
 0x105   : > { %2718 = vmatprep.mubr.bf16.mxu0 %v1615_v53  ;;  %v773_v34 = vadd.f32 %v741_v56, %v705_v30  ;;  %v860_v5 = vrot.slane %v4176_v47, 1  ;;  %v876_v4 = vrot.slane %v4181_v23, 1  ;;  %v987_v50 = vmul.f32 %v4773_v43, %v4014_v0 }
 0x106   : > { %v774_v38 = vadd.f32 %v742_v52, %v706_v13  ;;  %v988_v55 = vmul.f32 %v4773_v43, %v4020_v28  ;;  %v1055_v45 = vmul.f32 %v4776_v37, %v4151_v57  ;;  %v1056_v26 = vmul.f32 %v4776_v37, %v4161_v25 }
 0x107   : > { %v840_v20 = vadd.f32 %v809_v16, %v773_v34  ;;  %v4263_v2 = vsel %vm878_vm2, %v860_v5, %v876_v4  ;;  %v909_v0 = vsel %vm878_vm2, %v876_v4, %v860_v5  ;;  %v344_v15 = vrot.slane %v4246_v63, 7 }
 0x108   : > { %v841_v14 = vadd.f32 %v810_v51, %v774_v38  ;;  %v4270_v28 = vsel %vm916_vm3, %v909_v0, 0.0  ;;  %v1123_v35 = vmul.f32 %v3925_v12, %v4263_v2  ;;  %v360_v1 = vrot.slane %v4253_v39, 7 }
 0x109   : > { %v1019_v46 = vadd.f32 %v987_v50, %v840_v20  ;;  %v1124_v62 = vmul.f32 %v3925_v12, %v4270_v28  ;;  %v472_v44 = vmul.f32 %v4806_v33, %v4109_v8  ;;  %v473_v31 = vmul.f32 %v4806_v33, %v4101_v41 }
 0x10a   : > { %v1020_v29 = vadd.f32 %v988_v55, %v841_v14  ;;  %v4283_v48 = vsel %vm361_vm0, %v344_v15, %v360_v1  ;;  %v393_v61 = vsel %vm361_vm0, %v360_v1, %v344_v15  ;;  %v540_v59 = vmul.f32 %v4817_v7, %v4215_v60 }
 0x10b   : > { %v2815_v56 = vpop.eup %2814  ;;  %v1087_v53 = vadd.f32 %v1055_v45, %v1019_v46  ;;  %v4291_v30 = vsel %vm396_vm1, %v393_v61, 0.0  ;;  %v541_v41 = vmul.f32 %v4817_v7, %v4200_v19  ;;  %v609_v8 = vmul.f32 %v4821_v3, %v4283_v48 }
 0x10c   : > { %v2817_v52 = vpop.eup %2816  ;;  %v1447_v13 = vadd.f32 1.0, %v2815_v56  ;;  %v1088_v16 = vadd.f32 %v1056_v26, %v1020_v29  ;;  %v572_v51 = vadd.f32 %v540_v59, %v472_v44  ;;  %v608_v34 = vmul.f32 %v4821_v3, %v4291_v30 }
 0x10d   : > { %v2819_v5 = vpop.eup %2818  ;;  %v1448_v4 = vadd.f32 1.0, %v2817_v52  ;;  %v1155_v50 = vadd.f32 %v1123_v35, %v1087_v53  ;;  %v573_v38 = vadd.f32 %v541_v41, %v473_v31  ;;  %v675_v58 = vmul.f32 %v3147_v24, %v4083_v54 }
 0x10e   : > { %v2821_v55 = vpop.eup %2820  ;;  %v1479_v45 = vmul.f32 %v1447_v13, %v4206_v18  ;;  %v1437_v20 = vadd.f32 1.0, %v2819_v5  ;;  %v1156_v0 = vadd.f32 %v1124_v62, %v1088_v16  ;;  %v640_v15 = vadd.f32 %v608_v34, %v572_v51 }
 0x10f   : > { %v1480_v14 = vmul.f32 %v1448_v4, %v4208_v49  ;;  %v1438_v26 = vadd.f32 1.0, %v2821_v55  ;;  %v4304_v1 = vadd.f32 %v3949_v17, %v1155_v50  ;;  %v641_v46 = vadd.f32 %v609_v8, %v573_v38  ;;  %v4827_v50 = vld [vmem:[#allocation5_spill] sm:$0xff] }
 0x110   : > { %v1533_v44 = vmul.f32 %v3284_v40, %v1479_v45  ;;  %v1469_v35 = vmul.f32 %v1437_v20, %v4211_v36  ;;  %v4309_v31 = vadd.f32 %v3949_v17, %v1156_v0  ;;  %v676_v18 = vmul.f32 %v3147_v24, %v4088_v22  ;;  %v4828_v20 = vld [vmem:[#allocation2_spill] sm:$0xff] }
 0x111   : > { %v1534_v62 = vmul.f32 %v3284_v40, %v1480_v14  ;;  %v1470_v29 = vmul.f32 %v1438_v26, %v4218_v10  ;;  %v1257_v49 = vmul.f32 %v4304_v1, %v4304_v1  ;;  %v707_v8 = vadd.f32 %v675_v58, %v640_v15 }
 0x112   : > { %v1569_v61 = vadd.f32 %v3288_v42, %v1533_v44  ;;  %v1523_v59 = vmul.f32 %v3284_v40, %v1469_v35  ;;  %v1258_v36 = vmul.f32 %v4309_v31, %v4309_v31  ;;  %v708_v16 = vadd.f32 %v676_v18, %v641_v46 }
 0x113   : > { %v1570_v56 = vadd.f32 %v3288_v42, %v1534_v62  ;;  %v1524_v53 = vmul.f32 %v3284_v40, %v1470_v29  ;;  %v1289_v41 = vmul.f32 %v1257_v49, %v4304_v1  ;;  %v743_v4 = vmul.f32 %v4757_v9, %v4176_v47 }
 0x114   : > { %v1601_v52 = vadd.f32 %v4002_v27, %v1569_v61  ;;  %v1559_v10 = vadd.f32 %v3288_v42, %v1523_v59  ;;  %v1290_v13 = vmul.f32 %v1258_v36, %v4309_v31  ;;  %v744_v58 = vmul.f32 %v4757_v9, %v4181_v23 }
 0x115   : > { %v1602_v51 = vadd.f32 %v4135_v21, %v1570_v56  ;;  %v1560_v34 = vadd.f32 %v3288_v42, %v1524_v53  ;;  %v1321_v5 = vmul.f32 0.044715, %v1289_v41  ;;  %v811_v27 = vmul.f32 %v4760_v32, %v4246_v63 }
 0x116   : > { %v1591_v38 = vadd.f32 %v4827_v50, %v1559_v10  ;;  %v1322_v55 = vmul.f32 0.044715, %v1290_v13  ;;  %v775_v15 = vadd.f32 %v743_v4, %v707_v8  ;;  %v776_v26 = vadd.f32 %v744_v58, %v708_v16 }
 0x117   : > { %v1621_v45 = vpack.c.bf16 %v1602_v51, %v1601_v52  ;;  %v1592_v0 = vadd.f32 %v4828_v20, %v1560_v34  ;;  %v1353_v21 = vadd.f32 %v1321_v5, %v4304_v1  ;;  %v812_v46 = vmul.f32 %v4760_v32, %v4253_v39 }
 0x118   : > { %v1354_v14 = vadd.f32 %v1322_v55, %v4309_v31  ;;  %v861_v44 = vrot.slane %v4246_v63, 1  ;;  %v842_v62 = vadd.f32 %v811_v27, %v775_v15  ;;  %v877_v29 = vrot.slane %v4253_v39, 1 }
 0x119   : > { %2730 = vmatprep.mubr.bf16.mxu1 %v1621_v45  ;;  %v1616_v35 = vpack.c.bf16 %v1592_v0, %v1591_v38  ;;  %v1385_v18 = vmul.f32 0.7978846, %v1353_v21  ;;  %v843_v61 = vadd.f32 %v812_v46, %v776_v26  ;;  %v989_v59 = vmul.f32 %v4773_v43, %v4151_v57 }
 0x11a   : > { %v1386_v49 = vmul.f32 0.7978846, %v1354_v14  ;;  %v990_v36 = vmul.f32 %v4773_v43, %v4161_v25  ;;  %v894_v56 = vsel %vm878_vm2, %v861_v44, %v877_v29  ;;  %v910_v53 = vsel %vm878_vm2, %v877_v29, %v861_v44 }
 0x11b   : > { %2719 = vmatmul.mubr.bf16.gmra.mrb[12].mxu0 %v1616_v35  ;;  %2822 = vtanh.f32 %v1385_v18  ;;  %v1057_v41 = vmul.f32 %v4776_v37, %v4263_v2  ;;  %v956_v8 = vsel %vm916_vm3, %v910_v53, 0.0  ;;  %v1021_v52 = vadd.f32 %v989_v59, %v842_v62 }
 0x11c   : > { %2824 = vtanh.f32 %v1386_v49  ;;  %v1022_v57 = vadd.f32 %v990_v36, %v843_v61  ;;  %v1058_v25 = vmul.f32 %v4776_v37, %v4270_v28  ;;  %v1125_v10 = vmul.f32 %v3925_v12, %v894_v56 }
 0x11d   : > { %v1126_v13 = vmul.f32 %v3925_v12, %v956_v8  ;;  %v474_v6 = vmul.f32 %v4806_v33, %v4215_v60  ;;  %v1089_v16 = vadd.f32 %v1057_v41, %v1021_v52  ;;  %v475_v51 = vmul.f32 %v4806_v33, %v4200_v19 }
 0x11e   : > { %v542_v11 = vmul.f32 %v4817_v7, %v4291_v30  ;;  %v543_v34 = vmul.f32 %v4817_v7, %v4283_v48  ;;  %v1090_v5 = vadd.f32 %v1058_v25, %v1022_v57  ;;  %v610_v4 = vmul.f32 0.0, %v4821_v3 }
 0x11f   : > { %v677_v50 = vmul.f32 %v3147_v24, %v4176_v47  ;;  %v1157_v38 = vadd.f32 %v1125_v10, %v1089_v16  ;;  %v678_v60 = vmul.f32 %v3147_v24, %v4181_v23  ;;  %v745_v33 = vmul.f32 %v4757_v9, %v4246_v63 }
 0x120   : > { %v574_v55 = vadd.f32 %v542_v11, %v474_v6  ;;  %v575_v58 = vadd.f32 %v543_v34, %v475_v51  ;;  %v1158_v27 = vadd.f32 %v1126_v13, %v1090_v5  ;;  %v746_v3 = vmul.f32 %v4757_v9, %v4253_v39 }
 0x121   : > { %v1195_v19 = vadd.f32 %v3949_v17, %v1157_v38  ;;  %v1225_v48 = vmul.f32 0.5, %v4304_v1  ;;  %v813_v24 = vmul.f32 0.0, %v4760_v32  ;;  %v1226_v14 = vmul.f32 0.5, %v4309_v31 }
 0x122   : > { %v642_v30 = vadd.f32 %v610_v4, %v574_v55  ;;  %v643_v7 = vadd.f32 %v610_v4, %v575_v58  ;;  %v1196_v45 = vadd.f32 %v3949_v17, %v1158_v27  ;;  %v991_v46 = vmul.f32 %v4773_v43, %v4263_v2 }
 0x123   : > { %v1259_v20 = vmul.f32 %v1195_v19, %v1195_v19  ;;  %v992_v44 = vmul.f32 %v4773_v43, %v4270_v28  ;;  %v1059_v61 = vmul.f32 %v4776_v37, %v894_v56  ;;  %v1060_v32 = vmul.f32 %v4776_v37, %v956_v8 }
 0x124   : > { %v709_v0 = vadd.f32 %v677_v50, %v642_v30  ;;  %v710_v21 = vadd.f32 %v678_v60, %v643_v7  ;;  %v1260_v26 = vmul.f32 %v1196_v45, %v1196_v45  ;;  %v1127_v52 = vmul.f32 0.0, %v3925_v12 }
 0x125   : > { %v2823_v15 = vpop.eup %2822  ;;  %v1291_v1 = vmul.f32 %v1259_v20, %v1195_v19  ;;  %v1227_v7 = vmul.f32 0.5, %v1195_v19 }
 0x126   : > { %v2825_v9 = vpop.eup %2824  ;;  %v1449_v35 = vadd.f32 1.0, %v2823_v15  ;;  %v777_v18 = vadd.f32 %v745_v33, %v709_v0  ;;  %v778_v62 = vadd.f32 %v746_v3, %v710_v21  ;;  %v1292_v49 = vmul.f32 %v1260_v26, %v1196_v45 }
 0x127   : > { %v1450_v29 = vadd.f32 1.0, %v2825_v9  ;;  %v1323_v31 = vmul.f32 0.044715, %v1291_v1  ;;  %v1228_v3 = vmul.f32 0.5, %v1196_v45 }
 0x128   : > { %v1481_v59 = vmul.f32 %v1449_v35, %v1225_v48  ;;  %v844_v36 = vadd.f32 %v813_v24, %v777_v18  ;;  %v845_v53 = vadd.f32 %v813_v24, %v778_v62  ;;  %v1324_v2 = vmul.f32 0.044715, %v1292_v49 }
 0x129   : > { %v1482_v41 = vmul.f32 %v1450_v29, %v1226_v14  ;;  %v1355_v28 = vadd.f32 %v1323_v31, %v1195_v19 }
 0x12a   : > { %v1535_v43 = vmul.f32 %v3284_v40, %v1481_v59  ;;  %v1023_v57 = vadd.f32 %v991_v46, %v844_v36  ;;  %v1024_v25 = vadd.f32 %v992_v44, %v845_v53  ;;  %v1356_v13 = vadd.f32 %v1324_v2, %v1196_v45 }
 0x12b   : > { %v1536_v10 = vmul.f32 %v3284_v40, %v1482_v41  ;;  %v1387_v6 = vmul.f32 0.7978846, %v1355_v28 }
 0x12c   : > { %v1571_v56 = vadd.f32 %v3288_v42, %v1535_v43  ;;  %v1091_v37 = vadd.f32 %v1059_v61, %v1023_v57  ;;  %v1092_v8 = vadd.f32 %v1060_v32, %v1024_v25  ;;  %v1388_v51 = vmul.f32 0.7978846, %v1356_v13 }
 0x12d   : > { %v1572_v16 = vadd.f32 %v3288_v42, %v1536_v10  ;;  %2826 = vtanh.f32 %v1387_v6 }
 0x12e   : > { %v1603_v11 = vadd.f32 %v1571_v56, %v4083_v54  ;;  %v1159_v12 = vadd.f32 %v1127_v52, %v1091_v37  ;;  %v1160_v34 = vadd.f32 %v1127_v52, %v1092_v8  ;;  %2828 = vtanh.f32 %v1388_v51 }
 0x12f   : > { %v1604_v5 = vadd.f32 %v1572_v16, %v4088_v22 }
 0x130   : > { %v1197_v4 = vadd.f32 %v3949_v17, %v1159_v12  ;;  %v1198_v50 = vadd.f32 %v3949_v17, %v1160_v34  ;;  %v4399_v17 = vld [vmem:[%s4615_s5] ss:$0 sm:$0xff] }
 0x131   : > { %v1622_v38 = vpack.c.bf16 %v1604_v5, %v1603_v11 }
 0x132   : > { %v1261_v55 = vmul.f32 %v1197_v4, %v1197_v4  ;;  %v1262_v58 = vmul.f32 %v1198_v50, %v1198_v50  ;;  %v1229_v25 = vmul.f32 0.5, %v1197_v4  ;;  %v1230_v6 = vmul.f32 0.5, %v1198_v50 }
 0x133   : > { %2731 = vmatmul.mubr.bf16.gmra.mrb[8].mxu1 %v1622_v38 }
 0x134   : > { %v1293_v60 = vmul.f32 %v1261_v55, %v1197_v4  ;;  %v1294_v27 = vmul.f32 %v1262_v58, %v1198_v50 }
 0x136   : > { %v1325_v33 = vmul.f32 0.044715, %v1293_v60  ;;  %v1326_v30 = vmul.f32 0.044715, %v1294_v27 }
 0x137   : > { %v2827_v54 = vpop.eup %2826 }
 0x138   : > { %v1357_v48 = vadd.f32 %v1325_v33, %v1197_v4  ;;  %v1358_v20 = vadd.f32 %v1326_v30, %v1198_v50  ;;  %v2829_v0 = vpop.eup %2828  ;;  %v1451_v22 = vadd.f32 1.0, %v2827_v54 }
 0x139   : > { %v1452_v21 = vadd.f32 1.0, %v2829_v0 }
 0x13a   : > { %v1389_v24 = vmul.f32 0.7978846, %v1357_v48  ;;  %v1390_v15 = vmul.f32 0.7978846, %v1358_v20  ;;  %v1483_v14 = vmul.f32 %v1451_v22, %v1227_v7 }
 0x13b   : > { %v1484_v26 = vmul.f32 %v1452_v21, %v1228_v3 }
 0x13c   : > { %2830 = vtanh.f32 %v1389_v24  ;;  %v1537_v46 = vmul.f32 %v3284_v40, %v1483_v14  ;;  %v2708_v19 = vpop.f32.mrb[0].mxu0 }
 0x13d   : > { %2832 = vtanh.f32 %v1390_v15  ;;  %v1538_v45 = vmul.f32 %v3284_v40, %v1484_v26  ;;  %v1722_v44 = vadd.f32 %v2708_v19, %v4399_v17  ;;  %v1713_v9 = vpop.f32.mrb[1].mxu0 }
 0x13e   : > { %v1573_v35 = vadd.f32 %v3288_v42, %v1537_v46  ;;  %v1714_v1 = vadd.f32 %v4399_v17, %v1713_v9  ;;  %v2709_v18 = vpop.f32.mrb[2].mxu0 }
 0x13f   : > { %v1574_v62 = vadd.f32 %v3288_v42, %v1538_v45  ;;  %v1874_v29 = vmul.f32 %v1722_v44, %v1722_v44  ;;  %v1725_v49 = vadd.f32 %v2709_v18, %v4399_v17  ;;  %v1716_v61 = vpop.f32.mrb[3].mxu0  ;;  %v1842_v15 = vmul.f32 0.5, %v1722_v44 }
 0x140   : > { %v1605_v32 = vadd.f32 %v1573_v35, %v4176_v47  ;;  %v1872_v59 = vmul.f32 %v1714_v1, %v1714_v1  ;;  %v1717_v31 = vadd.f32 %v4399_v17, %v1716_v61  ;;  %v1840_v21 = vmul.f32 0.5, %v1714_v1 }
 0x141   : > { %v1606_v36 = vadd.f32 %v1574_v62, %v4181_v23  ;;  %v1906_v53 = vmul.f32 %v1874_v29, %v1722_v44  ;;  %v1875_v41 = vmul.f32 %v1725_v49, %v1725_v49  ;;  %v1843_v14 = vmul.f32 0.5, %v1725_v49 }
 0x142   : > { %v1904_v2 = vmul.f32 %v1872_v59, %v1714_v1  ;;  %v1873_v52 = vmul.f32 %v1717_v31, %v1717_v31  ;;  %v1841_v19 = vmul.f32 0.5, %v1717_v31 }
 0x143   : > { %v1623_v43 = vpack.c.bf16 %v1606_v36, %v1605_v32  ;;  %v1938_v28 = vmul.f32 0.044715, %v1906_v53  ;;  %v1907_v57 = vmul.f32 %v1875_v41, %v1725_v49 }
 0x144   : > { %v1936_v10 = vmul.f32 0.044715, %v1904_v2  ;;  %v1905_v13 = vmul.f32 %v1873_v52, %v1717_v31 }
 0x145   : > { %2734 = vmatprep.mubr.bf16.mxu1 %v1623_v43  ;;  %v1970_v37 = vadd.f32 %v1938_v28, %v1722_v44  ;;  %v1939_v47 = vmul.f32 0.044715, %v1907_v57 }
 0x146   : > { %v2831_v56 = vpop.eup %2830  ;;  %v1968_v51 = vadd.f32 %v1936_v10, %v1714_v1  ;;  %v1937_v11 = vmul.f32 0.044715, %v1905_v13 }
 0x147   : > { %v2833_v8 = vpop.eup %2832  ;;  %v1453_v16 = vadd.f32 1.0, %v2831_v56  ;;  %v2002_v12 = vmul.f32 0.7978846, %v1970_v37  ;;  %v1971_v34 = vadd.f32 %v1939_v47, %v1725_v49 }
 0x148   : > { %v1454_v23 = vadd.f32 1.0, %v2833_v8  ;;  %v2000_v38 = vmul.f32 0.7978846, %v1968_v51  ;;  %v1969_v55 = vadd.f32 %v1937_v11, %v1717_v31 }
 0x149   : > { %v1485_v5 = vmul.f32 %v1453_v16, %v1229_v25  ;;  %2834 = vtanh.f32 %v2002_v12  ;;  %v2003_v4 = vmul.f32 0.7978846, %v1971_v34 }
 0x14a   : > { %v1486_v58 = vmul.f32 %v1454_v23, %v1230_v6  ;;  %2836 = vtanh.f32 %v2000_v38  ;;  %v2001_v27 = vmul.f32 0.7978846, %v1969_v55 }
 0x14b   : > { %v1539_v60 = vmul.f32 %v3284_v40, %v1485_v5  ;;  %2838 = vtanh.f32 %v2003_v4 }
 0x14c   : > { %v1540_v50 = vmul.f32 %v3284_v40, %v1486_v58  ;;  %2840 = vtanh.f32 %v2001_v27 }
 0x14d   : > { %v1575_v33 = vadd.f32 %v3288_v42, %v1539_v60 }
 0x14e   : > { %v1576_v30 = vadd.f32 %v3288_v42, %v1540_v50 }
 0x14f   : > { %v1607_v7 = vadd.f32 %v1575_v33, %v4246_v63 }
 0x150   : > { %v1608_v54 = vadd.f32 %v1576_v30, %v4253_v39 }
 0x152   : > { %v1624_v3 = vpack.c.bf16 %v1608_v54, %v1607_v7 }
 0x153   : > { %v2835_v48 = vpop.eup %2834 }
 0x154   : > { %2735 = vmatmul.mubr.bf16.gmra.mrb[12].mxu1 %v1624_v3  ;;  %v2837_v20 = vpop.eup %2836  ;;  %v2066_v0 = vadd.f32 1.0, %v2835_v48 }
 0x155   : > { %v2839_v22 = vpop.eup %2838  ;;  %v2064_v24 = vadd.f32 1.0, %v2837_v20 }
 0x156   : > { %v2841_v40 = vpop.eup %2840  ;;  %v2067_v26 = vadd.f32 1.0, %v2839_v22  ;;  %v2098_v45 = vmul.f32 %v2066_v0, %v1842_v15 }
 0x157   : > { %v2096_v46 = vmul.f32 %v2064_v24, %v1840_v21  ;;  %v2065_v42 = vadd.f32 1.0, %v2841_v40 }
 0x158   : > { %v2099_v63 = vmul.f32 %v2067_v26, %v1843_v14  ;;  %v2328_v62 = vmul.f32 %v2098_v45, %v2098_v45 }
 0x159   : > { %v2097_v39 = vmul.f32 %v2065_v42, %v1841_v19  ;;  %v2326_v35 = vmul.f32 %v2096_v46, %v2096_v46 }
 0x15a   : > { %v2579_v9 = vpack.c.bf16 %v2099_v63, %v2098_v45  ;;  %v2329_v61 = vmul.f32 %v2099_v63, %v2099_v63 }
 0x15b   : > { %v2574_v1 = vpack.c.bf16 %v2097_v39, %v2096_v46  ;;  %v2288_v44 = vadd.f32 %v2097_v39, %v2096_v46  ;;  %v2327_v18 = vmul.f32 %v2097_v39, %v2097_v39 }
 0x15c   : > { %2651 = vst [vmem:[%s4421_s19 + $0x8] sm:$0xff] %v2579_v9  }
 0x15d   : > { %2575 = vst [vmem:[%s4421_s19] sm:$0xff] %v2574_v1   ;;  %v2289_v29 = vadd.f32 %v2288_v44, %v2098_v45  ;;  %v2358_v49 = vadd.f32 %v2327_v18, %v2326_v35 }
 0x15f   : > { %v2359_v32 = vadd.f32 %v2358_v49, %v2328_v62  ;;  %v4425_v59 = vadd.f32 %v2289_v29, %v2099_v63 }
 0x161   : > { %v4427_v31 = vadd.f32 %v2359_v32, %v2329_v61 }
 0x189   : > { %v2712_v36 = vpop.f32.mrb[4].mxu0 }
 0x18a   : > { %v4430_v53 = vadd.f32 %v2712_v36, %v4399_v17  ;;  %v1729_v41 = vpop.f32.mrb[5].mxu0 }
 0x18b   : > { %v4433_v2 = vadd.f32 %v4399_v17, %v1729_v41  ;;  %v2713_v52 = vpop.f32.mrb[6].mxu0 }
 0x18c   : > { %v1878_v43 = vmul.f32 %v4430_v53, %v4430_v53  ;;  %v4438_v28 = vadd.f32 %v2713_v52, %v4399_v17  ;;  %v1732_v57 = vpop.f32.mrb[7].mxu0  ;;  %v1846_v41 = vmul.f32 0.5, %v4430_v53 }
 0x18d   : > { %v1876_v25 = vmul.f32 %v4433_v2, %v4433_v2  ;;  %v4443_v10 = vadd.f32 %v4399_v17, %v1732_v57  ;;  %v1844_v32 = vmul.f32 0.5, %v4433_v2 }
 0x18e   : > { %v1910_v13 = vmul.f32 %v1878_v43, %v4430_v53  ;;  %v2724_v56 = vpop.f32.mrb[0].mxu1  ;;  %v1879_v6 = vmul.f32 %v4438_v28, %v4438_v28  ;;  %v1847_v52 = vmul.f32 0.5, %v4438_v28 }
 0x18f   : > { %v1786_v37 = vadd.f32 %v2724_v56, %v4399_v17  ;;  %v1908_v47 = vmul.f32 %v1876_v25, %v4433_v2  ;;  %v1777_v8 = vpop.f32.mrb[1].mxu1  ;;  %v1877_v12 = vmul.f32 %v4443_v10, %v4443_v10 }
 0x190   : > { %v1942_v16 = vmul.f32 0.044715, %v1910_v13  ;;  %v4451_v51 = vadd.f32 %v4399_v17, %v1777_v8  ;;  %v1911_v11 = vmul.f32 %v1879_v6, %v4438_v28  ;;  %v2725_v23 = vpop.f32.mrb[2].mxu1 }
 0x191   : > { %v1890_v34 = vmul.f32 %v1786_v37, %v1786_v37  ;;  %v1940_v5 = vmul.f32 0.044715, %v1908_v47  ;;  %v1789_v38 = vadd.f32 %v2725_v23, %v4399_v17  ;;  %v1780_v55 = vpop.f32.mrb[3].mxu1  ;;  %v1909_v3 = vmul.f32 %v1877_v12, %v4443_v10 }
 0x192   : > { %v1974_v58 = vadd.f32 %v1942_v16, %v4430_v53  ;;  %v1888_v4 = vmul.f32 %v4451_v51, %v4451_v51  ;;  %v1943_v60 = vmul.f32 0.044715, %v1911_v11  ;;  %v1781_v22 = vadd.f32 %v4399_v17, %v1780_v55 }
 0x193   : > { %v1922_v27 = vmul.f32 %v1890_v34, %v1786_v37  ;;  %v1972_v50 = vadd.f32 %v1940_v5, %v4433_v2  ;;  %v1891_v33 = vmul.f32 %v1789_v38, %v1789_v38  ;;  %v1941_v40 = vmul.f32 0.044715, %v1909_v3 }
 0x194   : > { %v2006_v30 = vmul.f32 0.7978846, %v1974_v58  ;;  %v1920_v7 = vmul.f32 %v1888_v4, %v4451_v51  ;;  %v1975_v54 = vadd.f32 %v1943_v60, %v4438_v28  ;;  %v1889_v19 = vmul.f32 %v1781_v22, %v1781_v22 }
 0x195   : > { %v1954_v48 = vmul.f32 0.044715, %v1922_v27  ;;  %v2004_v20 = vmul.f32 0.7978846, %v1972_v50  ;;  %v1923_v0 = vmul.f32 %v1891_v33, %v1789_v38  ;;  %v1973_v46 = vadd.f32 %v1941_v40, %v4443_v10 }
 0x196   : > { %2842 = vtanh.f32 %v2006_v30  ;;  %v1952_v21 = vmul.f32 0.044715, %v1920_v7  ;;  %v2007_v24 = vmul.f32 0.7978846, %v1975_v54  ;;  %v1921_v9 = vmul.f32 %v1889_v19, %v1781_v22 }
 0x197   : > { %v1986_v15 = vadd.f32 %v1954_v48, %v1786_v37  ;;  %2844 = vtanh.f32 %v2004_v20  ;;  %v1955_v14 = vmul.f32 0.044715, %v1923_v0  ;;  %v2005_v39 = vmul.f32 0.7978846, %v1973_v46 }
 0x198   : > { %v1984_v26 = vadd.f32 %v1952_v21, %v4451_v51  ;;  %2846 = vtanh.f32 %v2007_v24  ;;  %v1953_v1 = vmul.f32 0.044715, %v1921_v9  ;;  %v1858_v57 = vmul.f32 0.5, %v1786_v37 }
 0x199   : > { %v2018_v42 = vmul.f32 0.7978846, %v1986_v15  ;;  %v1987_v45 = vadd.f32 %v1955_v14, %v1789_v38  ;;  %v1859_v23 = vmul.f32 0.5, %v1789_v38  ;;  %v1856_v12 = vmul.f32 0.5, %v4451_v51 }
 0x19a   : > { %v2016_v63 = vmul.f32 0.7978846, %v1984_v26  ;;  %v1985_v44 = vadd.f32 %v1953_v1, %v1781_v22  ;;  %v1845_v58 = vmul.f32 0.5, %v4443_v10  ;;  %v1857_v60 = vmul.f32 0.5, %v1781_v22 }
 0x19b   : > { %2848 = vtanh.f32 %v2018_v42  ;;  %v2019_v35 = vmul.f32 0.7978846, %v1987_v45 }
 0x19c   : > { %2850 = vtanh.f32 %v2016_v63  ;;  %v2017_v62 = vmul.f32 0.7978846, %v1985_v44 }
 0x19d   : > { %2852 = vtanh.f32 %v2019_v35 }
 0x19e   : > { %2854 = vtanh.f32 %v2005_v39 }
 0x19f   : > { %2856 = vtanh.f32 %v2017_v62 }
 0x1a0   : > { %v2843_v18 = vpop.eup %2842 }
 0x1a1   : > { %v2845_v29 = vpop.eup %2844  ;;  %v2070_v49 = vadd.f32 1.0, %v2843_v18 }
 0x1a2   : > { %v2847_v61 = vpop.eup %2846  ;;  %v2068_v36 = vadd.f32 1.0, %v2845_v29 }
 0x1a3   : > { %v2071_v43 = vadd.f32 1.0, %v2847_v61  ;;  %v2102_v56 = vmul.f32 %v2070_v49, %v1846_v41 }
 0x1a4   : > { %v2100_v25 = vmul.f32 %v2068_v36, %v1844_v32 }
 0x1a5   : > { %v2849_v13 = vpop.eup %2848  ;;  %v2103_v6 = vmul.f32 %v2071_v43, %v1847_v52  ;;  %v2332_v54 = vmul.f32 %v2102_v56, %v2102_v56 }
 0x1a6   : > { %v2851_v47 = vpop.eup %2850  ;;  %v2082_v8 = vadd.f32 1.0, %v2849_v13  ;;  %v2291_v16 = vadd.f32 %v4425_v59, %v2100_v25  ;;  %v2330_v11 = vmul.f32 %v2100_v25, %v2100_v25 }
 0x1a7   : > { %v2853_v2 = vpop.eup %2852  ;;  %v2589_v34 = vpack.c.bf16 %v2103_v6, %v2102_v56  ;;  %v2080_v37 = vadd.f32 1.0, %v2851_v47  ;;  %v2333_v20 = vmul.f32 %v2103_v6, %v2103_v6 }
 0x1a8   : > { %v2855_v53 = vpop.eup %2854  ;;  %v4472_v5 = vmul.f32 %v2082_v8, %v1858_v57  ;;  %v2361_v28 = vadd.f32 %v4427_v31, %v2330_v11  ;;  %v2083_v55 = vadd.f32 1.0, %v2853_v2 }
 0x1a9   : > { %2653 = vst [vmem:[%s4421_s19 + $0x18] sm:$0xff] %v2589_v34   ;;  %v2069_v4 = vadd.f32 1.0, %v2855_v53  ;;  %v2857_v27 = vpop.eup %2856  ;;  %v4479_v51 = vmul.f32 %v2080_v37, %v1856_v12 }
 0x1aa   : > { %v4477_v59 = vmul.f32 %v2083_v55, %v1859_v23  ;;  %v2081_v7 = vadd.f32 1.0, %v2857_v27 }
 0x1ab   : > { %v2101_v38 = vmul.f32 %v2069_v4, %v1845_v58 }
 0x1ac   : > { %v2619_v50 = vpack.c.bf16 %v4477_v59, %v4472_v5  ;;  %v4485_v48 = vmul.f32 %v2081_v7, %v1857_v60 }
 0x1ad   : > { %v2584_v31 = vpack.c.bf16 %v2101_v38, %v2100_v25  ;;  %v2292_v33 = vadd.f32 %v2291_v16, %v2101_v38  ;;  %v2331_v30 = vmul.f32 %v2101_v38, %v2101_v38 }
 0x1ae   : > { %2659 = vst [vmem:[%s4421_s19 + $0x48] sm:$0xff] %v2619_v50   ;;  %v2614_v22 = vpack.c.bf16 %v4485_v48, %v4479_v51 }
 0x1af   : > { %2652 = vst [vmem:[%s4421_s19 + $0x10] sm:$0xff] %v2584_v31   ;;  %v2293_v10 = vadd.f32 %v2292_v33, %v2102_v56  ;;  %v2362_v3 = vadd.f32 %v2361_v28, %v2331_v30 }
 0x1b0   : > { %2658 = vst [vmem:[%s4421_s19 + $0x40] sm:$0xff] %v2614_v22  }
 0x1b1   : > { %v2363_v0 = vadd.f32 %v2362_v3, %v2332_v54  ;;  %v4489_v21 = vadd.f32 %v2293_v10, %v2103_v6 }
 0x1b3   : > { %v4492_v24 = vadd.f32 %v2363_v0, %v2333_v20 }
 0x1bc   : > { %v2716_v40 = vpop.f32.mrb[8].mxu0 }
 0x1bd   : > { %v1754_v15 = vadd.f32 %v2716_v40, %v4399_v17  ;;  %v1745_v14 = vpop.f32.mrb[9].mxu0 }
 0x1be   : > { %v1746_v26 = vadd.f32 %v4399_v17, %v1745_v14  ;;  %v2717_v46 = vpop.f32.mrb[10].mxu0 }
 0x1bf   : > { %v1882_v19 = vmul.f32 %v1754_v15, %v1754_v15  ;;  %v1757_v42 = vadd.f32 %v2717_v46, %v4399_v17  ;;  %v1748_v45 = vpop.f32.mrb[11].mxu0  ;;  %v1850_v30 = vmul.f32 0.5, %v1754_v15 }
 0x1c0   : > { %v1880_v63 = vmul.f32 %v1746_v26, %v1746_v26  ;;  %v1749_v39 = vadd.f32 %v4399_v17, %v1748_v45  ;;  %v1848_v0 = vmul.f32 0.5, %v1746_v26 }
 0x1c1   : > { %v1914_v9 = vmul.f32 %v1882_v19, %v1754_v15  ;;  %v1883_v35 = vmul.f32 %v1757_v42, %v1757_v42  ;;  %v1851_v19 = vmul.f32 0.5, %v1757_v42 }
 0x1c2   : > { %v1912_v1 = vmul.f32 %v1880_v63, %v1746_v26  ;;  %v1881_v44 = vmul.f32 %v1749_v39, %v1749_v39 }
 0x1c3   : > { %v1946_v18 = vmul.f32 0.044715, %v1914_v9  ;;  %v1915_v62 = vmul.f32 %v1883_v35, %v1757_v42 }
 0x1c4   : > { %v1944_v29 = vmul.f32 0.044715, %v1912_v1  ;;  %v1913_v49 = vmul.f32 %v1881_v44, %v1749_v39  ;;  %v1849_v1 = vmul.f32 0.5, %v1749_v39 }
 0x1c5   : > { %v1978_v61 = vadd.f32 %v1946_v18, %v1754_v15  ;;  %v1947_v32 = vmul.f32 0.044715, %v1915_v62 }
 0x1c6   : > { %v1976_v36 = vadd.f32 %v1944_v29, %v1746_v26  ;;  %v1945_v41 = vmul.f32 0.044715, %v1913_v49 }
 0x1c7   : > { %v2010_v52 = vmul.f32 0.7978846, %v1978_v61  ;;  %v1979_v43 = vadd.f32 %v1947_v32, %v1757_v42 }
 0x1c8   : > { %v2008_v57 = vmul.f32 0.7978846, %v1976_v36  ;;  %v1977_v25 = vadd.f32 %v1945_v41, %v1749_v39 }
 0x1c9   : > { %2858 = vtanh.f32 %v2010_v52  ;;  %v2728_v13 = vpop.f32.mrb[4].mxu1  ;;  %v2011_v56 = vmul.f32 0.7978846, %v1979_v43 }
 0x1ca   : > { %v4499_v6 = vadd.f32 %v2728_v13, %v4399_v17  ;;  %2860 = vtanh.f32 %v2008_v57  ;;  %v1793_v47 = vpop.f32.mrb[5].mxu1  ;;  %v2009_v8 = vmul.f32 0.7978846, %v1977_v25 }
 0x1cb   : > { %v4502_v16 = vadd.f32 %v4399_v17, %v1793_v47  ;;  %2862 = vtanh.f32 %v2011_v56  ;;  %v2729_v11 = vpop.f32.mrb[6].mxu1 }
 0x1cc   : > { %v1894_v23 = vmul.f32 %v4499_v6, %v4499_v6  ;;  %v1805_v2 = vadd.f32 %v2729_v11, %v4399_v17  ;;  %2864 = vtanh.f32 %v2009_v8  ;;  %v1796_v12 = vpop.f32.mrb[7].mxu1  ;;  %v1862_v25 = vmul.f32 0.5, %v4499_v6 }
 0x1cd   : > { %v1892_v34 = vmul.f32 %v4502_v16, %v4502_v16  ;;  %v1797_v53 = vadd.f32 %v4399_v17, %v1796_v12  ;;  %v1860_v8 = vmul.f32 0.5, %v4502_v16 }
 0x1ce   : > { %v1926_v28 = vmul.f32 %v1894_v23, %v4499_v6  ;;  %v1895_v37 = vmul.f32 %v1805_v2, %v1805_v2  ;;  %v1863_v23 = vmul.f32 0.5, %v1805_v2 }
 0x1cf   : > { %v1924_v55 = vmul.f32 %v1892_v34, %v4502_v16  ;;  %v1893_v58 = vmul.f32 %v1797_v53, %v1797_v53 }
 0x1d0   : > { %v1958_v4 = vmul.f32 0.044715, %v1926_v28  ;;  %v1927_v38 = vmul.f32 %v1895_v37, %v1805_v2  ;;  %v1861_v37 = vmul.f32 0.5, %v1797_v53 }
 0x1d1   : > { %v1956_v60 = vmul.f32 0.044715, %v1924_v55  ;;  %v1925_v27 = vmul.f32 %v1893_v58, %v1797_v53 }
 0x1d2   : > { %v1990_v50 = vadd.f32 %v1958_v4, %v4499_v6  ;;  %v1959_v31 = vmul.f32 0.044715, %v1927_v38 }
 0x1d3   : > { %v2859_v33 = vpop.eup %2858  ;;  %v1988_v7 = vadd.f32 %v1956_v60, %v4502_v16  ;;  %v1957_v54 = vmul.f32 0.044715, %v1925_v27 }
 0x1d4   : > { %v2861_v10 = vpop.eup %2860  ;;  %v2074_v3 = vadd.f32 1.0, %v2859_v33  ;;  %v2022_v20 = vmul.f32 0.7978846, %v1990_v50  ;;  %v1991_v22 = vadd.f32 %v1959_v31, %v1805_v2 }
 0x1d5   : > { %v2863_v40 = vpop.eup %2862  ;;  %v2072_v14 = vadd.f32 1.0, %v2861_v10  ;;  %v2020_v46 = vmul.f32 0.7978846, %v1988_v7  ;;  %v1989_v45 = vadd.f32 %v1957_v54, %v1797_v53 }
 0x1d6   : > { %v2865_v63 = vpop.eup %2864  ;;  %2866 = vtanh.f32 %v2022_v20  ;;  %v2075_v9 = vadd.f32 1.0, %v2863_v40  ;;  %v2023_v35 = vmul.f32 0.7978846, %v1991_v22  ;;  %v2106_v62 = vmul.f32 %v2074_v3, %v1850_v30 }
 0x1d7   : > { %v2104_v44 = vmul.f32 %v2072_v14, %v1848_v0  ;;  %2868 = vtanh.f32 %v2020_v46  ;;  %v2073_v15 = vadd.f32 1.0, %v2865_v63  ;;  %v2021_v18 = vmul.f32 0.7978846, %v1989_v45 }
 0x1d8   : > { %v2107_v29 = vmul.f32 %v2075_v9, %v1851_v19  ;;  %2870 = vtanh.f32 %v2023_v35  ;;  %v2336_v52 = vmul.f32 %v2106_v62, %v2106_v62 }
 0x1d9   : > { %v2295_v26 = vadd.f32 %v4489_v21, %v2104_v44  ;;  %v2334_v49 = vmul.f32 %v2104_v44, %v2104_v44  ;;  %v2105_v61 = vmul.f32 %v2073_v15, %v1849_v1  ;;  %2872 = vtanh.f32 %v2021_v18 }
 0x1da   : > { %v2599_v42 = vpack.c.bf16 %v2107_v29, %v2106_v62  ;;  %v2337_v13 = vmul.f32 %v2107_v29, %v2107_v29 }
 0x1db   : > { %v2365_v32 = vadd.f32 %v4492_v24, %v2334_v49  ;;  %v2594_v36 = vpack.c.bf16 %v2105_v61, %v2104_v44  ;;  %v2296_v41 = vadd.f32 %v2295_v26, %v2105_v61  ;;  %v2335_v39 = vmul.f32 %v2105_v61, %v2105_v61 }
 0x1dc   : > { %2655 = vst [vmem:[%s4421_s19 + $0x28] sm:$0xff] %v2599_v42  }
 0x1dd   : > { %2654 = vst [vmem:[%s4421_s19 + $0x20] sm:$0xff] %v2594_v36   ;;  %v2297_v43 = vadd.f32 %v2296_v41, %v2106_v62  ;;  %v2366_v57 = vadd.f32 %v2365_v32, %v2335_v39 }
 0x1df   : > { %v2367_v56 = vadd.f32 %v2366_v57, %v2336_v52  ;;  %v4519_v47 = vadd.f32 %v2297_v43, %v2107_v29 }
 0x1e0   : > { %v2867_v21 = vpop.eup %2866 }
 0x1e1   : > { %v2869_v11 = vpop.eup %2868  ;;  %v2086_v24 = vadd.f32 1.0, %v2867_v21  ;;  %v4522_v12 = vadd.f32 %v2367_v56, %v2337_v13 }
 0x1e2   : > { %v2871_v34 = vpop.eup %2870  ;;  %v2084_v28 = vadd.f32 1.0, %v2869_v11 }
 0x1e3   : > { %v2873_v55 = vpop.eup %2872  ;;  %v4524_v58 = vmul.f32 %v2086_v24, %v1862_v25  ;;  %v2087_v6 = vadd.f32 1.0, %v2871_v34 }
 0x1e4   : > { %v4526_v4 = vmul.f32 %v2084_v28, %v1860_v8  ;;  %v2085_v38 = vadd.f32 1.0, %v2873_v55 }
 0x1e5   : > { %v4528_v60 = vmul.f32 %v2087_v6, %v1863_v23 }
 0x1e6   : > { %v4530_v16 = vmul.f32 %v2085_v38, %v1861_v37 }
 0x1e7   : > { %v2629_v27 = vpack.c.bf16 %v4528_v60, %v4524_v58 }
 0x1e8   : > { %v2624_v2 = vpack.c.bf16 %v4530_v16, %v4526_v4 }
 0x1e9   : > { %2661 = vst [vmem:[%s4421_s19 + $0x58] sm:$0xff] %v2629_v27  }
 0x1ea   : > { %2660 = vst [vmem:[%s4421_s19 + $0x50] sm:$0xff] %v2624_v2  }
 0x1ee   : > { %v2720_v53 = vpop.f32.mrb[12].mxu0 }
 0x1ef   : > { %v1770_v50 = vadd.f32 %v2720_v53, %v4399_v17  ;;  %v1761_v31 = vpop.f32.mrb[13].mxu0 }
 0x1f0   : > { %v1762_v33 = vadd.f32 %v4399_v17, %v1761_v31  ;;  %v2721_v30 = vpop.f32.mrb[14].mxu0 }
 0x1f1   : > { %v1886_v7 = vmul.f32 %v1770_v50, %v1770_v50  ;;  %v1773_v54 = vadd.f32 %v2721_v30, %v4399_v17  ;;  %v1764_v10 = vpop.f32.mrb[15].mxu0  ;;  %v1854_v25 = vmul.f32 0.5, %v1770_v50 }
 0x1f2   : > { %v1884_v3 = vmul.f32 %v1762_v33, %v1762_v33  ;;  %v1765_v20 = vadd.f32 %v4399_v17, %v1764_v10  ;;  %v1852_v52 = vmul.f32 0.5, %v1762_v33 }
 0x1f3   : > { %v1918_v0 = vmul.f32 %v1886_v7, %v1770_v50  ;;  %v1887_v22 = vmul.f32 %v1773_v54, %v1773_v54  ;;  %v1855_v56 = vmul.f32 0.5, %v1773_v54 }
 0x1f4   : > { %v1916_v40 = vmul.f32 %v1884_v3, %v1762_v33  ;;  %v1885_v14 = vmul.f32 %v1765_v20, %v1765_v20 }
 0x1f5   : > { %v1950_v46 = vmul.f32 0.044715, %v1918_v0  ;;  %v1919_v19 = vmul.f32 %v1887_v22, %v1773_v54 }
 0x1f6   : > { %v1948_v45 = vmul.f32 0.044715, %v1916_v40  ;;  %v1917_v63 = vmul.f32 %v1885_v14, %v1765_v20 }
 0x1f7   : > { %v1982_v9 = vadd.f32 %v1950_v46, %v1770_v50  ;;  %v1951_v35 = vmul.f32 0.044715, %v1919_v19 }
 0x1f8   : > { %v1980_v1 = vadd.f32 %v1948_v45, %v1762_v33  ;;  %v1949_v44 = vmul.f32 0.044715, %v1917_v63  ;;  %v1853_v33 = vmul.f32 0.5, %v1765_v20 }
 0x1f9   : > { %v2014_v15 = vmul.f32 0.7978846, %v1982_v9  ;;  %v1983_v18 = vadd.f32 %v1951_v35, %v1773_v54 }
 0x1fa   : > { %v2012_v62 = vmul.f32 0.7978846, %v1980_v1  ;;  %v1981_v29 = vadd.f32 %v1949_v44, %v1765_v20 }
 0x1fb   : > { %2874 = vtanh.f32 %v2014_v15  ;;  %v2015_v26 = vmul.f32 0.7978846, %v1983_v18 }
 0x1fc   : > { %2876 = vtanh.f32 %v2012_v62  ;;  %v2013_v49 = vmul.f32 0.7978846, %v1981_v29 }
 0x1fd   : > { %2878 = vtanh.f32 %v2015_v26 }
 0x1fe   : > { %2880 = vtanh.f32 %v2013_v49 }
 0x205   : > { %v2875_v61 = vpop.eup %2874 }
 0x206   : > { %v2877_v42 = vpop.eup %2876  ;;  %v2078_v32 = vadd.f32 1.0, %v2875_v61  ;;  %v2732_v36 = vpop.f32.mrb[8].mxu1 }
 0x207   : > { %v2879_v41 = vpop.eup %2878  ;;  %v4543_v39 = vadd.f32 %v2732_v36, %v4399_v17  ;;  %v2076_v43 = vadd.f32 1.0, %v2877_v42  ;;  %v1809_v57 = vpop.f32.mrb[9].mxu1  ;;  %v2342_v42 = vmul.f32 %v4479_v51, %v4479_v51 }
 0x208   : > { %v4546_v13 = vadd.f32 %v4399_v17, %v1809_v57  ;;  %v2079_v21 = vadd.f32 1.0, %v2879_v41  ;;  %v2733_v8 = vpop.f32.mrb[10].mxu1  ;;  %v2881_v28 = vpop.eup %2880  ;;  %v2110_v37 = vmul.f32 %v2078_v32, %v1854_v25  ;;  %v2344_v25 = vmul.f32 %v4472_v5, %v4472_v5 }
 0x209   : > { %v1898_v11 = vmul.f32 %v4543_v39, %v4543_v39  ;;  %v2108_v24 = vmul.f32 %v2076_v43, %v1852_v52  ;;  %v4551_v23 = vadd.f32 %v2733_v8, %v4399_v17  ;;  %v1812_v34 = vpop.f32.mrb[11].mxu1  ;;  %v2077_v54 = vadd.f32 1.0, %v2881_v28 }
 0x20a   : > { %v1896_v55 = vmul.f32 %v4546_v13, %v4546_v13  ;;  %v2111_v6 = vmul.f32 %v2079_v21, %v1855_v56  ;;  %v1813_v10 = vadd.f32 %v4399_v17, %v1812_v34  ;;  %v2340_v1 = vmul.f32 %v2110_v37, %v2110_v37 }
 0x20b   : > { %v1930_v38 = vmul.f32 %v1898_v11, %v4543_v39  ;;  %v2299_v27 = vadd.f32 %v4519_v47, %v2108_v24  ;;  %v2338_v2 = vmul.f32 %v2108_v24, %v2108_v24  ;;  %v1899_v31 = vmul.f32 %v4551_v23, %v4551_v23 }
 0x20c   : > { %v1928_v53 = vmul.f32 %v1896_v55, %v4546_v13  ;;  %v2609_v50 = vpack.c.bf16 %v2111_v6, %v2110_v37  ;;  %v2109_v22 = vmul.f32 %v2077_v54, %v1853_v33  ;;  %v1897_v40 = vmul.f32 %v1813_v10, %v1813_v10 }
 0x20d   : > { %v1962_v30 = vmul.f32 0.044715, %v1930_v38  ;;  %v2369_v7 = vadd.f32 %v4522_v12, %v2338_v2  ;;  %v1931_v0 = vmul.f32 %v1899_v31, %v4551_v23  ;;  %v2341_v29 = vmul.f32 %v2111_v6, %v2111_v6 }
 0x20e   : > { %v1960_v3 = vmul.f32 0.044715, %v1928_v53  ;;  %2657 = vst [vmem:[%s4421_s19 + $0x38] sm:$0xff] %v2609_v50   ;;  %v2604_v20 = vpack.c.bf16 %v2109_v22, %v2108_v24  ;;  %v2300_v45 = vadd.f32 %v2299_v27, %v2109_v22  ;;  %v2339_v63 = vmul.f32 %v2109_v22, %v2109_v22 }
 0x20f   : > { %v1994_v47 = vadd.f32 %v1962_v30, %v4543_v39  ;;  %v1963_v46 = vmul.f32 0.044715, %v1931_v0  ;;  %v1929_v35 = vmul.f32 %v1897_v40, %v1813_v10  ;;  %v2343_v52 = vmul.f32 %v4485_v48, %v4485_v48 }
 0x210   : > { %v1992_v14 = vadd.f32 %v1960_v3, %v4546_v13  ;;  %2656 = vst [vmem:[%s4421_s19 + $0x30] sm:$0xff] %v2604_v20   ;;  %v2301_v44 = vadd.f32 %v2300_v45, %v2110_v37  ;;  %v2370_v15 = vadd.f32 %v2369_v7, %v2339_v63  ;;  %v2345_v11 = vmul.f32 %v4477_v59, %v4477_v59 }
 0x211   : > { %v2026_v19 = vmul.f32 0.7978846, %v1994_v47  ;;  %v1995_v9 = vadd.f32 %v1963_v46, %v4551_v23  ;;  %v1961_v62 = vmul.f32 0.044715, %v1929_v35  ;;  %v1867_v55 = vmul.f32 0.5, %v4551_v23 }
 0x212   : > { %v2024_v12 = vmul.f32 0.7978846, %v1992_v14  ;;  %v2302_v26 = vadd.f32 %v2301_v44, %v2111_v6  ;;  %v2371_v49 = vadd.f32 %v2370_v15, %v2340_v1  ;;  %v2347_v27 = vmul.f32 %v4530_v16, %v4530_v16 }
 0x213   : > { %2882 = vtanh.f32 %v2026_v19  ;;  %v2027_v18 = vmul.f32 0.7978846, %v1995_v9  ;;  %v1993_v61 = vadd.f32 %v1961_v62, %v1813_v10  ;;  %v1864_v2 = vmul.f32 0.5, %v4546_v13 }
 0x214   : > { %2884 = vtanh.f32 %v2024_v12  ;;  %v2303_v32 = vadd.f32 %v2302_v26, %v4479_v51  ;;  %v2372_v36 = vadd.f32 %v2371_v49, %v2341_v29  ;;  %v1866_v51 = vmul.f32 0.5, %v4543_v39 }
 0x215   : > { %2886 = vtanh.f32 %v2027_v18  ;;  %v2025_v41 = vmul.f32 0.7978846, %v1993_v61  ;;  %v1865_v30 = vmul.f32 0.5, %v1813_v10  ;;  %v2348_v54 = vmul.f32 %v4524_v58, %v4524_v58 }
 0x216   : > { %v2304_v43 = vadd.f32 %v2303_v32, %v4485_v48  ;;  %v2373_v57 = vadd.f32 %v2372_v36, %v2342_v42  ;;  %v2346_v48 = vmul.f32 %v4526_v4, %v4526_v4  ;;  %v2349_v22 = vmul.f32 %v4528_v60, %v4528_v60 }
 0x217   : > { %2888 = vtanh.f32 %v2025_v41 }
 0x218   : > { %v2305_v56 = vadd.f32 %v2304_v43, %v4472_v5  ;;  %v2374_v21 = vadd.f32 %v2373_v57, %v2343_v52 }
 0x21a   : > { %v2375_v24 = vadd.f32 %v2374_v21, %v2344_v25  ;;  %v2306_v34 = vadd.f32 %v2305_v56, %v4477_v59 }
 0x21c   : > { %v2307_v6 = vadd.f32 %v2306_v34, %v4526_v4  ;;  %v2376_v5 = vadd.f32 %v2375_v24, %v2345_v11 }
 0x21d   : > { %v2883_v8 = vpop.eup %2882 }
 0x21e   : > { %v2885_v28 = vpop.eup %2884  ;;  %v2090_v37 = vadd.f32 1.0, %v2883_v8  ;;  %v2308_v50 = vadd.f32 %v2307_v6, %v4530_v16  ;;  %v2377_v31 = vadd.f32 %v2376_v5, %v2346_v48 }
 0x21f   : > { %v2887_v38 = vpop.eup %2886  ;;  %v2088_v39 = vadd.f32 1.0, %v2885_v28 }
 0x220   : > { %v2122_v53 = vmul.f32 %v2090_v37, %v1866_v51  ;;  %v2091_v59 = vadd.f32 1.0, %v2887_v38  ;;  %v2309_v23 = vadd.f32 %v2308_v50, %v4524_v58  ;;  %v2378_v7 = vadd.f32 %v2377_v31, %v2347_v27 }
 0x221   : > { %v2889_v4 = vpop.eup %2888  ;;  %v2120_v3 = vmul.f32 %v2088_v39, %v1864_v2 }
 0x222   : > { %v2123_v33 = vmul.f32 %v2091_v59, %v1867_v55  ;;  %v2089_v47 = vadd.f32 1.0, %v2889_v4  ;;  %v2310_v13 = vadd.f32 %v2309_v23, %v4528_v60  ;;  %v2379_v40 = vadd.f32 %v2378_v7, %v2348_v54 }
 0x223   : > { %v2350_v46 = vmul.f32 %v2120_v3, %v2120_v3  ;;  %v2352_v26 = vmul.f32 %v2122_v53, %v2122_v53 }
 0x224   : > { %v2639_v0 = vpack.c.bf16 %v2123_v33, %v2122_v53  ;;  %v2121_v16 = vmul.f32 %v2089_v47, %v1865_v30  ;;  %v2311_v10 = vadd.f32 %v2310_v13, %v2120_v3  ;;  %v2380_v19 = vadd.f32 %v2379_v40, %v2349_v22 }
 0x225   : > { %v2353_v52 = vmul.f32 %v2123_v33, %v2123_v33 }
 0x226   : > { %2663 = vst [vmem:[%s4421_s19 + $0x68] sm:$0xff] %v2639_v0   ;;  %v2634_v58 = vpack.c.bf16 %v2121_v16, %v2120_v3  ;;  %v2312_v63 = vadd.f32 %v2311_v10, %v2121_v16  ;;  %v2351_v35 = vmul.f32 %v2121_v16, %v2121_v16  ;;  %v2381_v1 = vadd.f32 %v2380_v19, %v2350_v46 }
 0x227   : > { %v2736_v14 = vpop.f32.mrb[12].mxu1 }
 0x228   : > { %v1834_v20 = vadd.f32 %v2736_v14, %v4399_v17  ;;  %v1825_v45 = vpop.f32.mrb[13].mxu1  ;;  %2662 = vst [vmem:[%s4421_s19 + $0x60] sm:$0xff] %v2634_v58   ;;  %v2313_v18 = vadd.f32 %v2312_v63, %v2122_v53  ;;  %v2382_v49 = vadd.f32 %v2381_v1, %v2351_v35 }
 0x229   : > { %v1826_v12 = vadd.f32 %v4399_v17, %v1825_v45  ;;  %v2737_v9 = vpop.f32.mrb[14].mxu1 }
 0x22a   : > { %v1902_v44 = vmul.f32 %v1834_v20, %v1834_v20  ;;  %v1837_v60 = vadd.f32 %v2737_v9, %v4399_v17  ;;  %v1828_v15 = vpop.f32.mrb[15].mxu1  ;;  %v2314_v36 = vadd.f32 %v2313_v18, %v2123_v33  ;;  %v2383_v43 = vadd.f32 %v2382_v49, %v2352_v26 }
 0x22b   : > { %v1900_v62 = vmul.f32 %v1826_v12, %v1826_v12  ;;  %v1829_v29 = vadd.f32 %v4399_v17, %v1828_v15  ;;  %v1870_v5 = vmul.f32 0.5, %v1834_v20  ;;  %v1868_v27 = vmul.f32 0.5, %v1826_v12 }
 0x22c   : > { %v1934_v61 = vmul.f32 %v1902_v44, %v1834_v20  ;;  %v1903_v42 = vmul.f32 %v1837_v60, %v1837_v60  ;;  %v2384_v11 = vadd.f32 %v2383_v43, %v2353_v52  ;;  %v1871_v53 = vmul.f32 0.5, %v1837_v60 }
 0x22d   : > { %v1932_v32 = vmul.f32 %v1900_v62, %v1826_v12  ;;  %v1901_v41 = vmul.f32 %v1829_v29, %v1829_v29  ;;  %v1869_v31 = vmul.f32 0.5, %v1829_v29 }
 0x22e   : > { %v1966_v57 = vmul.f32 0.044715, %v1934_v61  ;;  %v1935_v25 = vmul.f32 %v1903_v42, %v1837_v60 }
 0x22f   : > { %v1964_v56 = vmul.f32 0.044715, %v1932_v32  ;;  %v1933_v21 = vmul.f32 %v1901_v41, %v1829_v29 }
 0x230   : > { %v1998_v8 = vadd.f32 %v1966_v57, %v1834_v20  ;;  %v1967_v51 = vmul.f32 0.044715, %v1935_v25 }
 0x231   : > { %v1996_v24 = vadd.f32 %v1964_v56, %v1826_v12  ;;  %v1965_v34 = vmul.f32 0.044715, %v1933_v21 }
 0x232   : > { %v2030_v28 = vmul.f32 0.7978846, %v1998_v8  ;;  %v1999_v17 = vadd.f32 %v1967_v51, %v1837_v60 }
 0x233   : > { %v2028_v37 = vmul.f32 0.7978846, %v1996_v24  ;;  %v1997_v48 = vadd.f32 %v1965_v34, %v1829_v29 }
 0x234   : > { %2890 = vtanh.f32 %v2030_v28  ;;  %v2031_v55 = vmul.f32 0.7978846, %v1999_v17 }
 0x235   : > { %2892 = vtanh.f32 %v2028_v37  ;;  %v2029_v6 = vmul.f32 0.7978846, %v1997_v48 }
 0x236   : > { %2894 = vtanh.f32 %v2031_v55 }
 0x237   : > { %2896 = vtanh.f32 %v2029_v6 }
 0x23e   : > { %v2891_v38 = vpop.eup %2890 }
 0x23f   : > { %v2893_v2 = vpop.eup %2892  ;;  %v2094_v39 = vadd.f32 1.0, %v2891_v38 }
 0x240   : > { %v2895_v59 = vpop.eup %2894  ;;  %v2092_v50 = vadd.f32 1.0, %v2893_v2 }
 0x241   : > { %v2897_v33 = vpop.eup %2896  ;;  %v2126_v30 = vmul.f32 %v2094_v39, %v1870_v5  ;;  %v2095_v23 = vadd.f32 1.0, %v2895_v59 }
 0x242   : > { %v2124_v7 = vmul.f32 %v2092_v50, %v1868_v27  ;;  %v2093_v4 = vadd.f32 1.0, %v2897_v33 }
 0x243   : > { %v2127_v54 = vmul.f32 %v2095_v23, %v1871_v53  ;;  %v2356_v14 = vmul.f32 %v2126_v30, %v2126_v30 }
 0x244   : > { %v2315_v3 = vadd.f32 %v2314_v36, %v2124_v7  ;;  %v2354_v0 = vmul.f32 %v2124_v7, %v2124_v7  ;;  %v2125_v47 = vmul.f32 %v2093_v4, %v1869_v31 }
 0x245   : > { %v2649_v13 = vpack.c.bf16 %v2127_v54, %v2126_v30  ;;  %v2357_v20 = vmul.f32 %v2127_v54, %v2127_v54 }
 0x246   : > { %v2385_v22 = vadd.f32 %v2384_v11, %v2354_v0  ;;  %v2644_v40 = vpack.c.bf16 %v2125_v47, %v2124_v7  ;;  %v2316_v16 = vadd.f32 %v2315_v3, %v2125_v47  ;;  %v2355_v10 = vmul.f32 %v2125_v47, %v2125_v47 }
 0x247   : > { %2665 = vst [vmem:[%s4421_s19 + $0x78] sm:$0xff] %v2649_v13  }
 0x248   : > { %2664 = vst [vmem:[%s4421_s19 + $0x70] sm:$0xff] %v2644_v40   ;;  %v2317_v46 = vadd.f32 %v2316_v16, %v2126_v30  ;;  %v2386_v19 = vadd.f32 %v2385_v22, %v2355_v10 }
 0x24a   : > { %v2318_v45 = vadd.f32 %v2317_v46, %v2127_v54  ;;  %v2387_v58 = vadd.f32 %v2386_v19, %v2356_v14 }
 0x24c   : > { %v2319_v63 = vrot.slane %v2318_v45, 4  ;;  %v2388_v12 = vadd.f32 %v2387_v58, %v2357_v20 }
 0x24e   : > { %v2320_v9 = vadd.f32 %v2319_v63, %v2318_v45  ;;  %v2389_v35 = vrot.slane %v2388_v12, 4 }
 0x250   : > { %v2321_v1 = vrot.slane %v2320_v9, 2  ;;  %v2390_v44 = vadd.f32 %v2389_v35, %v2388_v12 }
 0x252   : > { %v2322_v60 = vadd.f32 %v2321_v1, %v2320_v9  ;;  %v2391_v15 = vrot.slane %v2390_v44, 2 }
 0x254   : > { %v2323_v18 = vrot.slane %v2322_v60, 1  ;;  %v2392_v62 = vadd.f32 %v2391_v15, %v2390_v44 }
 0x256   : > { %v2324_v29 = vadd.f32 %v2323_v18, %v2322_v60  ;;  %v2393_v26 = vrot.slane %v2392_v62, 1 }
 0x258   : > { %2325 = vst [vmem:[%s289_s23] sm:$0x1] %v2324_v29  ;;  %v2394_v49 = vadd.f32 %v2393_v26, %v2392_v62 }
 0x25a   : > { %2395 = vst [vmem:[%s289_s23 + $0x1] sm:$0x1] %v2394_v49 }
 0x25b PF: > { %s18_s24 = sadd.s32 1, %s2922_s24  }
 0x25c   : > { %p15_p4 = scmp.ge.s32.totalorder %s18_s24, 4  }
 0x25e   :  { %17 = sbr.rel (!%p15_p4) target bundleno = 1 (0x1), region = 86 }

</bundles_post_ra>
